<compile_context>
chip_gen: v6e
topology: v6e:2x2x1
jax: 0.10.0
libtpu: 0.0.40
codegen_flags: <defaults>
</compile_context>

<pallas_src>
import numpy as np
import jax
import jax.numpy as jnp
from jax.experimental import pallas as pl
from jax.experimental.pallas import tpu as pltpu

# ----------------------------------------------------------------------------
# Column layout (synthetic but consistent with LearnNet29's expectations):
#  - 7 columns contain the substring 'tag'  (tag1..tag6 + lecture_tag)  -> emb_tag*7
#  - contcols is a subset of modcols; two of them contain 'counts'
# ----------------------------------------------------------------------------
MODCOLS = [
    'content_id', 'part', 'bundle_id', 'prior_question_had_explanation',
    'lecture_part', 'lecture_tag', 'answered_correctly',
    'content_user_answer', 'lag_time_cat', 'elapsed_time_cat',
    'tag1', 'tag2', 'tag3', 'tag4', 'tag5', 'tag6',
    'userRatioCum', 'qaRatiocum', 'user_counts', 'content_counts',
]
CONTCOLS = ['userRatioCum', 'qaRatiocum', 'user_counts', 'content_counts']
EXTRACOLS = []
ALLCOLS = MODCOLS + EXTRACOLS

# NOTE: static index constants as NumPy arrays (lists are not valid JAX indices).
CONT_IDX = np.array([ALLCOLS.index(c) for c in CONTCOLS], dtype=np.int32)
CONT_IDXCTS = np.array([t for t, c in enumerate(CONTCOLS) if 'counts' in c],
                       dtype=np.int32)
TAG_IDX = np.array([i for i, c in enumerate(ALLCOLS) if 'tag' in c],
                   dtype=np.int32)                                    # 7 columns
N_TAG = int(TAG_IDX.shape[0])
DIFFSIZE = 32 + 4 + 32 + 8 * N_TAG                                    # 124

HIDDEN = 32                                                           # LSTM_UNITS (small demo)
IN_UNITSQ = DIFFSIZE * 2 + 4 + 16 + 2 + 32 + len(CONT_IDXCTS)         # 304
IN_UNITSQA = 16 + 16 + 8 + 8 + len(CONTCOLS)                          # 52
BN_EPS = 1e-5


# ----------------------------------------------------------------------------
# Tiled linear kernel (input projections): y = x @ W^T + b
# ----------------------------------------------------------------------------
def _linear_kernel(x_ref, w_ref, b_ref, o_ref):
    o_ref[...] = (jnp.dot(x_ref[...], w_ref[...],
                          preferred_element_type=jnp.float32) + b_ref[...])


def pallas_linear(x, w_t, b, tile_m=512):
    """x: (M, K) f32, w_t: (K, N) f32, b: (N,) f32 -> (M, N) f32.

    Tiled over M with the weight resident in VMEM (constant index_map) so large
    B*S pipelines instead of needing one monolithic VMEM block.
    """
    M, K = x.shape
    N = w_t.shape[1]
    tm = M if M <= tile_m else tile_m
    grid_m = pl.cdiv(M, tm)
    return pl.pallas_call(
        _linear_kernel,
        out_shape=jax.ShapeDtypeStruct((M, N), jnp.float32),
        grid=(grid_m,),
        in_specs=[
            pl.BlockSpec((tm, K), lambda i: (i, 0)),
            pl.BlockSpec((K, N), lambda i: (0, 0)),
            pl.BlockSpec((1, N), lambda i: (0, 0)),
        ],
        out_specs=pl.BlockSpec((tm, N), lambda i: (i, 0)),
        compiler_params=pltpu.CompilerParams(dimension_semantics=("parallel",)),
    )(x, w_t, b.reshape(1, N))


# ----------------------------------------------------------------------------
# Fused dual-LSTM recurrence + head kernel
# ----------------------------------------------------------------------------
def _pick_time_tile(S, cap=16):
    """Timesteps per grid step.  Must divide S and (be a multiple of 8 or == S)."""
    if S <= cap:
        return S
    for ts in range(cap, 7, -1):
        if ts % 8 == 0 and S % ts == 0:
            return ts
    return S


def _pick_batch_tile(B):
    """Batch rows per grid step.  Must divide B and (be a multiple of 8 or == B)."""
    for bt in (128, 64, 32, 16, 8):
        if B % bt == 0 and B > bt:
            return bt
    return B


def pallas_fused_lstm_head(xproj1, xproj2, whh_cat, wih2_h, cont_last,
                           w1_h2, w1_h1, w1_c, b1f, w2f, b2f, hidden):
    """Run both LSTM recurrences and the (BN-folded) head in one kernel.

    xproj1:    (B, S, 4H)  x_t @ W_ih1^T + b (bn0-folded)          -- LSTM1 input proj
    xproj2:    (B, S, 4H)  [embqa_t, cont_t] @ W_ih2[:52]^T + b    -- LSTM2 partial proj
    whh_cat:   (2H, 8H)    block-diag of W_hh1^T and W_hh2^T
    wih2_h:    (H, 4H)     rows of W_ih2^T multiplying hiddenq (h1_t)
    cont_last: (B, NC)     raw cont features at the last timestep (head input)
    w1_*:      folded linear1 weights split by input block; b1f: (H//2,)
    w2f:       (H//2, 1) folded linear_out weight; b2f: (1,)
    returns    (B, 1)
    """
    B, S, G = xproj1.shape
    H = hidden
    NC = cont_last.shape[1]
    Ts = _pick_time_tile(S)
    Bt = _pick_batch_tile(B)
    nb, nt = B // Bt, S // Ts

    def kernel(xp1_ref, xp2_ref, whh_ref, wih2h_ref, cont_ref,
               w1h2_ref, w1h1_ref, w1c_ref, b1_ref, w2_ref, b2_ref,
               out_ref, h1_s, c1_s, h2_s, c2_s):
        ti = pl.program_id(1)

        @pl.when(ti == 0)
        def _():
            h1_s[...] = jnp.zeros_like(h1_s)
            c1_s[...] = jnp.zeros_like(c1_s)
            h2_s[...] = jnp.zeros_like(h2_s)
            c2_s[...] = jnp.zeros_like(c2_s)

        h1 = h1_s[...]
        c1 = c1_s[...]
        h2 = h2_s[...]
        c2 = c2_s[...]
        whh = whh_ref[...]        # (2H, 8H) block-diagonal recurrent weight
        wih2h = wih2h_ref[...]    # (H, 4H)

        # Statically unrolled time loop over this Ts-block (LLO-visible).
        for tt in range(Ts):
            xp1_t = xp1_ref[:, tt, :]                    # (Bt, 4H)
            xp2_t = xp2_ref[:, tt, :]                    # (Bt, 4H)

            # One wide MXU pass: [h1 | h2] @ blockdiag(Whh1, Whh2) -> (Bt, 8H)
            rec = jnp.dot(jnp.concatenate([h1, h2], axis=1), whh,
                          preferred_element_type=jnp.float32)

            # ---- LSTM cell 1 (PyTorch gate order i, f, g, o) -----------------
            g1 = xp1_t + rec[:, :4 * H]
            sg1 = jax.nn.sigmoid(g1)                     # whole-vreg EUP pushes
            tg1 = jnp.tanh(g1)
            c1 = sg1[:, H:2 * H] * c1 + sg1[:, :H] * tg1[:, 2 * H:3 * H]
            h1 = sg1[:, 3 * H:] * jnp.tanh(c1)

            # ---- LSTM cell 2 (consumes h1_t directly from vregs) -------------
            g2 = (xp2_t + rec[:, 4 * H:]
                  + jnp.dot(h1, wih2h, preferred_element_type=jnp.float32))
            sg2 = jax.nn.sigmoid(g2)
            tg2 = jnp.tanh(g2)
            c2 = sg2[:, H:2 * H] * c2 + sg2[:, :H] * tg2[:, 2 * H:3 * H]
            h2 = sg2[:, 3 * H:] * jnp.tanh(c2)

        h1_s[...] = h1
        c1_s[...] = c1
        h2_s[...] = h2
        c2_s[...] = c2

        # Head epilogue (only once, on the last time block):
        #   z = [h2_last, h1_last, cont_last_raw]; out = relu(z@W1'+b1')@W2'+b2'
        # with bn1 / bn0(cont) / bn2 affines already folded into W1', b1', W2', b2'.
        @pl.when(ti == pl.num_programs(1) - 1)
        def _():
            y = (jnp.dot(h2, w1h2_ref[...], preferred_element_type=jnp.float32)
                 + jnp.dot(h1, w1h1_ref[...], preferred_element_type=jnp.float32)
                 + jnp.dot(cont_ref[...], w1c_ref[...],
                           preferred_element_type=jnp.float32)
                 + b1_ref[...])
            y = jnp.maximum(y, 0.0)
            out_ref[...] = (jnp.dot(y, w2_ref[...],
                                    preferred_element_type=jnp.float32)
                            + b2_ref[...])

    return pl.pallas_call(
        kernel,
        out_shape=jax.ShapeDtypeStruct((B, 1), jnp.float32),
        grid=(nb, nt),
        in_specs=[
            pl.BlockSpec((Bt, Ts, G), lambda b, t: (b, t, 0)),      # xproj1
            pl.BlockSpec((Bt, Ts, G), lambda b, t: (b, t, 0)),      # xproj2
            pl.BlockSpec((2 * H, 8 * H), lambda b, t: (0, 0)),      # whh_cat
            pl.BlockSpec((H, 4 * H), lambda b, t: (0, 0)),          # wih2_h
            pl.BlockSpec((Bt, NC), lambda b, t: (b, 0)),            # cont_last
            pl.BlockSpec((H, H // 2), lambda b, t: (0, 0)),         # w1_h2
            pl.BlockSpec((H, H // 2), lambda b, t: (0, 0)),         # w1_h1
            pl.BlockSpec((NC, H // 2), lambda b, t: (0, 0)),        # w1_c
            pl.BlockSpec((1, H // 2), lambda b, t: (0, 0)),         # b1f
            pl.BlockSpec((H // 2, 1), lambda b, t: (0, 0)),         # w2f
            pl.BlockSpec((1, 1), lambda b, t: (0, 0)),              # b2f
        ],
        out_specs=pl.BlockSpec((Bt, 1), lambda b, t: (b, 0)),
        scratch_shapes=[pltpu.VMEM((Bt, H), jnp.float32)] * 4,      # h1, c1, h2, c2
        compiler_params=pltpu.CompilerParams(
            dimension_semantics=("parallel", "arbitrary")),
    )(xproj1, xproj2, whh_cat, wih2_h, cont_last,
      w1_h2, w1_h1, w1_c, b1f.reshape(1, -1), w2f, b2f.reshape(1, 1))


# ----------------------------------------------------------------------------
# Parameter initialization (deterministic, shapes match LearnNet29.__init__)
# ----------------------------------------------------------------------------
def init_params(key, hidden=HIDDEN):
    H = hidden
    ks = iter(jax.random.split(key, 64))

    def emb(n, d):
        return jax.random.normal(next(ks), (n, d), dtype=jnp.float32)

    def unif(shape, bound):
        return jax.random.uniform(next(ks), shape, jnp.float32, -bound, bound)

    p = {}
    p['emb_content_id'] = emb(13526, 32)
    p['emb_content_id_prior'] = emb(13526 * 3, 32)
    p['emb_bundle_id'] = emb(13526, 32)
    p['emb_part'] = emb(9, 4)
    p['emb_tag'] = emb(190, 8)
    p['emb_lpart'] = emb(9, 4)
    p['emb_prior'] = emb(3, 2)
    p['emb_ltag'] = emb(190, 16)
    p['emb_lag_time'] = emb(301, 16)
    p['emb_elapsed_time'] = emb(301, 16)
    p['emb_cont_user_answer'] = emb(13526 * 4, 8)
    p['emb_cont_correct_answer'] = emb(13526 * 2, 8)

    p['cont_wts'] = jnp.ones((len(CONTCOLS),), jnp.float32)
    # tag_wts exists in the module but is unused in forward.

    kb = 1.0 / float(np.sqrt(H))
    # LSTM1: input IN_UNITSQ -> H
    p['w_ih1_t'] = unif((IN_UNITSQ, 4 * H), kb)   # transpose of (4H, IN)
    p['w_hh1_t'] = unif((H, 4 * H), kb)
    p['b1'] = unif((4 * H,), kb) + unif((4 * H,), kb)   # b_ih + b_hh
    # LSTM2: input IN_UNITSQA + H -> H
    p['w_ih2_t'] = unif((IN_UNITSQA + H, 4 * H), kb)
    p['w_hh2_t'] = unif((H, 4 * H), kb)
    p['b2'] = unif((4 * H,), kb) + unif((4 * H,), kb)

    lin1_in = 2 * H + len(CONTCOLS)
    k1 = 1.0 / float(np.sqrt(lin1_in))
    p['lin1_w_t'] = unif((lin1_in, H // 2), k1)
    p['lin1_b'] = unif((H // 2,), k1)
    k2 = 1.0 / float(np.sqrt(H // 2))
    p['lout_w_t'] = unif((H // 2, 1), k2)
    p['lout_b'] = unif((1,), k2)

    # BatchNorm params at their PyTorch init values (eval mode uses running stats).
    for name, n in (('bn0', len(CONTCOLS)), ('bn1', lin1_in), ('bn2', H // 2)):
        p[f'{name}_g'] = jnp.ones((n,), jnp.float32)
        p[f'{name}_b'] = jnp.zeros((n,), jnp.float32)
        p[f'{name}_rm'] = jnp.zeros((n,), jnp.float32)
        p[f'{name}_rv'] = jnp.ones((n,), jnp.float32)
    return p


# ----------------------------------------------------------------------------
# Forward pass (eval-mode semantics of LearnNet29.forward)
# ----------------------------------------------------------------------------
@jax.jit
def learnnet29_forward(params, x):
    B, S, _ = x.shape
    H = params['w_hh1_t'].shape[0]
    NC = len(CONTCOLS)

    def col(name):
        return x[:, :, ALLCOLS.index(name)]

    # ---- bn0 (eval) * cont_wts as an affine, folded into downstream weights -----
    inv_std0 = params['bn0_g'] / jnp.sqrt(params['bn0_rv'] + BN_EPS)
    scale0 = inv_std0 * params['cont_wts']                                # (NC,)
    shift0 = (params['bn0_b'] - params['bn0_rm'] * inv_std0) * params['cont_wts']

    cont_raw = x[:, :, CONT_IDX]                                          # (B, S, NC)
    cont_cts_raw = cont_raw[:, :, CONT_IDXCTS]                            # (B, S, 2)
    scale0_cts = scale0[CONT_IDXCTS]                                      # (2,)
    shift0_cts = shift0[CONT_IDXCTS]                                      # (2,)

    # ---- embeddings (gathers are glue) ----------------------------------------
    cid = col('content_id').astype(jnp.int32)
    prior = col('prior_question_had_explanation').astype(jnp.int32)
    content_id_prior = (col('content_id') * 3.0 +
                        col('prior_question_had_explanation')).astype(jnp.int32)

    tags = x[:, :, TAG_IDX].astype(jnp.int32)                             # (B, S, 7)
    emb_tag_flat = params['emb_tag'][tags].reshape(B, S, -1)              # (B, S, 56)

    embcatq = jnp.concatenate([
        params['emb_content_id'][cid],                                    # 32
        params['emb_part'][col('part').astype(jnp.int32)],                # 4
        params['emb_bundle_id'][col('bundle_id').astype(jnp.int32)],      # 32
        emb_tag_flat,                                                     # 56
        params['emb_prior'][prior],                                       # 2
        params['emb_lpart'][col('lecture_part').astype(jnp.int32)],       # 4
        params['emb_ltag'][col('lecture_tag').astype(jnp.int32)],         # 16
        params['emb_content_id_prior'][content_id_prior],                 # 32
    ], axis=2)                                                            # (B, S, 178)

    embcatqdiff = embcatq[:, :, :DIFFSIZE] - embcatq[:, -1:, :DIFFSIZE]

    shifted_cid = jnp.concatenate(
        [col('content_id')[:, :1], col('content_id')[:, :-1]], axis=1)
    shifted_cid = shifted_cid.at[:, 0].set(13522.0)
    correctidx = (shifted_cid.astype(jnp.int32) * 2 +
                  col('answered_correctly').astype(jnp.int32))

    embcatqa = jnp.concatenate([
        params['emb_cont_user_answer'][col('content_user_answer').astype(jnp.int32)],  # 8
        params['emb_cont_correct_answer'][correctidx],                                 # 8
        params['emb_lag_time'][col('lag_time_cat').astype(jnp.int32)],                 # 16
        params['emb_elapsed_time'][col('elapsed_time_cat').astype(jnp.int32)],         # 16
    ], axis=2)                                                            # (B, S, 48)

    # SpatialDropout / dropout: identity in eval mode.

    # ---- LSTM1 input projection (bn0*cont_wts folded into the cont rows) -------
    w_ih1 = params['w_ih1_t']                                             # (304, 4H)
    ncts = int(CONT_IDXCTS.shape[0])
    w_ih1_f = w_ih1.at[-ncts:, :].multiply(scale0_cts[:, None])
    b1_f = params['b1'] + shift0_cts @ w_ih1[-ncts:, :]

    xinpq = jnp.concatenate([embcatq, embcatqdiff, cont_cts_raw], axis=2)  # (B,S,304)
    xproj1 = pallas_linear(xinpq.reshape(B * S, -1), w_ih1_f, b1_f)
    xproj1 = xproj1.reshape(B, S, 4 * H)

    # ---- LSTM2 partial input projection ([embcatqa, cont], bn0 folded) ---------
    w_ih2 = params['w_ih2_t']                                             # (52+H, 4H)
    nqa = IN_UNITSQA - NC                                                 # 48
    w_ih2_lo = w_ih2[:IN_UNITSQA, :]
    w_ih2_lo_f = w_ih2_lo.at[nqa:, :].multiply(scale0[:, None])
    b2_f = params['b2'] + shift0 @ w_ih2_lo[nqa:, :]
    wih2_h = w_ih2[IN_UNITSQA:, :]                                        # (H, 4H)

    xinpqa_p = jnp.concatenate([embcatqa, cont_raw], axis=2)              # (B, S, 52)
    xproj2 = pallas_linear(xinpqa_p.reshape(B * S, -1), w_ih2_lo_f, b2_f)
    xproj2 = xproj2.reshape(B, S, 4 * H)

    # ---- block-diagonal recurrent weight (one wide MXU pass per step) ----------
    whh_cat = jnp.zeros((2 * H, 8 * H), jnp.float32)
    whh_cat = whh_cat.at[:H, :4 * H].set(params['w_hh1_t'])
    whh_cat = whh_cat.at[H:, 4 * H:].set(params['w_hh2_t'])

    # ---- head weight folding: bn1 (+ bn0 on cont part) and bn2 affines ---------
    A1 = params['bn1_g'] / jnp.sqrt(params['bn1_rv'] + BN_EPS)
    B1 = params['bn1_b'] - params['bn1_rm'] * A1
    head_scale = A1 * jnp.concatenate([jnp.ones((2 * H,), jnp.float32), scale0])
    head_shift = B1 + A1 * jnp.concatenate([jnp.zeros((2 * H,), jnp.float32), shift0])
    w1 = params['lin1_w_t']                                               # (2H+NC, H//2)
    w1_f = w1 * head_scale[:, None]
    b1h_f = params['lin1_b'] + head_shift @ w1

    A2 = params['bn2_g'] / jnp.sqrt(params['bn2_rv'] + BN_EPS)
    B2 = params['bn2_b'] - params['bn2_rm'] * A2
    w2_f = params['lout_w_t'] * A2[:, None]                               # (H//2, 1)
    b2h_f = params['lout_b'] + B2 @ params['lout_w_t']                    # (1,)

    cont_last_raw = cont_raw[:, -1, :]                                    # (B, NC)

    # ---- fused recurrences + head ----------------------------------------------
    out = pallas_fused_lstm_head(
        xproj1, xproj2, whh_cat, wih2_h, cont_last_raw,
        w1_f[:H, :], w1_f[H:2 * H, :], w1_f[2 * H:, :],
        b1h_f, w2_f, b2h_f, H)
    return out.reshape(-1)                                                # (B,)


# ----------------------------------------------------------------------------
# Example input construction
# ----------------------------------------------------------------------------
def make_example_input(key, B=2, S=8):
    ks = iter(jax.random.split(key, 32))

    def cat(maxval):
        return jax.random.randint(next(ks), (B, S), 0, maxval).astype(jnp.float32)

    def cont():
        return jax.random.uniform(next(ks), (B, S), jnp.float32)

    cols = {
        'content_id': cat(13526),
        'part': cat(9),
        'bundle_id': cat(13526),
        'prior_question_had_explanation': cat(3),
        'lecture_part': cat(9),
        'lecture_tag': cat(190),
        'answered_correctly': cat(2),
        'content_user_answer': cat(13526 * 4),
        'lag_time_cat': cat(301),
        'elapsed_time_cat': cat(301),
        'tag1': cat(190), 'tag2': cat(190), 'tag3': cat(190),
        'tag4': cat(190), 'tag5': cat(190), 'tag6': cat(190),
        'userRatioCum': cont(), 'qaRatiocum': cont(),
        'user_counts': cont() * 10.0, 'content_counts': cont() * 10.0,
    }
    return jnp.stack([cols[c] for c in ALLCOLS], axis=-1)                 # (B, S, 20)


if __name__ == "__main__":
    key = jax.random.PRNGKey(0)
    pkey, xkey = jax.random.split(key)
    params = init_params(pkey, hidden=HIDDEN)
    x = make_example_input(xkey, B=2, S=8)

    out = learnnet29_forward(params, x)
    jax.block_until_ready(out)
    assert out.shape == (2,)
    print("KERNEL_OK")
</pallas_src>

<mosaic_0001>
module attributes {stable_mosaic.version = 11 : i64} {
  func.func @_linear_kernel(%arg0: i32, %arg1: memref<16x304xf32, #tpu.memory_space<vmem>>, %arg2: memref<304x128xf32, #tpu.memory_space<vmem>>, %arg3: memref<1x128xf32, #tpu.memory_space<vmem>>, %arg4: memref<16x128xf32, #tpu.memory_space<vmem>>) attributes {dimension_semantics = [#tpu.dimension_semantics<parallel>], iteration_bounds = array<i64: 1>, scalar_prefetch = 0 : i64, scratch_operands = 0 : i64, tpu.core_type = #tpu.core_type<tc>, window_params = [{transform_indices = @transform_0, window_bounds = array<i64: 16, 304>}, {pipeline_mode = #tpu.pipeline_mode<synchronous>, transform_indices = @transform_1, window_bounds = array<i64: 304, 128>}, {pipeline_mode = #tpu.pipeline_mode<synchronous>, transform_indices = @transform_2, window_bounds = array<i64: 1, 128>}, {transform_indices = @transform_3, window_bounds = array<i64: 16, 128>}]} {
    %c0 = arith.constant 0 : index
    %c0_0 = arith.constant 0 : index
    %0 = vector.load %arg1[%c0, %c0_0] : memref<16x304xf32, #tpu.memory_space<vmem>>, vector<16x304xf32>
    %c0_1 = arith.constant 0 : index
    %c0_2 = arith.constant 0 : index
    %1 = vector.load %arg2[%c0_1, %c0_2] : memref<304x128xf32, #tpu.memory_space<vmem>>, vector<304x128xf32>
    %cst = arith.constant dense<0.000000e+00> : vector<16x128xf32>
    %2 = tpu.matmul %0, %1, %cst {dimension_numbers = #tpu.dot_dimension_numbers<[1], [0], [0], [1], [0, 0, 1, 1], [], []>} : vector<16x304xf32>, vector<304x128xf32>, vector<16x128xf32> -> vector<16x128xf32>
    %c0_3 = arith.constant 0 : index
    %c0_4 = arith.constant 0 : index
    %3 = vector.load %arg3[%c0_3, %c0_4] : memref<1x128xf32, #tpu.memory_space<vmem>>, vector<1x128xf32>
    %4 = vector.broadcast %3 : vector<1x128xf32> to vector<16x128xf32>
    %5 = arith.addf %2, %4 : vector<16x128xf32>
    %c0_5 = arith.constant 0 : index
    %c0_6 = arith.constant 0 : index
    %6 = vector.load %arg4[%c0_5, %c0_6] : memref<16x128xf32, #tpu.memory_space<vmem>>, vector<16x128xf32>
    tpu.vector_store %arg4[%c0_5, %c0_6], %5 {strides = array<i32>} : memref<16x128xf32, #tpu.memory_space<vmem>>, vector<16x128xf32>,
    return
  }
  func.func @transform_0(%arg0: i32) -> (i32, i32) {
    %c0_i32 = arith.constant 0 : i32
    %c0_i32_0 = arith.constant 0 : i32
    return %arg0, %c0_i32 : i32, i32
  }
  func.func @transform_1(%arg0: i32) -> (i32, i32) {
    %c0_i32 = arith.constant 0 : i32
    %c0_i32_0 = arith.constant 0 : i32
    %c0_i32_1 = arith.constant 0 : i32
    return %c0_i32, %c0_i32_0 : i32, i32
  }
  func.func @transform_2(%arg0: i32) -> (i32, i32) {
    %c0_i32 = arith.constant 0 : i32
    %c0_i32_0 = arith.constant 0 : i32
    %c0_i32_1 = arith.constant 0 : i32
    return %c0_i32, %c0_i32_0 : i32, i32
  }
  func.func @transform_3(%arg0: i32) -> (i32, i32) {
    %c0_i32 = arith.constant 0 : i32
    %c0_i32_0 = arith.constant 0 : i32
    return %arg0, %c0_i32 : i32, i32
  }
}

module attributes {stable_mosaic.version = 11 : i64} {
  func.func @_linear_kernel(%arg0: i32, %arg1: memref<16x52xf32, #tpu.memory_space<vmem>>, %arg2: memref<52x128xf32, #tpu.memory_space<vmem>>, %arg3: memref<1x128xf32, #tpu.memory_space<vmem>>, %arg4: memref<16x128xf32, #tpu.memory_space<vmem>>) attributes {dimension_semantics = [#tpu.dimension_semantics<parallel>], iteration_bounds = array<i64: 1>, scalar_prefetch = 0 : i64, scratch_operands = 0 : i64, tpu.core_type = #tpu.core_type<tc>, window_params = [{transform_indices = @transform_0, window_bounds = array<i64: 16, 52>}, {pipeline_mode = #tpu.pipeline_mode<synchronous>, transform_indices = @transform_1, window_bounds = array<i64: 52, 128>}, {pipeline_mode = #tpu.pipeline_mode<synchronous>, transform_indices = @transform_2, window_bounds = array<i64: 1, 128>}, {transform_indices = @transform_3, window_bounds = array<i64: 16, 128>}]} {
    %c0 = arith.constant 0 : index
    %c0_0 = arith.constant 0 : index
    %0 = vector.load %arg1[%c0, %c0_0] : memref<16x52xf32, #tpu.memory_space<vmem>>, vector<16x52xf32>
    %c0_1 = arith.constant 0 : index
    %c0_2 = arith.constant 0 : index
    %1 = vector.load %arg2[%c0_1, %c0_2] : memref<52x128xf32, #tpu.memory_space<vmem>>, vector<52x128xf32>
    %cst = arith.constant dense<0.000000e+00> : vector<16x128xf32>
    %2 = tpu.matmul %0, %1, %cst {dimension_numbers = #tpu.dot_dimension_numbers<[1], [0], [0], [1], [0, 0, 1, 1], [], []>} : vector<16x52xf32>, vector<52x128xf32>, vector<16x128xf32> -> vector<16x128xf32>
    %c0_3 = arith.constant 0 : index
    %c0_4 = arith.constant 0 : index
    %3 = vector.load %arg3[%c0_3, %c0_4] : memref<1x128xf32, #tpu.memory_space<vmem>>, vector<1x128xf32>
    %4 = vector.broadcast %3 : vector<1x128xf32> to vector<16x128xf32>
    %5 = arith.addf %2, %4 : vector<16x128xf32>
    %c0_5 = arith.constant 0 : index
    %c0_6 = arith.constant 0 : index
    %6 = vector.load %arg4[%c0_5, %c0_6] : memref<16x128xf32, #tpu.memory_space<vmem>>, vector<16x128xf32>
    tpu.vector_store %arg4[%c0_5, %c0_6], %5 {strides = array<i32>} : memref<16x128xf32, #tpu.memory_space<vmem>>, vector<16x128xf32>,
    return
  }
  func.func @transform_0(%arg0: i32) -> (i32, i32) {
    %c0_i32 = arith.constant 0 : i32
    %c0_i32_0 = arith.constant 0 : i32
    return %arg0, %c0_i32 : i32, i32
  }
  func.func @transform_1(%arg0: i32) -> (i32, i32) {
    %c0_i32 = arith.constant 0 : i32
    %c0_i32_0 = arith.constant 0 : i32
    %c0_i32_1 = arith.constant 0 : i32
    return %c0_i32, %c0_i32_0 : i32, i32
  }
  func.func @transform_2(%arg0: i32) -> (i32, i32) {
    %c0_i32 = arith.constant 0 : i32
    %c0_i32_0 = arith.constant 0 : i32
    %c0_i32_1 = arith.constant 0 : i32
    return %c0_i32, %c0_i32_0 : i32, i32
  }
  func.func @transform_3(%arg0: i32) -> (i32, i32) {
    %c0_i32 = arith.constant 0 : i32
    %c0_i32_0 = arith.constant 0 : i32
    return %arg0, %c0_i32 : i32, i32
  }
}

module attributes {stable_mosaic.version = 11 : i64} {
  func.func @kernel(%arg0: i32, %arg1: i32, %arg2: memref<2x8x128xf32, #tpu.memory_space<vmem>>, %arg3: memref<2x8x128xf32, #tpu.memory_space<vmem>>, %arg4: memref<64x256xf32, #tpu.memory_space<vmem>>, %arg5: memref<32x128xf32, #tpu.memory_space<vmem>>, %arg6: memref<2x4xf32, #tpu.memory_space<vmem>>, %arg7: memref<32x16xf32, #tpu.memory_space<vmem>>, %arg8: memref<32x16xf32, #tpu.memory_space<vmem>>, %arg9: memref<4x16xf32, #tpu.memory_space<vmem>>, %arg10: memref<1x16xf32, #tpu.memory_space<vmem>>, %arg11: memref<16x1xf32, #tpu.memory_space<vmem>>, %arg12: memref<1x1xf32, #tpu.memory_space<vmem>>, %arg13: memref<2x1xf32, #tpu.memory_space<vmem>>, %arg14: memref<2x32xf32, #tpu.memory_space<vmem>>, %arg15: memref<2x32xf32, #tpu.memory_space<vmem>>, %arg16: memref<2x32xf32, #tpu.memory_space<vmem>>, %arg17: memref<2x32xf32, #tpu.memory_space<vmem>>) attributes {dimension_semantics = [#tpu.dimension_semantics<parallel>, #tpu.dimension_semantics<arbitrary>], iteration_bounds = array<i64: 1, 1>, scalar_prefetch = 0 : i64, scratch_operands = 4 : i64, tpu.core_type = #tpu.core_type<tc>, window_params = [{transform_indices = @transform_0, window_bounds = array<i64: 2, 8, 128>}, {transform_indices = @transform_1, window_bounds = array<i64: 2, 8, 128>}, {pipeline_mode = #tpu.pipeline_mode<synchronous>, transform_indices = @transform_2, window_bounds = array<i64: 64, 256>}, {pipeline_mode = #tpu.pipeline_mode<synchronous>, transform_indices = @transform_3, window_bounds = array<i64: 32, 128>}, {transform_indices = @transform_4, window_bounds = array<i64: 2, 4>}, {pipeline_mode = #tpu.pipeline_mode<synchronous>, transform_indices = @transform_5, window_bounds = array<i64: 32, 16>}, {pipeline_mode = #tpu.pipeline_mode<synchronous>, transform_indices = @transform_6, window_bounds = array<i64: 32, 16>}, {pipeline_mode = #tpu.pipeline_mode<synchronous>, transform_indices = @transform_7, window_bounds = array<i64: 4, 16>}, {pipeline_mode = #tpu.pipeline_mode<synchronous>, transform_indices = @transform_8, window_bounds = array<i64: 1, 16>}, {pipeline_mode = #tpu.pipeline_mode<synchronous>, transform_indices = @transform_9, window_bounds = array<i64: 16, 1>}, {pipeline_mode = #tpu.pipeline_mode<synchronous>, transform_indices = @transform_10, window_bounds = array<i64: 1, 1>}, {transform_indices = @transform_11, window_bounds = array<i64: 2, 1>}]} {
    %c0_i32 = arith.constant 0 : i32
    %0 = arith.cmpi eq, %arg1, %c0_i32 : i32
    %1 = arith.extui %0 : i1 to i32
    %c0_i32_0 = arith.constant 0 : i32
    %2 = arith.cmpi ne, %1, %c0_i32_0 : i32
    scf.if %2 {
      %cst_94 = arith.constant 0.000000e+00 : f32
      %352 = vector.broadcast %cst_94 : f32 to vector<2x32xf32>
      %c0_95 = arith.constant 0 : index
      %c0_96 = arith.constant 0 : index
      %353 = vector.load %arg14[%c0_95, %c0_96] : memref<2x32xf32, #tpu.memory_space<vmem>>, vector<2x32xf32>
      tpu.vector_store %arg14[%c0_95, %c0_96], %352 {strides = array<i32>} : memref<2x32xf32, #tpu.memory_space<vmem>>, vector<2x32xf32>,
      %cst_97 = arith.constant 0.000000e+00 : f32
      %354 = vector.broadcast %cst_97 : f32 to vector<2x32xf32>
      %c0_98 = arith.constant 0 : index
      %c0_99 = arith.constant 0 : index
      %355 = vector.load %arg15[%c0_98, %c0_99] : memref<2x32xf32, #tpu.memory_space<vmem>>, vector<2x32xf32>
      tpu.vector_store %arg15[%c0_98, %c0_99], %354 {strides = array<i32>} : memref<2x32xf32, #tpu.memory_space<vmem>>, vector<2x32xf32>,
      %cst_100 = arith.constant 0.000000e+00 : f32
      %356 = vector.broadcast %cst_100 : f32 to vector<2x32xf32>
      %c0_101 = arith.constant 0 : index
      %c0_102 = arith.constant 0 : index
      %357 = vector.load %arg16[%c0_101, %c0_102] : memref<2x32xf32, #tpu.memory_space<vmem>>, vector<2x32xf32>
      tpu.vector_store %arg16[%c0_101, %c0_102], %356 {strides = array<i32>} : memref<2x32xf32, #tpu.memory_space<vmem>>, vector<2x32xf32>,
      %cst_103 = arith.constant 0.000000e+00 : f32
      %358 = vector.broadcast %cst_103 : f32 to vector<2x32xf32>
      %c0_104 = arith.constant 0 : index
      %c0_105 = arith.constant 0 : index
      %359 = vector.load %arg17[%c0_104, %c0_105] : memref<2x32xf32, #tpu.memory_space<vmem>>, vector<2x32xf32>
      tpu.vector_store %arg17[%c0_104, %c0_105], %358 {strides = array<i32>} : memref<2x32xf32, #tpu.memory_space<vmem>>, vector<2x32xf32>,
    } else {
    }
    %c0 = arith.constant 0 : index
    %c0_1 = arith.constant 0 : index
    %3 = vector.load %arg14[%c0, %c0_1] : memref<2x32xf32, #tpu.memory_space<vmem>>, vector<2x32xf32>
    %c0_2 = arith.constant 0 : index
    %c0_3 = arith.constant 0 : index
    %4 = vector.load %arg15[%c0_2, %c0_3] : memref<2x32xf32, #tpu.memory_space<vmem>>, vector<2x32xf32>
    %c0_4 = arith.constant 0 : index
    %c0_5 = arith.constant 0 : index
    %5 = vector.load %arg16[%c0_4, %c0_5] : memref<2x32xf32, #tpu.memory_space<vmem>>, vector<2x32xf32>
    %c0_6 = arith.constant 0 : index
    %c0_7 = arith.constant 0 : index
    %6 = vector.load %arg17[%c0_6, %c0_7] : memref<2x32xf32, #tpu.memory_space<vmem>>, vector<2x32xf32>
    %c0_8 = arith.constant 0 : index
    %c0_9 = arith.constant 0 : index
    %7 = vector.load %arg4[%c0_8, %c0_9] : memref<64x256xf32, #tpu.memory_space<vmem>>, vector<64x256xf32>
    %c0_10 = arith.constant 0 : index
    %c0_11 = arith.constant 0 : index
    %8 = vector.load %arg5[%c0_10, %c0_11] : memref<32x128xf32, #tpu.memory_space<vmem>>, vector<32x128xf32>
    %c0_12 = arith.constant 0 : index
    %c0_13 = arith.constant 0 : index
    %c0_14 = arith.constant 0 : index
    %9 = vector.load %arg2[%c0_12, %c0_13, %c0_14] : memref<2x8x128xf32, #tpu.memory_space<vmem>>, vector<2x1x128xf32>
    %10 = vector.shape_cast %9 : vector<2x1x128xf32> to vector<2x128xf32>
    %c0_15 = arith.constant 0 : index
    %c0_16 = arith.constant 0 : index
    %c0_17 = arith.constant 0 : index
    %11 = vector.load %arg3[%c0_15, %c0_16, %c0_17] : memref<2x8x128xf32, #tpu.memory_space<vmem>>, vector<2x1x128xf32>
    %12 = vector.shape_cast %11 : vector<2x1x128xf32> to vector<2x128xf32>
    %13 = tpu.concatenate %3, %5 in 1 : vector<2x32xf32>, vector<2x32xf32> -> vector<2x64xf32>
    %cst = arith.constant dense<0.000000e+00> : vector<2x256xf32>
    %14 = tpu.matmul %13, %7, %cst {dimension_numbers = #tpu.dot_dimension_numbers<[1], [0], [0], [1], [0, 0, 1, 1], [], []>} : vector<2x64xf32>, vector<64x256xf32>, vector<2x256xf32> -> vector<2x256xf32>
    %15 = vector.extract_strided_slice %14 {offsets = [0, 0], sizes = [2, 128], strides = [1, 1]} : vector<2x256xf32> to vector<2x128xf32>
    %16 = arith.addf %10, %15 : vector<2x128xf32>
    %17 = arith.negf %16 : vector<2x128xf32>
    %18 = math.exp %17 : vector<2x128xf32>
    %cst_18 = arith.constant 1.000000e+00 : f32
    %19 = vector.broadcast %cst_18 : f32 to vector<2x128xf32>
    %20 = arith.addf %19, %18 : vector<2x128xf32>
    %21 = arith.divf %19, %20 : vector<2x128xf32>
    %22 = math.tanh %16 : vector<2x128xf32>
    %23 = vector.extract_strided_slice %21 {offsets = [0, 32], sizes = [2, 32], strides = [1, 1]} : vector<2x128xf32> to vector<2x32xf32>
    %24 = arith.mulf %23, %4 : vector<2x32xf32>
    %25 = vector.extract_strided_slice %21 {offsets = [0, 0], sizes = [2, 32], strides = [1, 1]} : vector<2x128xf32> to vector<2x32xf32>
    %26 = vector.extract_strided_slice %22 {offsets = [0, 64], sizes = [2, 32], strides = [1, 1]} : vector<2x128xf32> to vector<2x32xf32>
    %27 = arith.mulf %25, %26 : vector<2x32xf32>
    %28 = arith.addf %24, %27 : vector<2x32xf32>
    %29 = vector.extract_strided_slice %21 {offsets = [0, 96], sizes = [2, 32], strides = [1, 1]} : vector<2x128xf32> to vector<2x32xf32>
    %30 = math.tanh %28 : vector<2x32xf32>
    %31 = arith.mulf %29, %30 : vector<2x32xf32>
    %32 = vector.extract_strided_slice %14 {offsets = [0, 128], sizes = [2, 128], strides = [1, 1]} : vector<2x256xf32> to vector<2x128xf32>
    %33 = arith.addf %12, %32 : vector<2x128xf32>
    %cst_19 = arith.constant dense<0.000000e+00> : vector<2x128xf32>
    %34 = tpu.matmul %31, %8, %cst_19 {dimension_numbers = #tpu.dot_dimension_numbers<[1], [0], [0], [1], [0, 0, 1, 1], [], []>} : vector<2x32xf32>, vector<32x128xf32>, vector<2x128xf32> -> vector<2x128xf32>
    %35 = arith.addf %33, %34 : vector<2x128xf32>
    %36 = arith.negf %35 : vector<2x128xf32>
    %37 = math.exp %36 : vector<2x128xf32>
    %cst_20 = arith.constant 1.000000e+00 : f32
    %38 = vector.broadcast %cst_20 : f32 to vector<2x128xf32>
    %39 = arith.addf %38, %37 : vector<2x128xf32>
    %40 = arith.divf %38, %39 : vector<2x128xf32>
    %41 = math.tanh %35 : vector<2x128xf32>
    %42 = vector.extract_strided_slice %40 {offsets = [0, 32], sizes = [2, 32], strides = [1, 1]} : vector<2x128xf32> to vector<2x32xf32>
    %43 = arith.mulf %42, %6 : vector<2x32xf32>
    %44 = vector.extract_strided_slice %40 {offsets = [0, 0], sizes = [2, 32], strides = [1, 1]} : vector<2x128xf32> to vector<2x32xf32>
    %45 = vector.extract_strided_slice %41 {offsets = [0, 64], sizes = [2, 32], strides = [1, 1]} : vector<2x128xf32> to vector<2x32xf32>
    %46 = arith.mulf %44, %45 : vector<2x32xf32>
    %47 = arith.addf %43, %46 : vector<2x32xf32>
    %48 = vector.extract_strided_slice %40 {offsets = [0, 96], sizes = [2, 32], strides = [1, 1]} : vector<2x128xf32> to vector<2x32xf32>
    %49 = math.tanh %47 : vector<2x32xf32>
    %50 = arith.mulf %48, %49 : vector<2x32xf32>
    %c0_21 = arith.constant 0 : index
    %c1 = arith.constant 1 : index
    %c0_22 = arith.constant 0 : index
    %51 = vector.load %arg2[%c0_21, %c1, %c0_22] : memref<2x8x128xf32, #tpu.memory_space<vmem>>, vector<2x1x128xf32>
    %52 = vector.shape_cast %51 : vector<2x1x128xf32> to vector<2x128xf32>
    %c0_23 = arith.constant 0 : index
    %c1_24 = arith.constant 1 : index
    %c0_25 = arith.constant 0 : index
    %53 = vector.load %arg3[%c0_23, %c1_24, %c0_25] : memref<2x8x128xf32, #tpu.memory_space<vmem>>, vector<2x1x128xf32>
    %54 = vector.shape_cast %53 : vector<2x1x128xf32> to vector<2x128xf32>
    %55 = tpu.concatenate %31, %50 in 1 : vector<2x32xf32>, vector<2x32xf32> -> vector<2x64xf32>
    %cst_26 = arith.constant dense<0.000000e+00> : vector<2x256xf32>
    %56 = tpu.matmul %55, %7, %cst_26 {dimension_numbers = #tpu.dot_dimension_numbers<[1], [0], [0], [1], [0, 0, 1, 1], [], []>} : vector<2x64xf32>, vector<64x256xf32>, vector<2x256xf32> -> vector<2x256xf32>
    %57 = vector.extract_strided_slice %56 {offsets = [0, 0], sizes = [2, 128], strides = [1, 1]} : vector<2x256xf32> to vector<2x128xf32>
    %58 = arith.addf %52, %57 : vector<2x128xf32>
    %59 = arith.negf %58 : vector<2x128xf32>
    %60 = math.exp %59 : vector<2x128xf32>
    %cst_27 = arith.constant 1.000000e+00 : f32
    %61 = vector.broadcast %cst_27 : f32 to vector<2x128xf32>
    %62 = arith.addf %61, %60 : vector<2x128xf32>
    %63 = arith.divf %61, %62 : vector<2x128xf32>
    %64 = math.tanh %58 : vector<2x128xf32>
    %65 = vector.extract_strided_slice %63 {offsets = [0, 32], sizes = [2, 32], strides = [1, 1]} : vector<2x128xf32> to vector<2x32xf32>
    %66 = arith.mulf %65, %28 : vector<2x32xf32>
    %67 = vector.extract_strided_slice %63 {offsets = [0, 0], sizes = [2, 32], strides = [1, 1]} : vector<2x128xf32> to vector<2x32xf32>
    %68 = vector.extract_strided_slice %64 {offsets = [0, 64], sizes = [2, 32], strides = [1, 1]} : vector<2x128xf32> to vector<2x32xf32>
    %69 = arith.mulf %67, %68 : vector<2x32xf32>
    %70 = arith.addf %66, %69 : vector<2x32xf32>
    %71 = vector.extract_strided_slice %63 {offsets = [0, 96], sizes = [2, 32], strides = [1, 1]} : vector<2x128xf32> to vector<2x32xf32>
    %72 = math.tanh %70 : vector<2x32xf32>
    %73 = arith.mulf %71, %72 : vector<2x32xf32>
    %74 = vector.extract_strided_slice %56 {offsets = [0, 128], sizes = [2, 128], strides = [1, 1]} : vector<2x256xf32> to vector<2x128xf32>
    %75 = arith.addf %54, %74 : vector<2x128xf32>
    %cst_28 = arith.constant dense<0.000000e+00> : vector<2x128xf32>
    %76 = tpu.matmul %73, %8, %cst_28 {dimension_numbers = #tpu.dot_dimension_numbers<[1], [0], [0], [1], [0, 0, 1, 1], [], []>} : vector<2x32xf32>, vector<32x128xf32>, vector<2x128xf32> -> vector<2x128xf32>
    %77 = arith.addf %75, %76 : vector<2x128xf32>
    %78 = arith.negf %77 : vector<2x128xf32>
    %79 = math.exp %78 : vector<2x128xf32>
    %cst_29 = arith.constant 1.000000e+00 : f32
    %80 = vector.broadcast %cst_29 : f32 to vector<2x128xf32>
    %81 = arith.addf %80, %79 : vector<2x128xf32>
    %82 = arith.divf %80, %81 : vector<2x128xf32>
    %83 = math.tanh %77 : vector<2x128xf32>
    %84 = vector.extract_strided_slice %82 {offsets = [0, 32], sizes = [2, 32], strides = [1, 1]} : vector<2x128xf32> to vector<2x32xf32>
    %85 = arith.mulf %84, %47 : vector<2x32xf32>
    %86 = vector.extract_strided_slice %82 {offsets = [0, 0], sizes = [2, 32], strides = [1, 1]} : vector<2x128xf32> to vector<2x32xf32>
    %87 = vector.extract_strided_slice %83 {offsets = [0, 64], sizes = [2, 32], strides = [1, 1]} : vector<2x128xf32> to vector<2x32xf32>
    %88 = arith.mulf %86, %87 : vector<2x32xf32>
    %89 = arith.addf %85, %88 : vector<2x32xf32>
    %90 = vector.extract_strided_slice %82 {offsets = [0, 96], sizes = [2, 32], strides = [1, 1]} : vector<2x128xf32> to vector<2x32xf32>
    %91 = math.tanh %89 : vector<2x32xf32>
    %92 = arith.mulf %90, %91 : vector<2x32xf32>
    %c0_30 = arith.constant 0 : index
    %c2 = arith.constant 2 : index
    %c0_31 = arith.constant 0 : index
    %93 = vector.load %arg2[%c0_30, %c2, %c0_31] : memref<2x8x128xf32, #tpu.memory_space<vmem>>, vector<2x1x128xf32>
    %94 = vector.shape_cast %93 : vector<2x1x128xf32> to vector<2x128xf32>
    %c0_32 = arith.constant 0 : index
    %c2_33 = arith.constant 2 : index
    %c0_34 = arith.constant 0 : index
    %95 = vector.load %arg3[%c0_32, %c2_33, %c0_34] : memref<2x8x128xf32, #tpu.memory_space<vmem>>, vector<2x1x128xf32>
    %96 = vector.shape_cast %95 : vector<2x1x128xf32> to vector<2x128xf32>
    %97 = tpu.concatenate %73, %92 in 1 : vector<2x32xf32>, vector<2x32xf32> -> vector<2x64xf32>
    %cst_35 = arith.constant dense<0.000000e+00> : vector<2x256xf32>
    %98 = tpu.matmul %97, %7, %cst_35 {dimension_numbers = #tpu.dot_dimension_numbers<[1], [0], [0], [1], [0, 0, 1, 1], [], []>} : vector<2x64xf32>, vector<64x256xf32>, vector<2x256xf32> -> vector<2x256xf32>
    %99 = vector.extract_strided_slice %98 {offsets = [0, 0], sizes = [2, 128], strides = [1, 1]} : vector<2x256xf32> to vector<2x128xf32>
    %100 = arith.addf %94, %99 : vector<2x128xf32>
    %101 = arith.negf %100 : vector<2x128xf32>
    %102 = math.exp %101 : vector<2x128xf32>
    %cst_36 = arith.constant 1.000000e+00 : f32
    %103 = vector.broadcast %cst_36 : f32 to vector<2x128xf32>
    %104 = arith.addf %103, %102 : vector<2x128xf32>
    %105 = arith.divf %103, %104 : vector<2x128xf32>
    %106 = math.tanh %100 : vector<2x128xf32>
    %107 = vector.extract_strided_slice %105 {offsets = [0, 32], sizes = [2, 32], strides = [1, 1]} : vector<2x128xf32> to vector<2x32xf32>
    %108 = arith.mulf %107, %70 : vector<2x32xf32>
    %109 = vector.extract_strided_slice %105 {offsets = [0, 0], sizes = [2, 32], strides = [1, 1]} : vector<2x128xf32> to vector<2x32xf32>
    %110 = vector.extract_strided_slice %106 {offsets = [0, 64], sizes = [2, 32], strides = [1, 1]} : vector<2x128xf32> to vector<2x32xf32>
    %111 = arith.mulf %109, %110 : vector<2x32xf32>
    %112 = arith.addf %108, %111 : vector<2x32xf32>
    %113 = vector.extract_strided_slice %105 {offsets = [0, 96], sizes = [2, 32], strides = [1, 1]} : vector<2x128xf32> to vector<2x32xf32>
    %114 = math.tanh %112 : vector<2x32xf32>
    %115 = arith.mulf %113, %114 : vector<2x32xf32>
    %116 = vector.extract_strided_slice %98 {offsets = [0, 128], sizes = [2, 128], strides = [1, 1]} : vector<2x256xf32> to vector<2x128xf32>
    %117 = arith.addf %96, %116 : vector<2x128xf32>
    %cst_37 = arith.constant dense<0.000000e+00> : vector<2x128xf32>
    %118 = tpu.matmul %115, %8, %cst_37 {dimension_numbers = #tpu.dot_dimension_numbers<[1], [0], [0], [1], [0, 0, 1, 1], [], []>} : vector<2x32xf32>, vector<32x128xf32>, vector<2x128xf32> -> vector<2x128xf32>
    %119 = arith.addf %117, %118 : vector<2x128xf32>
    %120 = arith.negf %119 : vector<2x128xf32>
    %121 = math.exp %120 : vector<2x128xf32>
    %cst_38 = arith.constant 1.000000e+00 : f32
    %122 = vector.broadcast %cst_38 : f32 to vector<2x128xf32>
    %123 = arith.addf %122, %121 : vector<2x128xf32>
    %124 = arith.divf %122, %123 : vector<2x128xf32>
    %125 = math.tanh %119 : vector<2x128xf32>
    %126 = vector.extract_strided_slice %124 {offsets = [0, 32], sizes = [2, 32], strides = [1, 1]} : vector<2x128xf32> to vector<2x32xf32>
    %127 = arith.mulf %126, %89 : vector<2x32xf32>
    %128 = vector.extract_strided_slice %124 {offsets = [0, 0], sizes = [2, 32], strides = [1, 1]} : vector<2x128xf32> to vector<2x32xf32>
    %129 = vector.extract_strided_slice %125 {offsets = [0, 64], sizes = [2, 32], strides = [1, 1]} : vector<2x128xf32> to vector<2x32xf32>
    %130 = arith.mulf %128, %129 : vector<2x32xf32>
    %131 = arith.addf %127, %130 : vector<2x32xf32>
    %132 = vector.extract_strided_slice %124 {offsets = [0, 96], sizes = [2, 32], strides = [1, 1]} : vector<2x128xf32> to vector<2x32xf32>
    %133 = math.tanh %131 : vector<2x32xf32>
    %134 = arith.mulf %132, %133 : vector<2x32xf32>
    %c0_39 = arith.constant 0 : index
    %c3 = arith.constant 3 : index
    %c0_40 = arith.constant 0 : index
    %135 = vector.load %arg2[%c0_39, %c3, %c0_40] : memref<2x8x128xf32, #tpu.memory_space<vmem>>, vector<2x1x128xf32>
    %136 = vector.shape_cast %135 : vector<2x1x128xf32> to vector<2x128xf32>
    %c0_41 = arith.constant 0 : index
    %c3_42 = arith.constant 3 : index
    %c0_43 = arith.constant 0 : index
    %137 = vector.load %arg3[%c0_41, %c3_42, %c0_43] : memref<2x8x128xf32, #tpu.memory_space<vmem>>, vector<2x1x128xf32>
    %138 = vector.shape_cast %137 : vector<2x1x128xf32> to vector<2x128xf32>
    %139 = tpu.concatenate %115, %134 in 1 : vector<2x32xf32>, vector<2x32xf32> -> vector<2x64xf32>
    %cst_44 = arith.constant dense<0.000000e+00> : vector<2x256xf32>
    %140 = tpu.matmul %139, %7, %cst_44 {dimension_numbers = #tpu.dot_dimension_numbers<[1], [0], [0], [1], [0, 0, 1, 1], [], []>} : vector<2x64xf32>, vector<64x256xf32>, vector<2x256xf32> -> vector<2x256xf32>
    %141 = vector.extract_strided_slice %140 {offsets = [0, 0], sizes = [2, 128], strides = [1, 1]} : vector<2x256xf32> to vector<2x128xf32>
    %142 = arith.addf %136, %141 : vector<2x128xf32>
    %143 = arith.negf %142 : vector<2x128xf32>
    %144 = math.exp %143 : vector<2x128xf32>
    %cst_45 = arith.constant 1.000000e+00 : f32
    %145 = vector.broadcast %cst_45 : f32 to vector<2x128xf32>
    %146 = arith.addf %145, %144 : vector<2x128xf32>
    %147 = arith.divf %145, %146 : vector<2x128xf32>
    %148 = math.tanh %142 : vector<2x128xf32>
    %149 = vector.extract_strided_slice %147 {offsets = [0, 32], sizes = [2, 32], strides = [1, 1]} : vector<2x128xf32> to vector<2x32xf32>
    %150 = arith.mulf %149, %112 : vector<2x32xf32>
    %151 = vector.extract_strided_slice %147 {offsets = [0, 0], sizes = [2, 32], strides = [1, 1]} : vector<2x128xf32> to vector<2x32xf32>
    %152 = vector.extract_strided_slice %148 {offsets = [0, 64], sizes = [2, 32], strides = [1, 1]} : vector<2x128xf32> to vector<2x32xf32>
    %153 = arith.mulf %151, %152 : vector<2x32xf32>
    %154 = arith.addf %150, %153 : vector<2x32xf32>
    %155 = vector.extract_strided_slice %147 {offsets = [0, 96], sizes = [2, 32], strides = [1, 1]} : vector<2x128xf32> to vector<2x32xf32>
    %156 = math.tanh %154 : vector<2x32xf32>
    %157 = arith.mulf %155, %156 : vector<2x32xf32>
    %158 = vector.extract_strided_slice %140 {offsets = [0, 128], sizes = [2, 128], strides = [1, 1]} : vector<2x256xf32> to vector<2x128xf32>
    %159 = arith.addf %138, %158 : vector<2x128xf32>
    %cst_46 = arith.constant dense<0.000000e+00> : vector<2x128xf32>
    %160 = tpu.matmul %157, %8, %cst_46 {dimension_numbers = #tpu.dot_dimension_numbers<[1], [0], [0], [1], [0, 0, 1, 1], [], []>} : vector<2x32xf32>, vector<32x128xf32>, vector<2x128xf32> -> vector<2x128xf32>
    %161 = arith.addf %159, %160 : vector<2x128xf32>
    %162 = arith.negf %161 : vector<2x128xf32>
    %163 = math.exp %162 : vector<2x128xf32>
    %cst_47 = arith.constant 1.000000e+00 : f32
    %164 = vector.broadcast %cst_47 : f32 to vector<2x128xf32>
    %165 = arith.addf %164, %163 : vector<2x128xf32>
    %166 = arith.divf %164, %165 : vector<2x128xf32>
    %167 = math.tanh %161 : vector<2x128xf32>
    %168 = vector.extract_strided_slice %166 {offsets = [0, 32], sizes = [2, 32], strides = [1, 1]} : vector<2x128xf32> to vector<2x32xf32>
    %169 = arith.mulf %168, %131 : vector<2x32xf32>
    %170 = vector.extract_strided_slice %166 {offsets = [0, 0], sizes = [2, 32], strides = [1, 1]} : vector<2x128xf32> to vector<2x32xf32>
    %171 = vector.extract_strided_slice %167 {offsets = [0, 64], sizes = [2, 32], strides = [1, 1]} : vector<2x128xf32> to vector<2x32xf32>
    %172 = arith.mulf %170, %171 : vector<2x32xf32>
    %173 = arith.addf %169, %172 : vector<2x32xf32>
    %174 = vector.extract_strided_slice %166 {offsets = [0, 96], sizes = [2, 32], strides = [1, 1]} : vector<2x128xf32> to vector<2x32xf32>
    %175 = math.tanh %173 : vector<2x32xf32>
    %176 = arith.mulf %174, %175 : vector<2x32xf32>
    %c0_48 = arith.constant 0 : index
    %c4 = arith.constant 4 : index
    %c0_49 = arith.constant 0 : index
    %177 = vector.load %arg2[%c0_48, %c4, %c0_49] : memref<2x8x128xf32, #tpu.memory_space<vmem>>, vector<2x1x128xf32>
    %178 = vector.shape_cast %177 : vector<2x1x128xf32> to vector<2x128xf32>
    %c0_50 = arith.constant 0 : index
    %c4_51 = arith.constant 4 : index
    %c0_52 = arith.constant 0 : index
    %179 = vector.load %arg3[%c0_50, %c4_51, %c0_52] : memref<2x8x128xf32, #tpu.memory_space<vmem>>, vector<2x1x128xf32>
    %180 = vector.shape_cast %179 : vector<2x1x128xf32> to vector<2x128xf32>
    %181 = tpu.concatenate %157, %176 in 1 : vector<2x32xf32>, vector<2x32xf32> -> vector<2x64xf32>
    %cst_53 = arith.constant dense<0.000000e+00> : vector<2x256xf32>
    %182 = tpu.matmul %181, %7, %cst_53 {dimension_numbers = #tpu.dot_dimension_numbers<[1], [0], [0], [1], [0, 0, 1, 1], [], []>} : vector<2x64xf32>, vector<64x256xf32>, vector<2x256xf32> -> vector<2x256xf32>
    %183 = vector.extract_strided_slice %182 {offsets = [0, 0], sizes = [2, 128], strides = [1, 1]} : vector<2x256xf32> to vector<2x128xf32>
    %184 = arith.addf %178, %183 : vector<2x128xf32>
    %185 = arith.negf %184 : vector<2x128xf32>
    %186 = math.exp %185 : vector<2x128xf32>
    %cst_54 = arith.constant 1.000000e+00 : f32
    %187 = vector.broadcast %cst_54 : f32 to vector<2x128xf32>
    %188 = arith.addf %187, %186 : vector<2x128xf32>
    %189 = arith.divf %187, %188 : vector<2x128xf32>
    %190 = math.tanh %184 : vector<2x128xf32>
    %191 = vector.extract_strided_slice %189 {offsets = [0, 32], sizes = [2, 32], strides = [1, 1]} : vector<2x128xf32> to vector<2x32xf32>
    %192 = arith.mulf %191, %154 : vector<2x32xf32>
    %193 = vector.extract_strided_slice %189 {offsets = [0, 0], sizes = [2, 32], strides = [1, 1]} : vector<2x128xf32> to vector<2x32xf32>
    %194 = vector.extract_strided_slice %190 {offsets = [0, 64], sizes = [2, 32], strides = [1, 1]} : vector<2x128xf32> to vector<2x32xf32>
    %195 = arith.mulf %193, %194 : vector<2x32xf32>
    %196 = arith.addf %192, %195 : vector<2x32xf32>
    %197 = vector.extract_strided_slice %189 {offsets = [0, 96], sizes = [2, 32], strides = [1, 1]} : vector<2x128xf32> to vector<2x32xf32>
    %198 = math.tanh %196 : vector<2x32xf32>
    %199 = arith.mulf %197, %198 : vector<2x32xf32>
    %200 = vector.extract_strided_slice %182 {offsets = [0, 128], sizes = [2, 128], strides = [1, 1]} : vector<2x256xf32> to vector<2x128xf32>
    %201 = arith.addf %180, %200 : vector<2x128xf32>
    %cst_55 = arith.constant dense<0.000000e+00> : vector<2x128xf32>
    %202 = tpu.matmul %199, %8, %cst_55 {dimension_numbers = #tpu.dot_dimension_numbers<[1], [0], [0], [1], [0, 0, 1, 1], [], []>} : vector<2x32xf32>, vector<32x128xf32>, vector<2x128xf32> -> vector<2x128xf32>
    %203 = arith.addf %201, %202 : vector<2x128xf32>
    %204 = arith.negf %203 : vector<2x128xf32>
    %205 = math.exp %204 : vector<2x128xf32>
    %cst_56 = arith.constant 1.000000e+00 : f32
    %206 = vector.broadcast %cst_56 : f32 to vector<2x128xf32>
    %207 = arith.addf %206, %205 : vector<2x128xf32>
    %208 = arith.divf %206, %207 : vector<2x128xf32>
    %209 = math.tanh %203 : vector<2x128xf32>
    %210 = vector.extract_strided_slice %208 {offsets = [0, 32], sizes = [2, 32], strides = [1, 1]} : vector<2x128xf32> to vector<2x32xf32>
    %211 = arith.mulf %210, %173 : vector<2x32xf32>
    %212 = vector.extract_strided_slice %208 {offsets = [0, 0], sizes = [2, 32], strides = [1, 1]} : vector<2x128xf32> to vector<2x32xf32>
    %213 = vector.extract_strided_slice %209 {offsets = [0, 64], sizes = [2, 32], strides = [1, 1]} : vector<2x128xf32> to vector<2x32xf32>
    %214 = arith.mulf %212, %213 : vector<2x32xf32>
    %215 = arith.addf %211, %214 : vector<2x32xf32>
    %216 = vector.extract_strided_slice %208 {offsets = [0, 96], sizes = [2, 32], strides = [1, 1]} : vector<2x128xf32> to vector<2x32xf32>
    %217 = math.tanh %215 : vector<2x32xf32>
    %218 = arith.mulf %216, %217 : vector<2x32xf32>
    %c0_57 = arith.constant 0 : index
    %c5 = arith.constant 5 : index
    %c0_58 = arith.constant 0 : index
    %219 = vector.load %arg2[%c0_57, %c5, %c0_58] : memref<2x8x128xf32, #tpu.memory_space<vmem>>, vector<2x1x128xf32>
    %220 = vector.shape_cast %219 : vector<2x1x128xf32> to vector<2x128xf32>
    %c0_59 = arith.constant 0 : index
    %c5_60 = arith.constant 5 : index
    %c0_61 = arith.constant 0 : index
    %221 = vector.load %arg3[%c0_59, %c5_60, %c0_61] : memref<2x8x128xf32, #tpu.memory_space<vmem>>, vector<2x1x128xf32>
    %222 = vector.shape_cast %221 : vector<2x1x128xf32> to vector<2x128xf32>
    %223 = tpu.concatenate %199, %218 in 1 : vector<2x32xf32>, vector<2x32xf32> -> vector<2x64xf32>
    %cst_62 = arith.constant dense<0.000000e+00> : vector<2x256xf32>
    %224 = tpu.matmul %223, %7, %cst_62 {dimension_numbers = #tpu.dot_dimension_numbers<[1], [0], [0], [1], [0, 0, 1, 1], [], []>} : vector<2x64xf32>, vector<64x256xf32>, vector<2x256xf32> -> vector<2x256xf32>
    %225 = vector.extract_strided_slice %224 {offsets = [0, 0], sizes = [2, 128], strides = [1, 1]} : vector<2x256xf32> to vector<2x128xf32>
    %226 = arith.addf %220, %225 : vector<2x128xf32>
    %227 = arith.negf %226 : vector<2x128xf32>
    %228 = math.exp %227 : vector<2x128xf32>
    %cst_63 = arith.constant 1.000000e+00 : f32
    %229 = vector.broadcast %cst_63 : f32 to vector<2x128xf32>
    %230 = arith.addf %229, %228 : vector<2x128xf32>
    %231 = arith.divf %229, %230 : vector<2x128xf32>
    %232 = math.tanh %226 : vector<2x128xf32>
    %233 = vector.extract_strided_slice %231 {offsets = [0, 32], sizes = [2, 32], strides = [1, 1]} : vector<2x128xf32> to vector<2x32xf32>
    %234 = arith.mulf %233, %196 : vector<2x32xf32>
    %235 = vector.extract_strided_slice %231 {offsets = [0, 0], sizes = [2, 32], strides = [1, 1]} : vector<2x128xf32> to vector<2x32xf32>
    %236 = vector.extract_strided_slice %232 {offsets = [0, 64], sizes = [2, 32], strides = [1, 1]} : vector<2x128xf32> to vector<2x32xf32>
    %237 = arith.mulf %235, %236 : vector<2x32xf32>
    %238 = arith.addf %234, %237 : vector<2x32xf32>
    %239 = vector.extract_strided_slice %231 {offsets = [0, 96], sizes = [2, 32], strides = [1, 1]} : vector<2x128xf32> to vector<2x32xf32>
    %240 = math.tanh %238 : vector<2x32xf32>
    %241 = arith.mulf %239, %240 : vector<2x32xf32>
    %242 = vector.extract_strided_slice %224 {offsets = [0, 128], sizes = [2, 128], strides = [1, 1]} : vector<2x256xf32> to vector<2x128xf32>
    %243 = arith.addf %222, %242 : vector<2x128xf32>
    %cst_64 = arith.constant dense<0.000000e+00> : vector<2x128xf32>
    %244 = tpu.matmul %241, %8, %cst_64 {dimension_numbers = #tpu.dot_dimension_numbers<[1], [0], [0], [1], [0, 0, 1, 1], [], []>} : vector<2x32xf32>, vector<32x128xf32>, vector<2x128xf32> -> vector<2x128xf32>
    %245 = arith.addf %243, %244 : vector<2x128xf32>
    %246 = arith.negf %245 : vector<2x128xf32>
    %247 = math.exp %246 : vector<2x128xf32>
    %cst_65 = arith.constant 1.000000e+00 : f32
    %248 = vector.broadcast %cst_65 : f32 to vector<2x128xf32>
    %249 = arith.addf %248, %247 : vector<2x128xf32>
    %250 = arith.divf %248, %249 : vector<2x128xf32>
    %251 = math.tanh %245 : vector<2x128xf32>
    %252 = vector.extract_strided_slice %250 {offsets = [0, 32], sizes = [2, 32], strides = [1, 1]} : vector<2x128xf32> to vector<2x32xf32>
    %253 = arith.mulf %252, %215 : vector<2x32xf32>
    %254 = vector.extract_strided_slice %250 {offsets = [0, 0], sizes = [2, 32], strides = [1, 1]} : vector<2x128xf32> to vector<2x32xf32>
    %255 = vector.extract_strided_slice %251 {offsets = [0, 64], sizes = [2, 32], strides = [1, 1]} : vector<2x128xf32> to vector<2x32xf32>
    %256 = arith.mulf %254, %255 : vector<2x32xf32>
    %257 = arith.addf %253, %256 : vector<2x32xf32>
    %258 = vector.extract_strided_slice %250 {offsets = [0, 96], sizes = [2, 32], strides = [1, 1]} : vector<2x128xf32> to vector<2x32xf32>
    %259 = math.tanh %257 : vector<2x32xf32>
    %260 = arith.mulf %258, %259 : vector<2x32xf32>
    %c0_66 = arith.constant 0 : index
    %c6 = arith.constant 6 : index
    %c0_67 = arith.constant 0 : index
    %261 = vector.load %arg2[%c0_66, %c6, %c0_67] : memref<2x8x128xf32, #tpu.memory_space<vmem>>, vector<2x1x128xf32>
    %262 = vector.shape_cast %261 : vector<2x1x128xf32> to vector<2x128xf32>
    %c0_68 = arith.constant 0 : index
    %c6_69 = arith.constant 6 : index
    %c0_70 = arith.constant 0 : index
    %263 = vector.load %arg3[%c0_68, %c6_69, %c0_70] : memref<2x8x128xf32, #tpu.memory_space<vmem>>, vector<2x1x128xf32>
    %264 = vector.shape_cast %263 : vector<2x1x128xf32> to vector<2x128xf32>
    %265 = tpu.concatenate %241, %260 in 1 : vector<2x32xf32>, vector<2x32xf32> -> vector<2x64xf32>
    %cst_71 = arith.constant dense<0.000000e+00> : vector<2x256xf32>
    %266 = tpu.matmul %265, %7, %cst_71 {dimension_numbers = #tpu.dot_dimension_numbers<[1], [0], [0], [1], [0, 0, 1, 1], [], []>} : vector<2x64xf32>, vector<64x256xf32>, vector<2x256xf32> -> vector<2x256xf32>
    %267 = vector.extract_strided_slice %266 {offsets = [0, 0], sizes = [2, 128], strides = [1, 1]} : vector<2x256xf32> to vector<2x128xf32>
    %268 = arith.addf %262, %267 : vector<2x128xf32>
    %269 = arith.negf %268 : vector<2x128xf32>
    %270 = math.exp %269 : vector<2x128xf32>
    %cst_72 = arith.constant 1.000000e+00 : f32
    %271 = vector.broadcast %cst_72 : f32 to vector<2x128xf32>
    %272 = arith.addf %271, %270 : vector<2x128xf32>
    %273 = arith.divf %271, %272 : vector<2x128xf32>
    %274 = math.tanh %268 : vector<2x128xf32>
    %275 = vector.extract_strided_slice %273 {offsets = [0, 32], sizes = [2, 32], strides = [1, 1]} : vector<2x128xf32> to vector<2x32xf32>
    %276 = arith.mulf %275, %238 : vector<2x32xf32>
    %277 = vector.extract_strided_slice %273 {offsets = [0, 0], sizes = [2, 32], strides = [1, 1]} : vector<2x128xf32> to vector<2x32xf32>
    %278 = vector.extract_strided_slice %274 {offsets = [0, 64], sizes = [2, 32], strides = [1, 1]} : vector<2x128xf32> to vector<2x32xf32>
    %279 = arith.mulf %277, %278 : vector<2x32xf32>
    %280 = arith.addf %276, %279 : vector<2x32xf32>
    %281 = vector.extract_strided_slice %273 {offsets = [0, 96], sizes = [2, 32], strides = [1, 1]} : vector<2x128xf32> to vector<2x32xf32>
    %282 = math.tanh %280 : vector<2x32xf32>
    %283 = arith.mulf %281, %282 : vector<2x32xf32>
    %284 = vector.extract_strided_slice %266 {offsets = [0, 128], sizes = [2, 128], strides = [1, 1]} : vector<2x256xf32> to vector<2x128xf32>
    %285 = arith.addf %264, %284 : vector<2x128xf32>
    %cst_73 = arith.constant dense<0.000000e+00> : vector<2x128xf32>
    %286 = tpu.matmul %283, %8, %cst_73 {dimension_numbers = #tpu.dot_dimension_numbers<[1], [0], [0], [1], [0, 0, 1, 1], [], []>} : vector<2x32xf32>, vector<32x128xf32>, vector<2x128xf32> -> vector<2x128xf32>
    %287 = arith.addf %285, %286 : vector<2x128xf32>
    %288 = arith.negf %287 : vector<2x128xf32>
    %289 = math.exp %288 : vector<2x128xf32>
    %cst_74 = arith.constant 1.000000e+00 : f32
    %290 = vector.broadcast %cst_74 : f32 to vector<2x128xf32>
    %291 = arith.addf %290, %289 : vector<2x128xf32>
    %292 = arith.divf %290, %291 : vector<2x128xf32>
    %293 = math.tanh %287 : vector<2x128xf32>
    %294 = vector.extract_strided_slice %292 {offsets = [0, 32], sizes = [2, 32], strides = [1, 1]} : vector<2x128xf32> to vector<2x32xf32>
    %295 = arith.mulf %294, %257 : vector<2x32xf32>
    %296 = vector.extract_strided_slice %292 {offsets = [0, 0], sizes = [2, 32], strides = [1, 1]} : vector<2x128xf32> to vector<2x32xf32>
    %297 = vector.extract_strided_slice %293 {offsets = [0, 64], sizes = [2, 32], strides = [1, 1]} : vector<2x128xf32> to vector<2x32xf32>
    %298 = arith.mulf %296, %297 : vector<2x32xf32>
    %299 = arith.addf %295, %298 : vector<2x32xf32>
    %300 = vector.extract_strided_slice %292 {offsets = [0, 96], sizes = [2, 32], strides = [1, 1]} : vector<2x128xf32> to vector<2x32xf32>
    %301 = math.tanh %299 : vector<2x32xf32>
    %302 = arith.mulf %300, %301 : vector<2x32xf32>
    %c0_75 = arith.constant 0 : index
    %c7 = arith.constant 7 : index
    %c0_76 = arith.constant 0 : index
    %303 = vector.load %arg2[%c0_75, %c7, %c0_76] : memref<2x8x128xf32, #tpu.memory_space<vmem>>, vector<2x1x128xf32>
    %304 = vector.shape_cast %303 : vector<2x1x128xf32> to vector<2x128xf32>
    %c0_77 = arith.constant 0 : index
    %c7_78 = arith.constant 7 : index
    %c0_79 = arith.constant 0 : index
    %305 = vector.load %arg3[%c0_77, %c7_78, %c0_79] : memref<2x8x128xf32, #tpu.memory_space<vmem>>, vector<2x1x128xf32>
    %306 = vector.shape_cast %305 : vector<2x1x128xf32> to vector<2x128xf32>
    %307 = tpu.concatenate %283, %302 in 1 : vector<2x32xf32>, vector<2x32xf32> -> vector<2x64xf32>
    %cst_80 = arith.constant dense<0.000000e+00> : vector<2x256xf32>
    %308 = tpu.matmul %307, %7, %cst_80 {dimension_numbers = #tpu.dot_dimension_numbers<[1], [0], [0], [1], [0, 0, 1, 1], [], []>} : vector<2x64xf32>, vector<64x256xf32>, vector<2x256xf32> -> vector<2x256xf32>
    %309 = vector.extract_strided_slice %308 {offsets = [0, 0], sizes = [2, 128], strides = [1, 1]} : vector<2x256xf32> to vector<2x128xf32>
    %310 = arith.addf %304, %309 : vector<2x128xf32>
    %311 = arith.negf %310 : vector<2x128xf32>
    %312 = math.exp %311 : vector<2x128xf32>
    %cst_81 = arith.constant 1.000000e+00 : f32
    %313 = vector.broadcast %cst_81 : f32 to vector<2x128xf32>
    %314 = arith.addf %313, %312 : vector<2x128xf32>
    %315 = arith.divf %313, %314 : vector<2x128xf32>
    %316 = math.tanh %310 : vector<2x128xf32>
    %317 = vector.extract_strided_slice %315 {offsets = [0, 32], sizes = [2, 32], strides = [1, 1]} : vector<2x128xf32> to vector<2x32xf32>
    %318 = arith.mulf %317, %280 : vector<2x32xf32>
    %319 = vector.extract_strided_slice %315 {offsets = [0, 0], sizes = [2, 32], strides = [1, 1]} : vector<2x128xf32> to vector<2x32xf32>
    %320 = vector.extract_strided_slice %316 {offsets = [0, 64], sizes = [2, 32], strides = [1, 1]} : vector<2x128xf32> to vector<2x32xf32>
    %321 = arith.mulf %319, %320 : vector<2x32xf32>
    %322 = arith.addf %318, %321 : vector<2x32xf32>
    %323 = vector.extract_strided_slice %315 {offsets = [0, 96], sizes = [2, 32], strides = [1, 1]} : vector<2x128xf32> to vector<2x32xf32>
    %324 = math.tanh %322 : vector<2x32xf32>
    %325 = arith.mulf %323, %324 : vector<2x32xf32>
    %326 = vector.extract_strided_slice %308 {offsets = [0, 128], sizes = [2, 128], strides = [1, 1]} : vector<2x256xf32> to vector<2x128xf32>
    %327 = arith.addf %306, %326 : vector<2x128xf32>
    %cst_82 = arith.constant dense<0.000000e+00> : vector<2x128xf32>
    %328 = tpu.matmul %325, %8, %cst_82 {dimension_numbers = #tpu.dot_dimension_numbers<[1], [0], [0], [1], [0, 0, 1, 1], [], []>} : vector<2x32xf32>, vector<32x128xf32>, vector<2x128xf32> -> vector<2x128xf32>
    %329 = arith.addf %327, %328 : vector<2x128xf32>
    %330 = arith.negf %329 : vector<2x128xf32>
    %331 = math.exp %330 : vector<2x128xf32>
    %cst_83 = arith.constant 1.000000e+00 : f32
    %332 = vector.broadcast %cst_83 : f32 to vector<2x128xf32>
    %333 = arith.addf %332, %331 : vector<2x128xf32>
    %334 = arith.divf %332, %333 : vector<2x128xf32>
    %335 = math.tanh %329 : vector<2x128xf32>
    %336 = vector.extract_strided_slice %334 {offsets = [0, 32], sizes = [2, 32], strides = [1, 1]} : vector<2x128xf32> to vector<2x32xf32>
    %337 = arith.mulf %336, %299 : vector<2x32xf32>
    %338 = vector.extract_strided_slice %334 {offsets = [0, 0], sizes = [2, 32], strides = [1, 1]} : vector<2x128xf32> to vector<2x32xf32>
    %339 = vector.extract_strided_slice %335 {offsets = [0, 64], sizes = [2, 32], strides = [1, 1]} : vector<2x128xf32> to vector<2x32xf32>
    %340 = arith.mulf %338, %339 : vector<2x32xf32>
    %341 = arith.addf %337, %340 : vector<2x32xf32>
    %342 = vector.extract_strided_slice %334 {offsets = [0, 96], sizes = [2, 32], strides = [1, 1]} : vector<2x128xf32> to vector<2x32xf32>
    %343 = math.tanh %341 : vector<2x32xf32>
    %344 = arith.mulf %342, %343 : vector<2x32xf32>
    %c0_84 = arith.constant 0 : index
    %c0_85 = arith.constant 0 : index
    %345 = vector.load %arg14[%c0_84, %c0_85] : memref<2x32xf32, #tpu.memory_space<vmem>>, vector<2x32xf32>
    tpu.vector_store %arg14[%c0_84, %c0_85], %325 {strides = array<i32>} : memref<2x32xf32, #tpu.memory_space<vmem>>, vector<2x32xf32>,
    %c0_86 = arith.constant 0 : index
    %c0_87 = arith.constant 0 : index
    %346 = vector.load %arg15[%c0_86, %c0_87] : memref<2x32xf32, #tpu.memory_space<vmem>>, vector<2x32xf32>
    tpu.vector_store %arg15[%c0_86, %c0_87], %322 {strides = array<i32>} : memref<2x32xf32, #tpu.memory_space<vmem>>, vector<2x32xf32>,
    %c0_88 = arith.constant 0 : index
    %c0_89 = arith.constant 0 : index
    %347 = vector.load %arg16[%c0_88, %c0_89] : memref<2x32xf32, #tpu.memory_space<vmem>>, vector<2x32xf32>
    tpu.vector_store %arg16[%c0_88, %c0_89], %344 {strides = array<i32>} : memref<2x32xf32, #tpu.memory_space<vmem>>, vector<2x32xf32>,
    %c0_90 = arith.constant 0 : index
    %c0_91 = arith.constant 0 : index
    %348 = vector.load %arg17[%c0_90, %c0_91] : memref<2x32xf32, #tpu.memory_space<vmem>>, vector<2x32xf32>
    tpu.vector_store %arg17[%c0_90, %c0_91], %341 {strides = array<i32>} : memref<2x32xf32, #tpu.memory_space<vmem>>, vector<2x32xf32>,
    %c0_i32_92 = arith.constant 0 : i32
    %349 = arith.cmpi eq, %arg1, %c0_i32_92 : i32
    %350 = arith.extui %349 : i1 to i32
    %c0_i32_93 = arith.constant 0 : i32
    %351 = arith.cmpi ne, %350, %c0_i32_93 : i32
    scf.if %351 {
      %c0_94 = arith.constant 0 : index
      %c0_95 = arith.constant 0 : index
      %352 = vector.load %arg7[%c0_94, %c0_95] : memref<32x16xf32, #tpu.memory_space<vmem>>, vector<32x16xf32>
      %cst_96 = arith.constant dense<0.000000e+00> : vector<2x16xf32>
      %353 = tpu.matmul %344, %352, %cst_96 {dimension_numbers = #tpu.dot_dimension_numbers<[1], [0], [0], [1], [0, 0, 1, 1], [], []>} : vector<2x32xf32>, vector<32x16xf32>, vector<2x16xf32> -> vector<2x16xf32>
      %c0_97 = arith.constant 0 : index
      %c0_98 = arith.constant 0 : index
      %354 = vector.load %arg8[%c0_97, %c0_98] : memref<32x16xf32, #tpu.memory_space<vmem>>, vector<32x16xf32>
      %cst_99 = arith.constant dense<0.000000e+00> : vector<2x16xf32>
      %355 = tpu.matmul %325, %354, %cst_99 {dimension_numbers = #tpu.dot_dimension_numbers<[1], [0], [0], [1], [0, 0, 1, 1], [], []>} : vector<2x32xf32>, vector<32x16xf32>, vector<2x16xf32> -> vector<2x16xf32>
      %356 = arith.addf %353, %355 : vector<2x16xf32>
      %c0_100 = arith.constant 0 : index
      %c0_101 = arith.constant 0 : index
      %357 = vector.load %arg6[%c0_100, %c0_101] : memref<2x4xf32, #tpu.memory_space<vmem>>, vector<2x4xf32>
      %c0_102 = arith.constant 0 : index
      %c0_103 = arith.constant 0 : index
      %358 = vector.load %arg9[%c0_102, %c0_103] : memref<4x16xf32, #tpu.memory_space<vmem>>, vector<4x16xf32>
      %cst_104 = arith.constant dense<0.000000e+00> : vector<2x16xf32>
      %359 = tpu.matmul %357, %358, %cst_104 {dimension_numbers = #tpu.dot_dimension_numbers<[1], [0], [0], [1], [0, 0, 1, 1], [], []>} : vector<2x4xf32>, vector<4x16xf32>, vector<2x16xf32> -> vector<2x16xf32>
      %360 = arith.addf %356, %359 : vector<2x16xf32>
      %c0_105 = arith.constant 0 : index
      %c0_106 = arith.constant 0 : index
      %361 = vector.load %arg10[%c0_105, %c0_106] : memref<1x16xf32, #tpu.memory_space<vmem>>, vector<1x16xf32>
      %362 = vector.broadcast %361 : vector<1x16xf32> to vector<2x16xf32>
      %363 = arith.addf %360, %362 : vector<2x16xf32>
      %cst_107 = arith.constant 0.000000e+00 : f32
      %364 = vector.broadcast %cst_107 : f32 to vector<2x16xf32>
      %365 = arith.maximumf %363, %364 : vector<2x16xf32>
      %c0_108 = arith.constant 0 : index
      %c0_109 = arith.constant 0 : index
      %366 = vector.load %arg11[%c0_108, %c0_109] : memref<16x1xf32, #tpu.memory_space<vmem>>, vector<16x1xf32>
      %cst_110 = arith.constant dense<0.000000e+00> : vector<2x1xf32>
      %367 = tpu.matmul %365, %366, %cst_110 {dimension_numbers = #tpu.dot_dimension_numbers<[1], [0], [0], [1], [0, 0, 1, 1], [], []>} : vector<2x16xf32>, vector<16x1xf32>, vector<2x1xf32> -> vector<2x1xf32>
      %c0_111 = arith.constant 0 : index
      %c0_112 = arith.constant 0 : index
      %368 = vector.load %arg12[%c0_111, %c0_112] : memref<1x1xf32, #tpu.memory_space<vmem>>, vector<1x1xf32>
      %369 = vector.broadcast %368 : vector<1x1xf32> to vector<2x1xf32>
      %370 = arith.addf %367, %369 : vector<2x1xf32>
      %c0_113 = arith.constant 0 : index
      %c0_114 = arith.constant 0 : index
      %371 = vector.load %arg13[%c0_113, %c0_114] : memref<2x1xf32, #tpu.memory_space<vmem>>, vector<2x1xf32>
      tpu.vector_store %arg13[%c0_113, %c0_114], %370 {strides = array<i32>} : memref<2x1xf32, #tpu.memory_space<vmem>>, vector<2x1xf32>,
    } else {
    }
    return
  }
  func.func @transform_0(%arg0: i32, %arg1: i32) -> (i32, i32, i32) {
    %c0_i32 = arith.constant 0 : i32
    %c0_i32_0 = arith.constant 0 : i32
    return %arg0, %arg1, %c0_i32 : i32, i32, i32
  }
  func.func @transform_1(%arg0: i32, %arg1: i32) -> (i32, i32, i32) {
    %c0_i32 = arith.constant 0 : i32
    %c0_i32_0 = arith.constant 0 : i32
    return %arg0, %arg1, %c0_i32 : i32, i32, i32
  }
  func.func @transform_2(%arg0: i32, %arg1: i32) -> (i32, i32) {
    %c0_i32 = arith.constant 0 : i32
    %c0_i32_0 = arith.constant 0 : i32
    %c0_i32_1 = arith.constant 0 : i32
    return %c0_i32, %c0_i32_0 : i32, i32
  }
  func.func @transform_3(%arg0: i32, %arg1: i32) -> (i32, i32) {
    %c0_i32 = arith.constant 0 : i32
    %c0_i32_0 = arith.constant 0 : i32
    %c0_i32_1 = arith.constant 0 : i32
    return %c0_i32, %c0_i32_0 : i32, i32
  }
  func.func @transform_4(%arg0: i32, %arg1: i32) -> (i32, i32) {
    %c0_i32 = arith.constant 0 : i32
    %c0_i32_0 = arith.constant 0 : i32
    return %arg0, %c0_i32 : i32, i32
  }
  func.func @transform_5(%arg0: i32, %arg1: i32) -> (i32, i32) {
    %c0_i32 = arith.constant 0 : i32
    %c0_i32_0 = arith.constant 0 : i32
    %c0_i32_1 = arith.constant 0 : i32
    return %c0_i32, %c0_i32_0 : i32, i32
  }
  func.func @transform_6(%arg0: i32, %arg1: i32) -> (i32, i32) {
    %c0_i32 = arith.constant 0 : i32
    %c0_i32_0 = arith.constant 0 : i32
    %c0_i32_1 = arith.constant 0 : i32
    return %c0_i32, %c0_i32_0 : i32, i32
  }
  func.func @transform_7(%arg0: i32, %arg1: i32) -> (i32, i32) {
    %c0_i32 = arith.constant 0 : i32
    %c0_i32_0 = arith.constant 0 : i32
    %c0_i32_1 = arith.constant 0 : i32
    return %c0_i32, %c0_i32_0 : i32, i32
  }
  func.func @transform_8(%arg0: i32, %arg1: i32) -> (i32, i32) {
    %c0_i32 = arith.constant 0 : i32
    %c0_i32_0 = arith.constant 0 : i32
    %c0_i32_1 = arith.constant 0 : i32
    return %c0_i32, %c0_i32_0 : i32, i32
  }
  func.func @transform_9(%arg0: i32, %arg1: i32) -> (i32, i32) {
    %c0_i32 = arith.constant 0 : i32
    %c0_i32_0 = arith.constant 0 : i32
    %c0_i32_1 = arith.constant 0 : i32
    return %c0_i32, %c0_i32_0 : i32, i32
  }
  func.func @transform_10(%arg0: i32, %arg1: i32) -> (i32, i32) {
    %c0_i32 = arith.constant 0 : i32
    %c0_i32_0 = arith.constant 0 : i32
    %c0_i32_1 = arith.constant 0 : i32
    return %c0_i32, %c0_i32_0 : i32, i32
  }
  func.func @transform_11(%arg0: i32, %arg1: i32) -> (i32, i32) {
    %c0_i32 = arith.constant 0 : i32
    %c0_i32_0 = arith.constant 0 : i32
    return %arg0, %c0_i32 : i32, i32
  }
}

</mosaic_0001>

<bundles_post_ra>
// kernel: learnnet29_forward.3
= control target key start
LH: loop header
LB: loop body
LE: loop exit
PB: predicated region body
PF: predicated region fallthrough
CT: control target
= control target key end

     0   :  { %vm65_vm0 = vcmask 392192   ;;  %s453_s1 = inlined_call_operand.vmem [shape: f32[304,128], index: 1, kind: input, shape index: {}]   ;;  %s454_s0 = inlined_call_operand.vmem [shape: f32[16,304], index: 0, kind: input, shape index: {}]   ;;  %s455_s2 = inlined_call_operand.vmem [shape: f32[1,128], index: 2, kind: input, shape index: {}]   ;;  %s456_s3 = inlined_call_operand.vmem [shape: f32[16,128], index: 3, kind: output, shape index: {}]  }
   0x1   :  { %v51_v0 = vld [vmem:[%s453_s1 + $0xf8] sm:$0xff]  ;;  %v50_v2 = vld [vmem:[%s453_s1 + $0xf0] sm:$0xff]  ;;  %v49_v4 = vld [vmem:[%s453_s1 + $0xe8] sm:$0xff] }
   0x2   :  { %v35_v1 = vld [vmem:[%s453_s1 + $0x78] sm:$0xff]  ;;  %231 = vmatprep.subr.mxu0 %v51_v0  ;;  %v34_v3 = vld [vmem:[%s453_s1 + $0x70] sm:$0xff]  ;;  %v33_v5 = vld [vmem:[%s453_s1 + $0x68] sm:$0xff] }
   0x3   :  { %232 = vmatpush3.msra.mxu0 %v35_v1  ;;  %v48_v6 = vld [vmem:[%s453_s1 + $0xe0] sm:$0xff]  ;;  %v47_v8 = vld [vmem:[%s453_s1 + $0xd8] sm:$0xff]  ;;  %v46_v10 = vld [vmem:[%s453_s1 + $0xd0] sm:$0xff] }
   0x4   :  { %233 = vmatprep.subr.mxu0 %v50_v2  ;;  %v32_v7 = vld [vmem:[%s453_s1 + $0x60] sm:$0xff]  ;;  %v31_v9 = vld [vmem:[%s453_s1 + $0x58] sm:$0xff]  ;;  %v57_v11 = vld [vmem:[%s453_s1 + $0x128] sm:$0xff] }
   0x5   :  { %234 = vmatpush3.msra.mxu0 %v34_v3  ;;  %v30_v12 = vld [vmem:[%s453_s1 + $0x50] sm:$0xff]  ;;  %277 = vmatprep.subr.mxu1 %v57_v11  ;;  %v56_v13 = vld [vmem:[%s453_s1 + $0x120] sm:$0xff]  ;;  %v45_v14 = vld [vmem:[%s453_s1 + $0xc8] sm:$0xff] }
   0x6   :  { %235 = vmatprep.subr.mxu0 %v49_v4  ;;  %278 = vmatpush3.msra.mxu1 %v57_v11  ;;  %v55_v15 = vld [vmem:[%s453_s1 + $0x118] sm:$0xff]  ;;  %v29_v16 = vld [vmem:[%s453_s1 + $0x48] sm:$0xff]  ;;  %v44_v17 = vld [vmem:[%s453_s1 + $0xc0] sm:$0xff] }
   0x7   :  { %236 = vmatpush3.msra.mxu0 %v33_v5  ;;  %279 = vmatprep.subr.mxu1 %v56_v13  ;;  %v54_v18 = vld [vmem:[%s453_s1 + $0x110] sm:$0xff]  ;;  %v28_v19 = vld [vmem:[%s453_s1 + $0x40] sm:$0xff]  ;;  %v15_v20 = vld [vmem:[%s454_s0 + $0x8] sm:$0xff] }
   0x8   :  { %237 = vmatprep.subr.mxu0 %v48_v6  ;;  %280 = vmatpush3.msra.mxu1 %v56_v13  ;;  %v43_v21 = vld [vmem:[%s453_s1 + $0xb8] sm:$0xff]  ;;  %v53_v23 = vld [vmem:[%s453_s1 + $0x108] sm:$0xff]  ;;  %v42_v24 = vld [vmem:[%s453_s1 + $0xb0] sm:$0xff] }
   0x9   :  { %238 = vmatpush3.msra.mxu0 %v32_v7  ;;  %281 = vmatprep.subr.mxu1 %v55_v15  ;;  %v27_v22 = vld [vmem:[%s453_s1 + $0x38] sm:$0xff]  ;;  %v26_v25 = vld [vmem:[%s453_s1 + $0x30] sm:$0xff]  ;;  %v52_v26 = vld [vmem:[%s453_s1 + $0x100] sm:$0xff] }
   0xa   :  { %239 = vmatprep.subr.mxu0 %v47_v8  ;;  %282 = vmatpush3.msra.mxu1 %v55_v15  ;;  %v41_v27 = vld [vmem:[%s453_s1 + $0xa8] sm:$0xff]  ;;  %v16_v29 = vld [vmem:[%s454_s0 + $0x10] sm:$0xff]  ;;  %v40_v30 = vld [vmem:[%s453_s1 + $0xa0] sm:$0xff] }
   0xb   :  { %240 = vmatpush3.msra.mxu0 %v31_v9  ;;  %283 = vmatprep.subr.mxu1 %v54_v18  ;;  %v25_v28 = vld [vmem:[%s453_s1 + $0x28] sm:$0xff]  ;;  %v24_v32 = vld [vmem:[%s453_s1 + $0x20] sm:$0xff]  ;;  %v39_v33 = vld [vmem:[%s453_s1 + $0x98] sm:$0xff] }
   0xc   :  { %241 = vmatprep.subr.mxu0 %v46_v10  ;;  %136 = vmatprep.mubr.f32.mxu0 %v15_v20  ;;  %v19_v31 = vld [vmem:[%s454_s0 + $0x28] sm:$0xff]  ;;  %v23_v34 = vld [vmem:[%s453_s1 + $0x18] sm:$0xff]  ;;  %v38_v35 = vld [vmem:[%s453_s1 + $0x90] sm:$0xff] }
   0xd   :  { %242 = vmatpush3.msra.mxu0 %v30_v12  ;;  %284 = vmatpush3.msra.mxu1 %v54_v18  ;;  %v22_v36 = vld [vmem:[%s453_s1 + $0x10] sm:$0xff]  ;;  %v37_v37 = vld [vmem:[%s453_s1 + $0x88] sm:$0xff]  ;;  %v36_v39 = vld [vmem:[%s453_s1 + $0x80] sm:$0xff] }
   0xe   :  { %243 = vmatprep.subr.mxu0 %v45_v14  ;;  %285 = vmatprep.subr.mxu1 %v53_v23  ;;  %v21_v38 = vld [vmem:[%s453_s1 + $0x8] sm:$0xff]  ;;  %v20_v40 = vld [vmem:[%s453_s1] sm:$0xff]  ;;  %v17_v43 = vld [vmem:[%s454_s0 + $0x18] sm:$0xff] }
   0xf   :  { %244 = vmatpush3.msra.mxu0 %v29_v16  ;;  %286 = vmatpush3.msra.mxu1 %v53_v23  ;;  %v14_v41 = vld [vmem:[%s454_s0] sm:$0xff] }
  0x10   :  { %245 = vmatprep.subr.mxu0 %v44_v17  ;;  %287 = vmatprep.subr.mxu1 %v52_v26  ;;  %v18_v42 = vld [vmem:[%s454_s0 + $0x20] sm:$0xff] }
  0x11   :  { %246 = vmatpush3.msra.mxu0 %v28_v19  ;;  %288 = vmatpush3.msra.mxu1 %v52_v26  ;;  %v228_v47 = vld [vmem:[%s455_s2] ss:$0 sm:$0xff] }
  0x12   :  { %247 = vmatprep.subr.mxu0 %v43_v21  ;;  %289 = vmatprep.mubr.msk.f32.mxu1 %vm65_vm0, %v16_v29 }
  0x13   :  { %248 = vmatpush3.msra.mxu0 %v27_v22  ;;  %290 = vmatmul.mubr.msk.f32.vlgmr.msra.gmra.mxu1 %vm65_vm0, %v19_v31 }
  0x14   :  { %249 = vmatprep.subr.mxu0 %v42_v24 }
  0x15   :  { %250 = vmatpush3.msra.mxu0 %v26_v25 }
  0x16   :  { %251 = vmatprep.subr.mxu0 %v41_v27 }
  0x17   :  { %252 = vmatpush3.msra.mxu0 %v25_v28 }
  0x18   :  { %253 = vmatprep.subr.mxu0 %v40_v30 }
  0x19   :  { %254 = vmatpush3.msra.mxu0 %v24_v32 }
  0x1a   :  { %255 = vmatprep.subr.mxu0 %v39_v33 }
  0x1b   :  { %256 = vmatpush3.msra.mxu0 %v23_v34 }
  0x1c   :  { %257 = vmatprep.subr.mxu0 %v38_v35 }
  0x1d   :  { %258 = vmatpush3.msra.mxu0 %v22_v36 }
  0x1e   :  { %259 = vmatprep.subr.mxu0 %v37_v37 }
  0x1f   :  { %260 = vmatpush3.msra.mxu0 %v21_v38 }
  0x20   :  { %261 = vmatprep.subr.mxu0 %v36_v39 }
  0x21   :  { %262 = vmatpush3.msra.mxu0 %v20_v40 }
  0x22   :  { %137 = vmatmul.mubr.f32.vlgmr.msra.gmra.mxu0 %v14_v41 }
  0x23   :  { %141 = vmatprep.mubr.f32.mxu0 %v18_v42 }
  0x26   :  { %142 = vmatmul.mubr.f32.gmra.mxu0 %v17_v43 }
  0xd3   :  { %v291_v45 = vpop.f32.mrf.mxu1 }
  0xd5   :  { %v213_v50 = vpop.f32.mrf.mxu1 }
  0xe2   :  { %v263_v44 = vpop.f32.mrf.mxu0 }
  0xe4   :  { %v264_v46 = vpop.f32.mrf.mxu0 }
  0xe5   :  { %v265_v48 = vadd.f32 %v264_v46, %v263_v44 }
  0xe6   :  { %v266_v49 = vpop.f32.mrf.mxu0 }
  0xe7   :  { %v139_v51 = vadd.f32 %v265_v48, %v228_v47 }
  0xe8   :  { %v267_v52 = vpop.f32.mrf.mxu0 }
  0xe9   :  { %v268_v53 = vadd.f32 %v267_v52, %v266_v49  ;;  %v214_v54 = vadd.f32 %v213_v50, %v139_v51 }
  0xeb   :  { %v144_v55 = vadd.f32 %v268_v53, %v228_v47  ;;  %222 = vst [vmem:[%s456_s3] sm:$0xff] %v214_v54 }
  0xed   :  { %v219_v56 = vadd.f32 %v291_v45, %v144_v55 }
  0xef   :  { %223 = vst [vmem:[%s456_s3 + $0x8] sm:$0xff] %v219_v56 }

// kernel: learnnet29_forward.4
= control target key start
LH: loop header
LB: loop body
LE: loop exit
PB: predicated region body
PF: predicated region fallthrough
CT: control target
= control target key end

     0   :  { %vm37_vm0 = vcmask 1043456   ;;  %vm30_vm1 = vcmask 424960   ;;  %s210_s1 = inlined_call_operand.vmem [shape: f32[52,128], index: 1, kind: input, shape index: {}]   ;;  %s211_s0 = inlined_call_operand.vmem [shape: f32[16,52], index: 0, kind: input, shape index: {}]   ;;  %s212_s2 = inlined_call_operand.vmem [shape: f32[1,128], index: 2, kind: input, shape index: {}]   ;;  %s213_s3 = inlined_call_operand.vmem [shape: f32[16,128], index: 3, kind: output, shape index: {}]  }
   0x1   :  { %v22_v0 = vld [vmem:[%s210_s1 + $0x30] sm:$0xf]  ;;  %v21_v1 = vld [vmem:[%s210_s1 + $0x28] sm:$0xff]  ;;  %v20_v2 = vld [vmem:[%s210_s1 + $0x20] sm:$0xff] }
   0x2   :  { %135 = vmatprep.subr.msk.mxu0 %vm37_vm0, %v22_v0  ;;  %v14_v3 = vld [vmem:[%s211_s0] sm:$0xff]  ;;  %v19_v4 = vld [vmem:[%s210_s1 + $0x18] sm:$0xff]  ;;  %v18_v5 = vld [vmem:[%s210_s1 + $0x10] sm:$0xff] }
   0x3   :  { %136 = vmatpush3.msk.msra.mxu0 %vm37_vm0, %v22_v0  ;;  %149 = vmatprep.mubr.msk.f32.mxu0 %vm30_vm1, %v14_v3  ;;  %v17_v6 = vld [vmem:[%s210_s1 + $0x8] sm:$0xff]  ;;  %v16_v7 = vld [vmem:[%s210_s1] sm:$0xff] }
   0x4   :  { %137 = vmatprep.subr.mxu0 %v21_v1  ;;  %v15_v8 = vld [vmem:[%s211_s0 + $0x8] sm:$0xff]  ;;  %v122_v9 = vld [vmem:[%s212_s2] ss:$0 sm:$0xff] }
   0x5   :  { %138 = vmatpush3.msra.mxu0 %v21_v1 }
   0x6   :  { %139 = vmatprep.subr.mxu0 %v20_v2 }
   0x7   :  { %140 = vmatpush3.msra.mxu0 %v20_v2 }
   0x8   :  { %141 = vmatprep.subr.mxu0 %v19_v4 }
   0x9   :  { %142 = vmatpush3.msra.mxu0 %v19_v4 }
   0xa   :  { %143 = vmatprep.subr.mxu0 %v18_v5 }
   0xb   :  { %144 = vmatpush3.msra.mxu0 %v18_v5 }
   0xc   :  { %145 = vmatprep.subr.mxu0 %v17_v6 }
   0xd   :  { %146 = vmatpush3.msra.mxu0 %v17_v6 }
   0xe   :  { %147 = vmatprep.subr.mxu0 %v16_v7 }
   0xf   :  { %148 = vmatpush3.msra.mxu0 %v16_v7 }
  0x10   :  { %150 = vmatmul.mubr.msk.f32.vlgmr.msra.gmra.mxu0 %vm30_vm1, %v15_v8 }
  0xd0   :  { %v151_v10 = vpop.f32.mrf.mxu0 }
  0xd1   :  { %v113_v11 = vadd.f32 %v151_v10, %v122_v9 }
  0xd2   :  { %v107_v12 = vpop.f32.mrf.mxu0 }
  0xd3   :  { %117 = vst [vmem:[%s213_s3 + $0x8] sm:$0xff] %v113_v11  ;;  %v108_v13 = vadd.f32 %v122_v9, %v107_v12 }
  0xd5   :  { %116 = vst [vmem:[%s213_s3] sm:$0xff] %v108_v13 }

// kernel: learnnet29_forward.5
= control target key start
LH: loop header
LB: loop body
LE: loop exit
PB: predicated region body
PF: predicated region fallthrough
CT: control target
= control target key end

     0   :  { %vm44_vm0 = vcmask 254976   ;;  %v3192_v0 = vmov 0.0   ;;  %s3193_s18 = smov 32   ;;  %vm81_vm1 = vcmask 261120   ;;  %vm83_vm2 = vcmask 523264   ;;  %s3194_s16 = smov 64   ;;  %s4152_s2 = inlined_call_operand.vmem [shape: f32[64,256], index: 2, kind: input, shape index: {}]   ;;  %s4153_s0 = inlined_call_operand.vmem [shape: f32[2,8,128], index: 0, kind: input, shape index: {}]   ;;  %s4154_s3 = inlined_call_operand.vmem [shape: f32[32,128], index: 3, kind: input, shape index: {}]   ;;  %s4155_s1 = inlined_call_operand.vmem [shape: f32[2,8,128], index: 1, kind: input, shape index: {}]   ;;  %s4156_s6 = inlined_call_operand.vmem [shape: f32[32,16], index: 6, kind: input, shape index: {}]   ;;  %s4157_s5 = inlined_call_operand.vmem [shape: f32[32,16], index: 5, kind: input, shape index: {}]   ;;  %s4158_s7 = inlined_call_operand.vmem [shape: f32[4,16], index: 7, kind: input, shape index: {}]   ;;  %s4159_s4 = inlined_call_operand.vmem [shape: f32[2,4], index: 4, kind: input, shape index: {}]   ;;  %s4160_s9 = inlined_call_operand.vmem [shape: f32[16,1], index: 9, kind: input, shape index: {}]   ;;  %s4161_s10 = inlined_call_operand.<no memory space> [shape: f32[1,1], index: 10, kind: input, shape index: {}]   ;;  %s4162_s8 = inlined_call_operand.vmem [shape: f32[1,16], index: 8, kind: input, shape index: {}]   ;;  %s4163_s11 = inlined_call_operand.vmem [shape: f32[2,1], index: 11, kind: output, shape index: {}]  }
   0x1   :  { %47 = vst.msk [vmem:[#allocation4] sm:$0x3] %vm44_vm0, %v3192_v0  ;;  %45 = vst.msk [vmem:[#allocation2] sm:$0x3] %vm44_vm0, %v3192_v0  ;;  %v3268_v1 = vld [vmem:[%s4152_s2 + $0x78] sm:$0xff]  ;;  %v3273_v2 = vld [vmem:[%s4152_s2 + $0x70] sm:$0xff]  ;;  %151 = vmatprep.mubr.f32.mxu0 %v3192_v0  ;;  %2789 = vmatprep.subr.mxu1 %v3192_v0 }
   0x2   :  { %46 = vst.msk [vmem:[#allocation3] sm:$0x3] %vm44_vm0, %v3192_v0  ;;  %48 = vst.msk [vmem:[#allocation5] sm:$0x3] %vm44_vm0, %v3192_v0  ;;  %v3278_v3 = vld [vmem:[%s4152_s2 + $0x68] sm:$0xff]  ;;  %103 = vmatprep.subr.mxu0 %v3268_v1  ;;  %v3286_v4 = vld [vmem:[%s4152_s2 + $0x60] sm:$0xff] }
   0x3   :  { %104 = vmatpush1.msra.mxu0 %v3273_v2  ;;  %v3292_v5 = vld [vmem:[%s4152_s2 + $0x58] sm:$0xff]  ;;  %v3298_v6 = vld [vmem:[%s4152_s2 + $0x50] sm:$0xff]  ;;  %v3304_v7 = vld [vmem:[%s4152_s2 + $0x48] sm:$0xff]  ;;  %vm3195_vm3 = vmmov 0   ;;  %vm229_vm4 = vcmask 1041409   ;;  %vm2506_vm5 = vcmask 1043456  }
   0x4   :  { %105 = vmatprep.subr.mxu0 %v3278_v3  ;;  %v3310_v8 = vld [vmem:[%s4152_s2 + $0x40] sm:$0xff]  ;;  %v3316_v9 = vld [vmem:[%s4152_s2 + $0x38] sm:$0xff]  ;;  %v3322_v11 = vld [vmem:[%s4152_s2 + $0x30] sm:$0xff]  ;;  %2797 = vmatprep.mubr.msk.f32.mxu1 %vm3195_vm3, %v3192_v0  ;;  %s3196_s12 = smov 96   ;;  %vm2502_vm6 = vcmask 31744   ;;  %vm2599_vm7 = vcmask 130048  }
   0x5   :  { %106 = vmatpush1.msra.mxu0 %v3286_v4  ;;  %v3329_v12 = vld [vmem:[%s4152_s2 + $0x28] sm:$0xff]  ;;  %v3335_v13 = vld [vmem:[%s4152_s2 + $0x20] sm:$0xff]  ;;  %v3341_v14 = vld [vmem:[%s4152_s2 + $0x18] sm:$0xff]  ;;  %vm2673_vm8 = vcmask 1024  }
   0x6   :  { %107 = vmatprep.subr.mxu0 %v3292_v5  ;;  %v3347_v15 = vld [vmem:[%s4152_s2 + $0x10] sm:$0xff]  ;;  %v3353_v16 = vld [vmem:[%s4152_s2 + $0x8] sm:$0xff]  ;;  %v3359_v17 = vld [vmem:[%s4152_s2] sm:$0xff] }
   0x7   :  { %108 = vmatpush1.msra.mxu0 %v3298_v6  ;;  %v73_v21 = vld [vmem:[%s4153_s0] sm:$0x1]  ;;  %v74_v22 = vld [vmem:[%s4153_s0 + $0x8] sm:$0x1]  ;;  %v3388_v51 = vld [vmem:[%s4154_s3 + $0x18] sm:$0xff] }
   0x8   :  { %v51_v10 = vld [vmem:[#allocation4] sm:$0x3]  ;;  %109 = vmatprep.subr.mxu0 %v3304_v7  ;;  %v49_v18 = vld [vmem:[#allocation2] sm:$0x3]  ;;  %v3393_v52 = vld [vmem:[%s4154_s3 + $0x10] sm:$0xff]  ;;  %2790 = vmatpush3.msra.mxu1 %v3388_v51 }
   0x9   :  { %78 = vrot.lane.b32.xlu0 %v51_v10, %s3193_s18  ;;  %110 = vmatpush1.msra.mxu0 %v3310_v8  ;;  %v50_v27 = vld [vmem:[#allocation3] sm:$0x3]  ;;  %v3405_v53 = vld [vmem:[%s4154_s3 + $0x8] sm:$0xff] }
   0xa   :  { %111 = vmatprep.subr.mxu0 %v3316_v9  ;;  %v179_v29 = vrot.slane %v50_v27, 1  ;;  %2791 = vmatprep.subr.mxu1 %v3192_v0  ;;  %v3415_v55 = vld [vmem:[%s4154_s3] sm:$0xff] }
   0xb   :  { %112 = vmatpush1.msra.mxu0 %v3322_v11  ;;  %2792 = vmatpush3.msra.mxu1 %v3393_v52 }
   0xc   :  { %113 = vmatprep.subr.mxu0 %v3329_v12  ;;  %2793 = vmatprep.subr.mxu1 %v3192_v0 }
   0xd   :  { %114 = vmatpush1.msra.mxu0 %v3335_v13  ;;  %2794 = vmatpush3.msra.mxu1 %v3405_v53 }
   0xe   :  { %115 = vmatprep.subr.mxu0 %v3341_v14  ;;  %2795 = vmatprep.subr.mxu1 %v3192_v0 }
   0xf   :  { %116 = vmatpush1.msra.mxu0 %v3347_v15  ;;  %2796 = vmatpush3.msra.mxu1 %v3415_v55 }
  0x10   :  { %117 = vmatprep.subr.mxu0 %v3353_v16  ;;  %399 = vmatprep.subr.mxu1 %v3268_v1 }
  0x11   :  { %118 = vmatpush1.msra.mxu0 %v3359_v17 }
  0x12   :  { %2800 = vmatprep.subr.mxu0 %v3192_v0 }
  0x7b   :  { %v79_v19 = vpop.permute.xlu0 %78 }
  0x7c   :  { %v82_v20 = vsel %vm81_vm1, %v49_v18, %v79_v19  ;;  %v75_v18 = vld [vmem:[%s4155_s1] sm:$0x1] }
  0x7d   :  { %2679 = vmatmul.mubr.msk.f32.vlgmr.msra.gmra.mxu0 %vm83_vm2, %v82_v20  ;;  %v76_v20 = vld [vmem:[%s4155_s1 + $0x8] sm:$0x1] }
  0x7e   :  { %2808 = vmatprep.mubr.msk.f32.mxu0 %vm3195_vm3, %v3192_v0  ;;  %2801 = vmatpush3.msra.mxu0 %v3388_v51 }
  0x7f   :  { %2802 = vmatprep.subr.mxu0 %v3192_v0 }
  0x80   :  { %2803 = vmatpush3.msra.mxu0 %v3393_v52 }
  0x81   :  { %2804 = vmatprep.subr.mxu0 %v3192_v0 }
  0x82   :  { %2805 = vmatpush3.msra.mxu0 %v3405_v53 }
  0x83   :  { %2806 = vmatprep.subr.mxu0 %v3192_v0 }
  0x84   :  { %2807 = vmatpush3.msra.mxu0 %v3415_v55 }
  0x85   :  { %678 = vmatprep.subr.mxu0 %v3268_v1 }
 0x13d   :  { %v153_v23 = vpop.f32.mrf.mxu0 }
 0x13e   :  { %v159_v24 = vrot.slane %v153_v23, 1  ;;  %v162_v25 = vadd.f32 %v153_v23, %v73_v21 }
 0x13f   :  { %v155_v10 = vpop.f32.mrf.mxu0 }
 0x140   :  { %v163_v26 = vadd.f32 %v159_v24, %v74_v22  ;;  %2916 = vtanh.f32 %v162_v25  ;;  %v2680_v31 = vmul.f32 -1.442695, %v162_v25  ;;  %v221_v19 = vrot.slane %v155_v10, 1 }
 0x141   :  { %v224_v21 = vadd.f32 %v155_v10, %v75_v18 }
 0x142   :  { %2918 = vtanh.f32 %v163_v26  ;;  %v2681_v32 = vmul.f32 -1.442695, %v163_v26  ;;  %v225_v23 = vadd.f32 %v221_v19, %v76_v20 }
 0x143   :  { %2920 = vpow2.f32 %v2680_v31 }
 0x144   :  { %2922 = vpow2.f32 %v2681_v32 }
 0x14d   :  { %v2917_v28 = vpop.eup %2916 }
 0x14e   :  { %190 = vrot.lane.b32.xlu1 %v2917_v28, %s3194_s16 }
 0x14f   :  { %v2919_v30 = vpop.eup %2918 }
 0x150   :  { %192 = vrot.lane.b32.xlu0 %v2919_v30, %s3194_s16  ;;  %v2921_v33 = vpop.eup %2920 }
 0x151   :  { %v2923_v34 = vpop.eup %2922  ;;  %v170_v35 = vadd.f32 1.0, %v2921_v33 }
 0x152   :  { %182 = vrot.lane.b32.xlu1 %v179_v29, %s3193_s18  ;;  %v171_v36 = vadd.f32 1.0, %v2923_v34  ;;  %v52_v29 = vld [vmem:[#allocation5] sm:$0x3] }
 0x153   :  { %2924 = vrcp.f32 %v170_v35  ;;  %v326_v31 = vrot.slane %v52_v29, 1 }
 0x154   :  { %180 = vrot.lane.b32.xlu0 %v50_v27, %s3193_s18  ;;  %2926 = vrcp.f32 %v171_v36 }
 0x160   :  { %v2925_v37 = vpop.eup %2924 }
 0x161   :  { %v2927_v40 = vpop.eup %2926 }
 0x1c0   :  { %v191_v38 = vpop.permute.xlu1 %190 }
 0x1c1   :  { %v196_v39 = vmul.f32 %v2925_v37, %v191_v38 }
 0x1c2   :  { %v193_v41 = vpop.permute.xlu0 %192 }
 0x1c3   :  { %200 = vrot.lane.b32.xlu0 %v196_v39, %s3193_s18  ;;  %v197_v42 = vmul.f32 %v2927_v40, %v193_v41 }
 0x1c4   :  { %v183_v44 = vpop.permute.xlu1 %182 }
 0x1c5   :  { %202 = vrot.lane.b32.xlu1 %v197_v42, %s3193_s18  ;;  %v187_v48 = vmul.f32 %v2927_v40, %v183_v44 }
 0x1c6   :  { %v181_v43 = vpop.permute.xlu0 %180 }
 0x1c7   :  { %v186_v45 = vmul.f32 %v2925_v37, %v181_v43 }
 0x235   :  { %v201_v46 = vpop.permute.xlu0 %200 }
 0x236   :  { %v3379_v47 = vadd.f32 %v201_v46, %v186_v45 }
 0x237   :  { %v203_v49 = vpop.permute.xlu1 %202 }
 0x238   :  { %2928 = vtanh.f32 %v3379_v47  ;;  %v3382_v50 = vadd.f32 %v203_v49, %v187_v48 }
 0x23a   :  { %2930 = vtanh.f32 %v3382_v50 }
 0x245   :  { %v2929_v54 = vpop.eup %2928 }
 0x246   :  { %212 = vrot.lane.b32.xlu0 %v2929_v54, %s3194_s16 }
 0x247   :  { %v2931_v56 = vpop.eup %2930 }
 0x248   :  { %214 = vrot.lane.b32.xlu1 %v2931_v56, %s3194_s16 }
 0x2b8   :  { %v213_v57 = vpop.permute.xlu0 %212 }
 0x2b9   :  { %v218_v60 = vmul.f32 %v2925_v37, %v213_v57 }
 0x2ba   :  { %v215_v58 = vpop.permute.xlu1 %214 }
 0x2bb   :  { %v219_v59 = vmul.f32 %v2927_v40, %v215_v58 }
 0x2bd   :  { %v228_v61 = vrot.slane %v219_v59, 7 }
 0x2bf   :  { %v230_v62 = vsel %vm229_vm4, %v228_v61, %v218_v60 }
 0x2c0   :  { %231 = vrot.lane.b32.xlu1 %v230_v62, %s3193_s18 }
 0x332   :  { %v3429_v63 = vpop.permute.xlu1 %231 }
 0x333   :  { %2798 = vmatmul.mubr.msk.f32.vlgmr.msra.gmra.mxu1 %vm81_vm1, %v3429_v63 }
 0x334   :  { %400 = vmatpush1.msra.mxu1 %v3273_v2  ;;  %447 = vmatprep.mubr.f32.mxu1 %v3192_v0 }
 0x335   :  { %401 = vmatprep.subr.mxu1 %v3278_v3 }
 0x336   :  { %402 = vmatpush1.msra.mxu1 %v3286_v4 }
 0x337   :  { %403 = vmatprep.subr.mxu1 %v3292_v5 }
 0x338   :  { %404 = vmatpush1.msra.mxu1 %v3298_v6 }
 0x339   :  { %405 = vmatprep.subr.mxu1 %v3304_v7 }
 0x33a   :  { %406 = vmatpush1.msra.mxu1 %v3310_v8 }
 0x33b   :  { %407 = vmatprep.subr.mxu1 %v3316_v9 }
 0x33c   :  { %408 = vmatpush1.msra.mxu1 %v3322_v11 }
 0x33d   :  { %409 = vmatprep.subr.mxu1 %v3329_v12 }
 0x33e   :  { %410 = vmatpush1.msra.mxu1 %v3335_v13 }
 0x33f   :  { %411 = vmatprep.subr.mxu1 %v3341_v14 }
 0x340   :  { %412 = vmatpush1.msra.mxu1 %v3347_v15 }
 0x341   :  { %413 = vmatprep.subr.mxu1 %v3353_v16 }
 0x342   :  { %414 = vmatpush1.msra.mxu1 %v3359_v17 }
 0x343   :  { %2811 = vmatprep.subr.mxu1 %v3192_v0 }
 0x3f3   :  { %v301_v22 = vpop.f32.mrf.mxu1 }
 0x3f4   :  { %v306_v24 = vrot.slane %v301_v22, 1  ;;  %v309_v25 = vadd.f32 %v301_v22, %v224_v21  ;;  %v368_v22 = vld [vmem:[%s4153_s0 + $0x9] sm:$0x1] }
 0x3f5   :  { %v2799_v26 = vpop.f32.mrf.mxu1 }
 0x3f6   :  { %v310_v27 = vadd.f32 %v306_v24, %v225_v23  ;;  %2932 = vtanh.f32 %v309_v25  ;;  %v2683_v32 = vmul.f32 -1.442695, %v309_v25 }
 0x3f8   :  { %2934 = vtanh.f32 %v310_v27  ;;  %v2684_v33 = vmul.f32 -1.442695, %v310_v27 }
 0x3f9   :  { %2936 = vpow2.f32 %v2683_v32 }
 0x3fa   :  { %2938 = vpow2.f32 %v2684_v33 }
 0x403   :  { %v2933_v28 = vpop.eup %2932 }
 0x404   :  { %337 = vrot.lane.b32.xlu1 %v2933_v28, %s3194_s16 }
 0x405   :  { %v2935_v30 = vpop.eup %2934 }
 0x406   :  { %339 = vrot.lane.b32.xlu0 %v2935_v30, %s3194_s16  ;;  %v2937_v34 = vpop.eup %2936 }
 0x407   :  { %v2939_v35 = vpop.eup %2938  ;;  %v317_v36 = vadd.f32 1.0, %v2937_v34 }
 0x408   :  { %327 = vrot.lane.b32.xlu1 %v52_v29, %s3193_s18  ;;  %v318_v37 = vadd.f32 1.0, %v2939_v35 }
 0x409   :  { %2940 = vrcp.f32 %v317_v36 }
 0x40a   :  { %329 = vrot.lane.b32.xlu0 %v326_v31, %s3193_s18  ;;  %2942 = vrcp.f32 %v318_v37 }
 0x416   :  { %v2941_v38 = vpop.eup %2940 }
 0x417   :  { %v2943_v41 = vpop.eup %2942 }
 0x476   :  { %v338_v39 = vpop.permute.xlu1 %337 }
 0x477   :  { %v343_v40 = vmul.f32 %v2941_v38, %v338_v39 }
 0x478   :  { %v340_v42 = vpop.permute.xlu0 %339 }
 0x479   :  { %347 = vrot.lane.b32.xlu1 %v343_v40, %s3193_s18  ;;  %v344_v43 = vmul.f32 %v2943_v41, %v340_v42 }
 0x47a   :  { %v328_v44 = vpop.permute.xlu1 %327 }
 0x47b   :  { %349 = vrot.lane.b32.xlu0 %v344_v43, %s3193_s18  ;;  %v333_v45 = vmul.f32 %v2941_v38, %v328_v44 }
 0x47c   :  { %v330_v46 = vpop.permute.xlu0 %329 }
 0x47d   :  { %v334_v54 = vmul.f32 %v2943_v41, %v330_v46 }
 0x4eb   :  { %v348_v48 = vpop.permute.xlu1 %347 }
 0x4ec   :  { %v3462_v49 = vadd.f32 %v348_v48, %v333_v45 }
 0x4ed   :  { %v350_v56 = vpop.permute.xlu0 %349 }
 0x4ee   :  { %2944 = vtanh.f32 %v3462_v49  ;;  %v3465_v57 = vadd.f32 %v350_v56, %v334_v54 }
 0x4f0   :  { %2946 = vtanh.f32 %v3465_v57 }
 0x4fb   :  { %v2945_v58 = vpop.eup %2944 }
 0x4fc   :  { %359 = vrot.lane.b32.xlu1 %v2945_v58, %s3194_s16 }
 0x4fd   :  { %v2947_v59 = vpop.eup %2946 }
 0x4fe   :  { %361 = vrot.lane.b32.xlu0 %v2947_v59, %s3194_s16 }
 0x56e   :  { %v360_v60 = vpop.permute.xlu1 %359 }
 0x56f   :  { %v365_v10 = vmul.f32 %v2941_v38, %v360_v60 }
 0x570   :  { %v362_v61 = vpop.permute.xlu0 %361 }
 0x571   :  { %v366_v62 = vmul.f32 %v2943_v41, %v362_v61 }
 0x573   :  { %v374_v18 = vrot.slane %v366_v62, 7 }
 0x575   :  { %v375_v19 = vsel %vm229_vm4, %v374_v18, %v365_v10  ;;  %v369_v10 = vld [vmem:[%s4155_s1 + $0x1] sm:$0x1] }
 0x576   :  { %376 = vrot.lane.b32.xlu0 %v375_v19, %s3194_s16  ;;  %v370_v19 = vld [vmem:[%s4155_s1 + $0x9] sm:$0x1] }
 0x5e8   :  { %v377_v20 = vpop.permute.xlu0 %376 }
 0x5e9   :  { %v379_v21 = vsel %vm81_vm1, %v3429_v63, %v377_v20  ;;  %v367_v63 = vld [vmem:[%s4153_s0 + $0x1] sm:$0x1] }
 0x5ea   :  { %2685 = vmatmul.mubr.msk.f32.vlgmr.msra.gmra.mxu1 %vm83_vm2, %v379_v21 }
 0x5eb   :  { %2812 = vmatpush3.msra.mxu1 %v3388_v51  ;;  %2819 = vmatprep.mubr.msk.f32.mxu1 %vm3195_vm3, %v3192_v0 }
 0x5ec   :  { %2813 = vmatprep.subr.mxu1 %v3192_v0 }
 0x5ed   :  { %2814 = vmatpush3.msra.mxu1 %v3393_v52 }
 0x5ee   :  { %2815 = vmatprep.subr.mxu1 %v3192_v0 }
 0x5ef   :  { %2816 = vmatpush3.msra.mxu1 %v3405_v53 }
 0x5f0   :  { %2817 = vmatprep.subr.mxu1 %v3192_v0 }
 0x5f1   :  { %2818 = vmatpush3.msra.mxu1 %v3415_v55 }
 0x5f2   :  { %957 = vmatprep.subr.mxu1 %v3268_v1 }
 0x6aa   :  { %v449_v23 = vpop.f32.mrf.mxu1 }
 0x6ab   :  { %v455_v24 = vrot.slane %v449_v23, 1  ;;  %v458_v25 = vadd.f32 %v449_v23, %v367_v63 }
 0x6ac   :  { %v451_v62 = vpop.f32.mrf.mxu1 }
 0x6ad   :  { %v459_v26 = vadd.f32 %v455_v24, %v368_v22  ;;  %2948 = vtanh.f32 %v458_v25  ;;  %v2686_v29 = vmul.f32 -1.442695, %v458_v25  ;;  %v509_v18 = vrot.slane %v451_v62, 1 }
 0x6ae   :  { %v512_v20 = vadd.f32 %v451_v62, %v369_v10  ;;  %v647_v10 = vld [vmem:[%s4153_s0 + $0xa] sm:$0x1] }
 0x6af   :  { %2950 = vtanh.f32 %v459_v26  ;;  %v2687_v30 = vmul.f32 -1.442695, %v459_v26  ;;  %v513_v63 = vadd.f32 %v509_v18, %v370_v19 }
 0x6b0   :  { %2952 = vpow2.f32 %v2686_v29 }
 0x6b1   :  { %2954 = vpow2.f32 %v2687_v30 }
 0x6ba   :  { %v2949_v27 = vpop.eup %2948 }
 0x6bb   :  { %478 = vrot.lane.b32.xlu0 %v2949_v27, %s3194_s16 }
 0x6bc   :  { %v2951_v28 = vpop.eup %2950 }
 0x6bd   :  { %480 = vrot.lane.b32.xlu1 %v2951_v28, %s3194_s16  ;;  %v2953_v31 = vpop.eup %2952 }
 0x6be   :  { %v2955_v32 = vpop.eup %2954  ;;  %v466_v33 = vadd.f32 1.0, %v2953_v31 }
 0x6bf   :  { %v467_v34 = vadd.f32 1.0, %v2955_v32 }
 0x6c0   :  { %2956 = vrcp.f32 %v466_v33 }
 0x6c1   :  { %2958 = vrcp.f32 %v467_v34 }
 0x6cd   :  { %v2957_v35 = vpop.eup %2956 }
 0x6ce   :  { %v2959_v38 = vpop.eup %2958  ;;  %v474_v41 = vmul.f32 %v2957_v35, %v3379_v47 }
 0x6cf   :  { %v475_v44 = vmul.f32 %v2959_v38, %v3382_v50 }
 0x72d   :  { %v479_v36 = vpop.permute.xlu0 %478 }
 0x72e   :  { %v484_v37 = vmul.f32 %v2957_v35, %v479_v36 }
 0x72f   :  { %v481_v39 = vpop.permute.xlu1 %480 }
 0x730   :  { %488 = vrot.lane.b32.xlu0 %v484_v37, %s3193_s18  ;;  %v485_v40 = vmul.f32 %v2959_v38, %v481_v39 }
 0x732   :  { %490 = vrot.lane.b32.xlu1 %v485_v40, %s3193_s18 }
 0x7a2   :  { %v489_v42 = vpop.permute.xlu0 %488 }
 0x7a3   :  { %v3496_v43 = vadd.f32 %v489_v42, %v474_v41 }
 0x7a4   :  { %v491_v45 = vpop.permute.xlu1 %490 }
 0x7a5   :  { %2960 = vtanh.f32 %v3496_v43  ;;  %v3500_v46 = vadd.f32 %v491_v45, %v475_v44 }
 0x7a7   :  { %2962 = vtanh.f32 %v3500_v46 }
 0x7b2   :  { %v2961_v48 = vpop.eup %2960 }
 0x7b3   :  { %500 = vrot.lane.b32.xlu0 %v2961_v48, %s3194_s16 }
 0x7b4   :  { %v2963_v54 = vpop.eup %2962 }
 0x7b5   :  { %502 = vrot.lane.b32.xlu1 %v2963_v54, %s3194_s16 }
 0x825   :  { %v501_v56 = vpop.permute.xlu0 %500 }
 0x826   :  { %v506_v59 = vmul.f32 %v2957_v35, %v501_v56 }
 0x827   :  { %v503_v47 = vpop.permute.xlu1 %502 }
 0x828   :  { %v507_v58 = vmul.f32 %v2959_v38, %v503_v47 }
 0x82a   :  { %v516_v60 = vrot.slane %v507_v58, 7 }
 0x82c   :  { %v517_v50 = vsel %vm229_vm4, %v516_v60, %v506_v59 }
 0x82d   :  { %518 = vrot.lane.b32.xlu1 %v517_v50, %s3193_s18 }
 0x89f   :  { %v3507_v61 = vpop.permute.xlu1 %518 }
 0x8a0   :  { %2809 = vmatmul.mubr.msk.f32.vlgmr.msra.gmra.mxu0 %vm81_vm1, %v3507_v61 }
 0x8a1   :  { %679 = vmatpush1.msra.mxu0 %v3273_v2  ;;  %726 = vmatprep.mubr.f32.mxu0 %v3192_v0 }
 0x8a2   :  { %680 = vmatprep.subr.mxu0 %v3278_v3 }
 0x8a3   :  { %681 = vmatpush1.msra.mxu0 %v3286_v4 }
 0x8a4   :  { %682 = vmatprep.subr.mxu0 %v3292_v5 }
 0x8a5   :  { %683 = vmatpush1.msra.mxu0 %v3298_v6 }
 0x8a6   :  { %684 = vmatprep.subr.mxu0 %v3304_v7 }
 0x8a7   :  { %685 = vmatpush1.msra.mxu0 %v3310_v8 }
 0x8a8   :  { %686 = vmatprep.subr.mxu0 %v3316_v9 }
 0x8a9   :  { %687 = vmatpush1.msra.mxu0 %v3322_v11 }
 0x8aa   :  { %688 = vmatprep.subr.mxu0 %v3329_v12 }
 0x8ab   :  { %689 = vmatpush1.msra.mxu0 %v3335_v13 }
 0x8ac   :  { %690 = vmatprep.subr.mxu0 %v3341_v14 }
 0x8ad   :  { %691 = vmatpush1.msra.mxu0 %v3347_v15 }
 0x8ae   :  { %692 = vmatprep.subr.mxu0 %v3353_v16 }
 0x8af   :  { %693 = vmatpush1.msra.mxu0 %v3359_v17 }
 0x8b0   :  { %2822 = vmatprep.subr.mxu0 %v3192_v0 }
 0x960   :  { %v588_v21 = vpop.f32.mrf.mxu0 }
 0x961   :  { %v593_v22 = vrot.slane %v588_v21, 1  ;;  %v596_v23 = vadd.f32 %v588_v21, %v512_v20 }
 0x962   :  { %v2810_v24 = vpop.f32.mrf.mxu0 }
 0x963   :  { %v597_v25 = vadd.f32 %v593_v22, %v513_v63  ;;  %2964 = vtanh.f32 %v596_v23  ;;  %v2689_v28 = vmul.f32 -1.442695, %v596_v23 }
 0x965   :  { %2966 = vtanh.f32 %v597_v25  ;;  %v2690_v29 = vmul.f32 -1.442695, %v597_v25 }
 0x966   :  { %2968 = vpow2.f32 %v2689_v28 }
 0x967   :  { %2970 = vpow2.f32 %v2690_v29 }
 0x970   :  { %v2965_v26 = vpop.eup %2964 }
 0x971   :  { %616 = vrot.lane.b32.xlu1 %v2965_v26, %s3194_s16 }
 0x972   :  { %v2967_v27 = vpop.eup %2966 }
 0x973   :  { %618 = vrot.lane.b32.xlu0 %v2967_v27, %s3194_s16  ;;  %v2969_v30 = vpop.eup %2968 }
 0x974   :  { %v2971_v31 = vpop.eup %2970  ;;  %v604_v32 = vadd.f32 1.0, %v2969_v30 }
 0x975   :  { %v605_v33 = vadd.f32 1.0, %v2971_v31 }
 0x976   :  { %2972 = vrcp.f32 %v604_v32 }
 0x977   :  { %2974 = vrcp.f32 %v605_v33 }
 0x983   :  { %v2973_v34 = vpop.eup %2972 }
 0x984   :  { %v2975_v37 = vpop.eup %2974  ;;  %v612_v40 = vmul.f32 %v2973_v34, %v3462_v49 }
 0x985   :  { %v613_v44 = vmul.f32 %v2975_v37, %v3465_v57 }
 0x9e3   :  { %v617_v35 = vpop.permute.xlu1 %616 }
 0x9e4   :  { %v622_v36 = vmul.f32 %v2973_v34, %v617_v35 }
 0x9e5   :  { %v619_v38 = vpop.permute.xlu0 %618 }
 0x9e6   :  { %626 = vrot.lane.b32.xlu1 %v622_v36, %s3193_s18  ;;  %v623_v39 = vmul.f32 %v2975_v37, %v619_v38 }
 0x9e8   :  { %628 = vrot.lane.b32.xlu0 %v623_v39, %s3193_s18 }
 0xa58   :  { %v627_v41 = vpop.permute.xlu1 %626 }
 0xa59   :  { %v3539_v42 = vadd.f32 %v627_v41, %v612_v40 }
 0xa5a   :  { %v629_v45 = vpop.permute.xlu0 %628 }
 0xa5b   :  { %2976 = vtanh.f32 %v3539_v42  ;;  %v3543_v48 = vadd.f32 %v629_v45, %v613_v44 }
 0xa5d   :  { %2978 = vtanh.f32 %v3543_v48 }
 0xa68   :  { %v2977_v54 = vpop.eup %2976 }
 0xa69   :  { %638 = vrot.lane.b32.xlu1 %v2977_v54, %s3194_s16 }
 0xa6a   :  { %v2979_v56 = vpop.eup %2978 }
 0xa6b   :  { %640 = vrot.lane.b32.xlu0 %v2979_v56, %s3194_s16 }
 0xadb   :  { %v639_v47 = vpop.permute.xlu1 %638 }
 0xadc   :  { %v644_v59 = vmul.f32 %v2973_v34, %v639_v47 }
 0xadd   :  { %v641_v49 = vpop.permute.xlu0 %640 }
 0xade   :  { %v645_v58 = vmul.f32 %v2975_v37, %v641_v49 }
 0xae0   :  { %v653_v60 = vrot.slane %v645_v58, 7 }
 0xae2   :  { %v654_v57 = vsel %vm229_vm4, %v653_v60, %v644_v59 }
 0xae3   :  { %655 = vrot.lane.b32.xlu0 %v654_v57, %s3194_s16 }
 0xb55   :  { %v656_v50 = vpop.permute.xlu0 %655 }
 0xb56   :  { %v658_v62 = vsel %vm81_vm1, %v3507_v61, %v656_v50  ;;  %v646_v61 = vld [vmem:[%s4153_s0 + $0x2] sm:$0x1] }
 0xb57   :  { %2691 = vmatmul.mubr.msk.f32.vlgmr.msra.gmra.mxu0 %vm83_vm2, %v658_v62 }
 0xb58   :  { %2823 = vmatpush3.msra.mxu0 %v3388_v51  ;;  %2830 = vmatprep.mubr.msk.f32.mxu0 %vm3195_vm3, %v3192_v0 }
 0xb59   :  { %2824 = vmatprep.subr.mxu0 %v3192_v0 }
 0xb5a   :  { %2825 = vmatpush3.msra.mxu0 %v3393_v52 }
 0xb5b   :  { %2826 = vmatprep.subr.mxu0 %v3192_v0 }
 0xb5c   :  { %2827 = vmatpush3.msra.mxu0 %v3405_v53 }
 0xb5d   :  { %2828 = vmatprep.subr.mxu0 %v3192_v0 }
 0xb5e   :  { %2829 = vmatpush3.msra.mxu0 %v3415_v55 }
 0xb5f   :  { %1236 = vmatprep.subr.mxu0 %v3268_v1 }
 0xc17   :  { %v728_v18 = vpop.f32.mrf.mxu0 }
 0xc18   :  { %v734_v19 = vrot.slane %v728_v18, 1  ;;  %v737_v20 = vadd.f32 %v728_v18, %v646_v61 }
 0xc1a   :  { %v738_v21 = vadd.f32 %v734_v19, %v647_v10  ;;  %2980 = vtanh.f32 %v737_v20  ;;  %v2692_v23 = vmul.f32 -1.442695, %v737_v20 }
 0xc1c   :  { %2982 = vtanh.f32 %v738_v21  ;;  %v2693_v24 = vmul.f32 -1.442695, %v738_v21 }
 0xc1d   :  { %2984 = vpow2.f32 %v2692_v23 }
 0xc1e   :  { %2986 = vpow2.f32 %v2693_v24 }
 0xc27   :  { %v2981_v63 = vpop.eup %2980 }
 0xc28   :  { %757 = vrot.lane.b32.xlu0 %v2981_v63, %s3194_s16 }
 0xc29   :  { %v2983_v22 = vpop.eup %2982 }
 0xc2a   :  { %759 = vrot.lane.b32.xlu1 %v2983_v22, %s3194_s16  ;;  %v2985_v25 = vpop.eup %2984 }
 0xc2b   :  { %v2987_v26 = vpop.eup %2986  ;;  %v745_v27 = vadd.f32 1.0, %v2985_v25 }
 0xc2c   :  { %v746_v28 = vadd.f32 1.0, %v2987_v26 }
 0xc2d   :  { %2988 = vrcp.f32 %v745_v27 }
 0xc2e   :  { %2990 = vrcp.f32 %v746_v28 }
 0xc3a   :  { %v2989_v29 = vpop.eup %2988 }
 0xc3b   :  { %v2991_v32 = vpop.eup %2990  ;;  %v753_v35 = vmul.f32 %v2989_v29, %v3496_v43 }
 0xc3c   :  { %v754_v38 = vmul.f32 %v2991_v32, %v3500_v46 }
 0xc9a   :  { %v758_v30 = vpop.permute.xlu0 %757 }
 0xc9b   :  { %v763_v31 = vmul.f32 %v2989_v29, %v758_v30 }
 0xc9c   :  { %v760_v33 = vpop.permute.xlu1 %759 }
 0xc9d   :  { %767 = vrot.lane.b32.xlu0 %v763_v31, %s3193_s18  ;;  %v764_v34 = vmul.f32 %v2991_v32, %v760_v33  ;;  %v926_v33 = vld [vmem:[%s4153_s0 + $0xb] sm:$0x1] }
 0xc9f   :  { %769 = vrot.lane.b32.xlu1 %v764_v34, %s3193_s18 }
 0xd0f   :  { %v768_v36 = vpop.permute.xlu0 %767 }
 0xd10   :  { %v3574_v37 = vadd.f32 %v768_v36, %v753_v35 }
 0xd11   :  { %v770_v39 = vpop.permute.xlu1 %769 }
 0xd12   :  { %2992 = vtanh.f32 %v3574_v37  ;;  %v3578_v40 = vadd.f32 %v770_v39, %v754_v38 }
 0xd14   :  { %2994 = vtanh.f32 %v3578_v40 }
 0xd1f   :  { %v2993_v41 = vpop.eup %2992 }
 0xd20   :  { %779 = vrot.lane.b32.xlu0 %v2993_v41, %s3194_s16 }
 0xd21   :  { %v2995_v44 = vpop.eup %2994 }
 0xd22   :  { %781 = vrot.lane.b32.xlu1 %v2995_v44, %s3194_s16 }
 0xd92   :  { %v780_v45 = vpop.permute.xlu0 %779 }
 0xd93   :  { %v785_v56 = vmul.f32 %v2989_v29, %v780_v45 }
 0xd94   :  { %v782_v43 = vpop.permute.xlu1 %781 }
 0xd95   :  { %v786_v54 = vmul.f32 %v2991_v32, %v782_v43 }
 0xd97   :  { %v795_v47 = vrot.slane %v786_v54, 7 }
 0xd99   :  { %v796_v46 = vsel %vm229_vm4, %v795_v47, %v785_v56 }
 0xd9a   :  { %797 = vrot.lane.b32.xlu1 %v796_v46, %s3193_s18 }
 0xe0c   :  { %v3585_v49 = vpop.permute.xlu1 %797 }
 0xe0d   :  { %2820 = vmatmul.mubr.msk.f32.vlgmr.msra.gmra.mxu1 %vm81_vm1, %v3585_v49 }
 0xe0e   :  { %958 = vmatpush1.msra.mxu1 %v3273_v2  ;;  %1005 = vmatprep.mubr.f32.mxu1 %v3192_v0  ;;  %v730_v2 = vpop.f32.mrf.mxu0 }
 0xe0f   :  { %959 = vmatprep.subr.mxu1 %v3278_v3  ;;  %v648_v3 = vld [vmem:[%s4155_s1 + $0x2] sm:$0x1] }
 0xe10   :  { %960 = vmatpush1.msra.mxu1 %v3286_v4  ;;  %v788_v4 = vrot.slane %v730_v2, 1 }
 0xe11   :  { %961 = vmatprep.subr.mxu1 %v3292_v5  ;;  %v649_v5 = vld [vmem:[%s4155_s1 + $0xa] sm:$0x1] }
 0xe12   :  { %962 = vmatpush1.msra.mxu1 %v3298_v6  ;;  %v791_v6 = vadd.f32 %v730_v2, %v648_v3 }
 0xe13   :  { %963 = vmatprep.subr.mxu1 %v3304_v7 }
 0xe14   :  { %964 = vmatpush1.msra.mxu1 %v3310_v8  ;;  %v792_v8 = vadd.f32 %v788_v4, %v649_v5 }
 0xe15   :  { %965 = vmatprep.subr.mxu1 %v3316_v9 }
 0xe16   :  { %966 = vmatpush1.msra.mxu1 %v3322_v11 }
 0xe17   :  { %967 = vmatprep.subr.mxu1 %v3329_v12 }
 0xe18   :  { %968 = vmatpush1.msra.mxu1 %v3335_v13 }
 0xe19   :  { %969 = vmatprep.subr.mxu1 %v3341_v14 }
 0xe1a   :  { %970 = vmatpush1.msra.mxu1 %v3347_v15 }
 0xe1b   :  { %971 = vmatprep.subr.mxu1 %v3353_v16 }
 0xe1c   :  { %972 = vmatpush1.msra.mxu1 %v3359_v17 }
 0xe1d   :  { %2833 = vmatprep.subr.mxu1 %v3192_v0 }
 0xecd   :  { %v867_v7 = vpop.f32.mrf.mxu1 }
 0xece   :  { %v872_v9 = vrot.slane %v867_v7, 1  ;;  %v875_v11 = vadd.f32 %v867_v7, %v791_v6 }
 0xecf   :  { %v2821_v12 = vpop.f32.mrf.mxu1 }
 0xed0   :  { %v876_v13 = vadd.f32 %v872_v9, %v792_v8  ;;  %2996 = vtanh.f32 %v875_v11  ;;  %v2695_v16 = vmul.f32 -1.442695, %v875_v11 }
 0xed2   :  { %2998 = vtanh.f32 %v876_v13  ;;  %v2696_v17 = vmul.f32 -1.442695, %v876_v13 }
 0xed3   :  { %3000 = vpow2.f32 %v2695_v16  ;;  %v3670_v16 = vld [vmem:[%s4152_s2 + $0x70] sm:$0xff] }
 0xed4   :  { %3002 = vpow2.f32 %v2696_v17  ;;  %v3677_v17 = vld [vmem:[%s4152_s2 + $0x68] sm:$0xff] }
 0xedd   :  { %v2997_v14 = vpop.eup %2996 }
 0xede   :  { %895 = vrot.lane.b32.xlu1 %v2997_v14, %s3194_s16 }
 0xedf   :  { %v2999_v15 = vpop.eup %2998 }
 0xee0   :  { %897 = vrot.lane.b32.xlu0 %v2999_v15, %s3194_s16  ;;  %v3001_v58 = vpop.eup %3000 }
 0xee1   :  { %v3003_v59 = vpop.eup %3002  ;;  %v883_v60 = vadd.f32 1.0, %v3001_v58  ;;  %v3683_v58 = vld [vmem:[%s4152_s2 + $0x60] sm:$0xff] }
 0xee2   :  { %v884_v57 = vadd.f32 1.0, %v3003_v59  ;;  %v3689_v59 = vld [vmem:[%s4152_s2 + $0x58] sm:$0xff] }
 0xee3   :  { %3004 = vrcp.f32 %v883_v60  ;;  %v3695_v60 = vld [vmem:[%s4152_s2 + $0x50] sm:$0xff] }
 0xee4   :  { %3006 = vrcp.f32 %v884_v57  ;;  %v3701_v57 = vld [vmem:[%s4152_s2 + $0x48] sm:$0xff] }
 0xef0   :  { %v3005_v50 = vpop.eup %3004 }
 0xef1   :  { %v3007_v10 = vpop.eup %3006  ;;  %v891_v20 = vmul.f32 %v3005_v50, %v3539_v42 }
 0xef2   :  { %v892_v22 = vmul.f32 %v3007_v10, %v3543_v48 }
 0xf50   :  { %v896_v62 = vpop.permute.xlu1 %895 }
 0xf51   :  { %v901_v61 = vmul.f32 %v3005_v50, %v896_v62  ;;  %v3713_v62 = vld [vmem:[%s4152_s2 + $0x38] sm:$0xff] }
 0xf52   :  { %v898_v18 = vpop.permute.xlu0 %897 }
 0xf53   :  { %905 = vrot.lane.b32.xlu1 %v901_v61, %s3193_s18  ;;  %v902_v19 = vmul.f32 %v3007_v10, %v898_v18  ;;  %v3719_v61 = vld [vmem:[%s4152_s2 + $0x30] sm:$0xff]  ;;  %v3731_v18 = vld [vmem:[%s4152_s2 + $0x20] sm:$0xff] }
 0xf55   :  { %907 = vrot.lane.b32.xlu0 %v902_v19, %s3193_s18  ;;  %v3737_v19 = vld [vmem:[%s4152_s2 + $0x18] sm:$0xff] }
 0xfc5   :  { %v906_v21 = vpop.permute.xlu1 %905 }
 0xfc6   :  { %v3617_v63 = vadd.f32 %v906_v21, %v891_v20  ;;  %v3743_v20 = vld [vmem:[%s4152_s2 + $0x10] sm:$0xff]  ;;  %v3749_v21 = vld [vmem:[%s4152_s2 + $0x8] sm:$0xff] }
 0xfc7   :  { %v908_v23 = vpop.permute.xlu0 %907 }
 0xfc8   :  { %3008 = vtanh.f32 %v3617_v63  ;;  %v3621_v24 = vadd.f32 %v908_v23, %v892_v22  ;;  %v3755_v22 = vld [vmem:[%s4152_s2] sm:$0xff] }
 0xfca   :  { %3010 = vtanh.f32 %v3621_v24 }
 0xfd5   :  { %v3009_v25 = vpop.eup %3008 }
 0xfd6   :  { %917 = vrot.lane.b32.xlu1 %v3009_v25, %s3194_s16  ;;  %v927_v25 = vld [vmem:[%s4155_s1 + $0x3] sm:$0x1] }
 0xfd7   :  { %v3011_v26 = vpop.eup %3010 }
 0xfd8   :  { %919 = vrot.lane.b32.xlu0 %v3011_v26, %s3194_s16 }
0x1048   :  { %v918_v27 = vpop.permute.xlu1 %917 }
0x1049   :  { %v923_v29 = vmul.f32 %v3005_v50, %v918_v27  ;;  %v3707_v50 = vld [vmem:[%s4152_s2 + $0x40] sm:$0xff]  ;;  %v928_v27 = vld [vmem:[%s4155_s1 + $0xb] sm:$0x1] }
0x104a   :  { %v920_v42 = vpop.permute.xlu0 %919 }
0x104b   :  { %v924_v28 = vmul.f32 %v3007_v10, %v920_v42  ;;  %v3725_v10 = vld [vmem:[%s4152_s2 + $0x28] sm:$0xff] }
0x104d   :  { %v932_v30 = vrot.slane %v924_v28, 7 }
0x104f   :  { %v933_v48 = vsel %vm229_vm4, %v932_v30, %v923_v29 }
0x1050   :  { %934 = vrot.lane.b32.xlu0 %v933_v48, %s3194_s16 }
0x10c2   :  { %v935_v31 = vpop.permute.xlu0 %934 }
0x10c3   :  { %v937_v32 = vsel %vm81_vm1, %v3585_v49, %v935_v31 }
0x10c4   :  { %2697 = vmatmul.mubr.msk.f32.vlgmr.msra.gmra.mxu1 %vm83_vm2, %v937_v32 }
0x10c5   :  { %2834 = vmatpush3.msra.mxu1 %v3388_v51  ;;  %2841 = vmatprep.mubr.msk.f32.mxu1 %vm3195_vm3, %v3192_v0  ;;  %v925_v51 = vld [vmem:[%s4153_s0 + $0x3] sm:$0x1] }
0x10c6   :  { %2835 = vmatprep.subr.mxu1 %v3192_v0 }
0x10c7   :  { %2836 = vmatpush3.msra.mxu1 %v3393_v52 }
0x10c8   :  { %2837 = vmatprep.subr.mxu1 %v3192_v0 }
0x10c9   :  { %2838 = vmatpush3.msra.mxu1 %v3405_v53 }
0x10ca   :  { %2839 = vmatprep.subr.mxu1 %v3192_v0 }
0x10cb   :  { %2840 = vmatpush3.msra.mxu1 %v3415_v55 }
0x10cc   :  { %1515 = vmatprep.subr.mxu1 %v3268_v1 }
0x1184   :  { %v1007_v34 = vpop.f32.mrf.mxu1 }
0x1185   :  { %v1013_v52 = vrot.slane %v1007_v34, 1  ;;  %v1016_v35 = vadd.f32 %v1007_v34, %v925_v51 }
0x1186   :  { %v1009_v23 = vpop.f32.mrf.mxu1 }
0x1187   :  { %v1017_v36 = vadd.f32 %v1013_v52, %v926_v33  ;;  %3012 = vtanh.f32 %v1016_v35  ;;  %v2698_v1 = vmul.f32 -1.442695, %v1016_v35  ;;  %v1067_v26 = vrot.slane %v1009_v23, 1 }
0x1188   :  { %v1070_v42 = vadd.f32 %v1009_v23, %v927_v25  ;;  %v1204_v23 = vld [vmem:[%s4153_s0 + $0x4] sm:$0x1]  ;;  %v1205_v25 = vld [vmem:[%s4153_s0 + $0xc] sm:$0x1] }
0x1189   :  { %3014 = vtanh.f32 %v1017_v36  ;;  %v2699_v38 = vmul.f32 -1.442695, %v1017_v36  ;;  %v1071_v29 = vadd.f32 %v1067_v26, %v928_v27 }
0x118a   :  { %3016 = vpow2.f32 %v2698_v1 }
0x118b   :  { %3018 = vpow2.f32 %v2699_v38 }
0x1194   :  { %v3013_v53 = vpop.eup %3012 }
0x1195   :  { %1036 = vrot.lane.b32.xlu0 %v3013_v53, %s3194_s16 }
0x1196   :  { %v3015_v55 = vpop.eup %3014 }
0x1197   :  { %1038 = vrot.lane.b32.xlu1 %v3015_v55, %s3194_s16  ;;  %v3017_v39 = vpop.eup %3016 }
0x1198   :  { %v3019_v41 = vpop.eup %3018  ;;  %v1024_v44 = vadd.f32 1.0, %v3017_v39 }
0x1199   :  { %v1025_v45 = vadd.f32 1.0, %v3019_v41 }
0x119a   :  { %3020 = vrcp.f32 %v1024_v44 }
0x119b   :  { %3022 = vrcp.f32 %v1025_v45 }
0x11a7   :  { %v3021_v43 = vpop.eup %3020 }
0x11a8   :  { %v3023_v47 = vpop.eup %3022  ;;  %v1032_v2 = vmul.f32 %v3021_v43, %v3574_v37 }
0x11a9   :  { %v1033_v5 = vmul.f32 %v3023_v47, %v3578_v40 }
0x1207   :  { %v1037_v54 = vpop.permute.xlu0 %1036 }
0x1208   :  { %v1042_v56 = vmul.f32 %v3021_v43, %v1037_v54 }
0x1209   :  { %v1039_v46 = vpop.permute.xlu1 %1038 }
0x120a   :  { %1046 = vrot.lane.b32.xlu0 %v1042_v56, %s3193_s18  ;;  %v1043_v49 = vmul.f32 %v3023_v47, %v1039_v46 }
0x120c   :  { %1048 = vrot.lane.b32.xlu1 %v1043_v49, %s3193_s18 }
0x127c   :  { %v1047_v3 = vpop.permute.xlu0 %1046 }
0x127d   :  { %v3652_v4 = vadd.f32 %v1047_v3, %v1032_v2 }
0x127e   :  { %v1049_v6 = vpop.permute.xlu1 %1048 }
0x127f   :  { %3024 = vtanh.f32 %v3652_v4  ;;  %v3656_v7 = vadd.f32 %v1049_v6, %v1033_v5 }
0x1281   :  { %3026 = vtanh.f32 %v3656_v7 }
0x128c   :  { %v3025_v8 = vpop.eup %3024 }
0x128d   :  { %1058 = vrot.lane.b32.xlu0 %v3025_v8, %s3194_s16 }
0x128e   :  { %v3027_v9 = vpop.eup %3026 }
0x128f   :  { %1060 = vrot.lane.b32.xlu1 %v3027_v9, %s3194_s16 }
0x12ff   :  { %v1059_v11 = vpop.permute.xlu0 %1058 }
0x1300   :  { %v1064_v13 = vmul.f32 %v3021_v43, %v1059_v11 }
0x1301   :  { %v1061_v37 = vpop.permute.xlu1 %1060 }
0x1302   :  { %v1065_v12 = vmul.f32 %v3023_v47, %v1061_v37 }
0x1304   :  { %v1074_v14 = vrot.slane %v1065_v12, 7  ;;  %v3787_v12 = vld [vmem:[%s4154_s3 + $0x18] sm:$0xff] }
0x1306   :  { %v1075_v40 = vsel %vm229_vm4, %v1074_v14, %v1064_v13  ;;  %v3796_v13 = vld [vmem:[%s4154_s3 + $0x10] sm:$0xff]  ;;  %v3803_v14 = vld [vmem:[%s4154_s3 + $0x8] sm:$0xff] }
0x1307   :  { %1076 = vrot.lane.b32.xlu1 %v1075_v40, %s3193_s18  ;;  %v3810_v40 = vld [vmem:[%s4154_s3] sm:$0xff] }
0x1379   :  { %v3663_v15 = vpop.permute.xlu1 %1076 }
0x137a   :  { %2831 = vmatmul.mubr.msk.f32.vlgmr.msra.gmra.mxu0 %vm81_vm1, %v3663_v15 }
0x137b   :  { %1237 = vmatpush1.msra.mxu0 %v3670_v16  ;;  %1284 = vmatprep.mubr.f32.mxu0 %v3192_v0 }
0x137c   :  { %1238 = vmatprep.subr.mxu0 %v3677_v17 }
0x137d   :  { %1239 = vmatpush1.msra.mxu0 %v3683_v58 }
0x137e   :  { %1240 = vmatprep.subr.mxu0 %v3689_v59 }
0x137f   :  { %1241 = vmatpush1.msra.mxu0 %v3695_v60 }
0x1380   :  { %1242 = vmatprep.subr.mxu0 %v3701_v57 }
0x1381   :  { %1243 = vmatpush1.msra.mxu0 %v3707_v50 }
0x1382   :  { %1244 = vmatprep.subr.mxu0 %v3713_v62 }
0x1383   :  { %1245 = vmatpush1.msra.mxu0 %v3719_v61 }
0x1384   :  { %1246 = vmatprep.subr.mxu0 %v3725_v10 }
0x1385   :  { %1247 = vmatpush1.msra.mxu0 %v3731_v18 }
0x1386   :  { %1248 = vmatprep.subr.mxu0 %v3737_v19 }
0x1387   :  { %1249 = vmatpush1.msra.mxu0 %v3743_v20 }
0x1388   :  { %1250 = vmatprep.subr.mxu0 %v3749_v21 }
0x1389   :  { %1251 = vmatpush1.msra.mxu0 %v3755_v22 }
0x138a   :  { %2844 = vmatprep.subr.mxu0 %v3192_v0 }
0x143a   :  { %v1146_v28 = vpop.f32.mrf.mxu0 }
0x143b   :  { %v1151_v30 = vrot.slane %v1146_v28, 1  ;;  %v1154_v48 = vadd.f32 %v1146_v28, %v1070_v42 }
0x143c   :  { %v2832_v31 = vpop.f32.mrf.mxu0 }
0x143d   :  { %v1155_v32 = vadd.f32 %v1151_v30, %v1071_v29  ;;  %3028 = vtanh.f32 %v1154_v48  ;;  %v2701_v34 = vmul.f32 -1.442695, %v1154_v48 }
0x143f   :  { %3030 = vtanh.f32 %v1155_v32  ;;  %v2702_v52 = vmul.f32 -1.442695, %v1155_v32 }
0x1440   :  { %3032 = vpow2.f32 %v2701_v34 }
0x1441   :  { %3034 = vpow2.f32 %v2702_v52 }
0x144a   :  { %v3029_v51 = vpop.eup %3028 }
0x144b   :  { %1174 = vrot.lane.b32.xlu1 %v3029_v51, %s3194_s16 }
0x144c   :  { %v3031_v33 = vpop.eup %3030 }
0x144d   :  { %1176 = vrot.lane.b32.xlu0 %v3031_v33, %s3194_s16  ;;  %v3033_v35 = vpop.eup %3032 }
0x144e   :  { %v3035_v36 = vpop.eup %3034  ;;  %v1162_v53 = vadd.f32 1.0, %v3033_v35 }
0x144f   :  { %v1163_v55 = vadd.f32 1.0, %v3035_v36 }
0x1450   :  { %3036 = vrcp.f32 %v1162_v53 }
0x1451   :  { %3038 = vrcp.f32 %v1163_v55 }
0x145d   :  { %v3037_v1 = vpop.eup %3036 }
0x145e   :  { %v3039_v41 = vpop.eup %3038  ;;  %v1170_v43 = vmul.f32 %v3037_v1, %v3617_v63 }
0x145f   :  { %v1171_v47 = vmul.f32 %v3039_v41, %v3621_v24 }
0x14bd   :  { %v1175_v38 = vpop.permute.xlu1 %1174 }
0x14be   :  { %v1180_v39 = vmul.f32 %v3037_v1, %v1175_v38 }
0x14bf   :  { %v1177_v44 = vpop.permute.xlu0 %1176 }
0x14c0   :  { %1184 = vrot.lane.b32.xlu1 %v1180_v39, %s3193_s18  ;;  %v1181_v45 = vmul.f32 %v3039_v41, %v1177_v44 }
0x14c2   :  { %1186 = vrot.lane.b32.xlu0 %v1181_v45, %s3193_s18 }
0x1532   :  { %v1185_v54 = vpop.permute.xlu1 %1184 }
0x1533   :  { %v3770_v56 = vadd.f32 %v1185_v54, %v1170_v43 }
0x1534   :  { %v1187_v46 = vpop.permute.xlu0 %1186 }
0x1535   :  { %3040 = vtanh.f32 %v3770_v56  ;;  %v3774_v49 = vadd.f32 %v1187_v46, %v1171_v47 }
0x1537   :  { %3042 = vtanh.f32 %v3774_v49 }
0x1542   :  { %v3041_v2 = vpop.eup %3040 }
0x1543   :  { %1196 = vrot.lane.b32.xlu1 %v3041_v2, %s3194_s16 }
0x1544   :  { %v3043_v3 = vpop.eup %3042 }
0x1545   :  { %1198 = vrot.lane.b32.xlu0 %v3043_v3, %s3194_s16 }
0x15b5   :  { %v1197_v5 = vpop.permute.xlu1 %1196 }
0x15b6   :  { %v1202_v8 = vmul.f32 %v3037_v1, %v1197_v5 }
0x15b7   :  { %v1199_v63 = vpop.permute.xlu0 %1198 }
0x15b8   :  { %v1203_v6 = vmul.f32 %v3039_v41, %v1199_v63 }
0x15ba   :  { %v1211_v9 = vrot.slane %v1203_v6, 7 }
0x15bc   :  { %v1212_v24 = vsel %vm229_vm4, %v1211_v9, %v1202_v8  ;;  %v1206_v8 = vld [vmem:[%s4155_s1 + $0x4] sm:$0x1] }
0x15bd   :  { %1213 = vrot.lane.b32.xlu0 %v1212_v24, %s3194_s16  ;;  %v1207_v24 = vld [vmem:[%s4155_s1 + $0xc] sm:$0x1] }
0x162f   :  { %v1214_v11 = vpop.permute.xlu0 %1213 }
0x1630   :  { %v1216_v37 = vsel %vm81_vm1, %v3663_v15, %v1214_v11  ;;  %v3816_v15 = vld [vmem:[%s4152_s2 + $0x78] sm:$0xff] }
0x1631   :  { %2703 = vmatmul.mubr.msk.f32.vlgmr.msra.gmra.mxu0 %vm83_vm2, %v1216_v37 }
0x1632   :  { %2845 = vmatpush3.msra.mxu0 %v3787_v12  ;;  %2852 = vmatprep.mubr.msk.f32.mxu0 %vm3195_vm3, %v3192_v0 }
0x1633   :  { %2846 = vmatprep.subr.mxu0 %v3192_v0 }
0x1634   :  { %2847 = vmatpush3.msra.mxu0 %v3796_v13 }
0x1635   :  { %2848 = vmatprep.subr.mxu0 %v3192_v0 }
0x1636   :  { %2849 = vmatpush3.msra.mxu0 %v3803_v14 }
0x1637   :  { %2850 = vmatprep.subr.mxu0 %v3192_v0 }
0x1638   :  { %2851 = vmatpush3.msra.mxu0 %v3810_v40 }
0x1639   :  { %1794 = vmatprep.subr.mxu0 %v3816_v15 }
0x16f1   :  { %v1286_v26 = vpop.f32.mrf.mxu0 }
0x16f2   :  { %v1292_v27 = vrot.slane %v1286_v26, 1  ;;  %v1295_v42 = vadd.f32 %v1286_v26, %v1204_v23 }
0x16f3   :  { %v1288_v6 = vpop.f32.mrf.mxu0 }
0x16f4   :  { %v1296_v28 = vadd.f32 %v1292_v27, %v1205_v25  ;;  %3044 = vtanh.f32 %v1295_v42  ;;  %v2704_v48 = vmul.f32 -1.442695, %v1295_v42  ;;  %v1346_v9 = vrot.slane %v1288_v6, 1 }
0x16f5   :  { %v1349_v11 = vadd.f32 %v1288_v6, %v1206_v8  ;;  %v1484_v8 = vld [vmem:[%s4153_s0 + $0xd] sm:$0x1] }
0x16f6   :  { %3046 = vtanh.f32 %v1296_v28  ;;  %v2705_v31 = vmul.f32 -1.442695, %v1296_v28  ;;  %v1350_v23 = vadd.f32 %v1346_v9, %v1207_v24 }
0x16f7   :  { %3048 = vpow2.f32 %v2704_v48 }
0x16f8   :  { %3050 = vpow2.f32 %v2705_v31 }
0x1701   :  { %v3045_v29 = vpop.eup %3044 }
0x1702   :  { %1315 = vrot.lane.b32.xlu0 %v3045_v29, %s3194_s16 }
0x1703   :  { %v3047_v30 = vpop.eup %3046 }
0x1704   :  { %1317 = vrot.lane.b32.xlu1 %v3047_v30, %s3194_s16  ;;  %v3049_v32 = vpop.eup %3048 }
0x1705   :  { %v3051_v51 = vpop.eup %3050  ;;  %v1303_v33 = vadd.f32 1.0, %v3049_v32 }
0x1706   :  { %v1304_v34 = vadd.f32 1.0, %v3051_v51 }
0x1707   :  { %3052 = vrcp.f32 %v1303_v33 }
0x1708   :  { %3054 = vrcp.f32 %v1304_v34 }
0x1714   :  { %v3053_v52 = vpop.eup %3052 }
0x1715   :  { %v3055_v53 = vpop.eup %3054  ;;  %v1311_v38 = vmul.f32 %v3053_v52, %v3652_v4 }
0x1716   :  { %v1312_v44 = vmul.f32 %v3055_v53, %v3656_v7 }
0x1774   :  { %v1316_v35 = vpop.permute.xlu0 %1315 }
0x1775   :  { %v1321_v36 = vmul.f32 %v3053_v52, %v1316_v35 }
0x1776   :  { %v1318_v55 = vpop.permute.xlu1 %1317 }
0x1777   :  { %1325 = vrot.lane.b32.xlu0 %v1321_v36, %s3193_s18  ;;  %v1322_v1 = vmul.f32 %v3055_v53, %v1318_v55 }
0x1779   :  { %1327 = vrot.lane.b32.xlu1 %v1322_v1, %s3193_s18 }
0x17e9   :  { %v1326_v39 = vpop.permute.xlu0 %1325 }
0x17ea   :  { %v3830_v41 = vadd.f32 %v1326_v39, %v1311_v38 }
0x17eb   :  { %v1328_v45 = vpop.permute.xlu1 %1327 }
0x17ec   :  { %3056 = vtanh.f32 %v3830_v41  ;;  %v3834_v43 = vadd.f32 %v1328_v45, %v1312_v44 }
0x17ee   :  { %3058 = vtanh.f32 %v3834_v43 }
0x17f9   :  { %v3057_v54 = vpop.eup %3056 }
0x17fa   :  { %1337 = vrot.lane.b32.xlu0 %v3057_v54, %s3194_s16 }
0x17fb   :  { %v3059_v47 = vpop.eup %3058 }
0x17fc   :  { %1339 = vrot.lane.b32.xlu1 %v3059_v47, %s3194_s16 }
0x186c   :  { %v1338_v46 = vpop.permute.xlu0 %1337 }
0x186d   :  { %v1343_v3 = vmul.f32 %v3053_v52, %v1338_v46 }
0x186e   :  { %v1340_v4 = vpop.permute.xlu1 %1339 }
0x186f   :  { %v1344_v2 = vmul.f32 %v3055_v53, %v1340_v4 }
0x1871   :  { %v1353_v5 = vrot.slane %v1344_v2, 7 }
0x1873   :  { %v1354_v7 = vsel %vm229_vm4, %v1353_v5, %v1343_v3 }
0x1874   :  { %1355 = vrot.lane.b32.xlu1 %v1354_v7, %s3193_s18 }
0x18e6   :  { %v3841_v63 = vpop.permute.xlu1 %1355 }
0x18e7   :  { %2842 = vmatmul.mubr.msk.f32.vlgmr.msra.gmra.mxu1 %vm81_vm1, %v3841_v63 }
0x18e8   :  { %1516 = vmatpush1.msra.mxu1 %v3670_v16  ;;  %1563 = vmatprep.mubr.f32.mxu1 %v3192_v0 }
0x18e9   :  { %1517 = vmatprep.subr.mxu1 %v3677_v17 }
0x18ea   :  { %1518 = vmatpush1.msra.mxu1 %v3683_v58 }
0x18eb   :  { %1519 = vmatprep.subr.mxu1 %v3689_v59 }
0x18ec   :  { %1520 = vmatpush1.msra.mxu1 %v3695_v60 }
0x18ed   :  { %1521 = vmatprep.subr.mxu1 %v3701_v57 }
0x18ee   :  { %1522 = vmatpush1.msra.mxu1 %v3707_v50 }
0x18ef   :  { %1523 = vmatprep.subr.mxu1 %v3713_v62 }
0x18f0   :  { %1524 = vmatpush1.msra.mxu1 %v3719_v61 }
0x18f1   :  { %1525 = vmatprep.subr.mxu1 %v3725_v10 }
0x18f2   :  { %1526 = vmatpush1.msra.mxu1 %v3731_v18 }
0x18f3   :  { %1527 = vmatprep.subr.mxu1 %v3737_v19 }
0x18f4   :  { %1528 = vmatpush1.msra.mxu1 %v3743_v20 }
0x18f5   :  { %1529 = vmatprep.subr.mxu1 %v3749_v21 }
0x18f6   :  { %1530 = vmatpush1.msra.mxu1 %v3755_v22 }
0x18f7   :  { %2855 = vmatprep.subr.mxu1 %v3192_v0 }
0x19a7   :  { %v1425_v37 = vpop.f32.mrf.mxu1 }
0x19a8   :  { %v1430_v25 = vrot.slane %v1425_v37, 1  ;;  %v1433_v26 = vadd.f32 %v1425_v37, %v1349_v11 }
0x19a9   :  { %v2843_v27 = vpop.f32.mrf.mxu1 }
0x19aa   :  { %v1434_v42 = vadd.f32 %v1430_v25, %v1350_v23  ;;  %3060 = vtanh.f32 %v1433_v26  ;;  %v2707_v30 = vmul.f32 -1.442695, %v1433_v26 }
0x19ac   :  { %3062 = vtanh.f32 %v1434_v42  ;;  %v2708_v48 = vmul.f32 -1.442695, %v1434_v42 }
0x19ad   :  { %3064 = vpow2.f32 %v2707_v30 }
0x19ae   :  { %3066 = vpow2.f32 %v2708_v48 }
0x19b7   :  { %v3061_v28 = vpop.eup %3060 }
0x19b8   :  { %1453 = vrot.lane.b32.xlu1 %v3061_v28, %s3194_s16 }
0x19b9   :  { %v3063_v29 = vpop.eup %3062 }
0x19ba   :  { %1455 = vrot.lane.b32.xlu0 %v3063_v29, %s3194_s16  ;;  %v3065_v31 = vpop.eup %3064 }
0x19bb   :  { %v3067_v32 = vpop.eup %3066  ;;  %v1441_v51 = vadd.f32 1.0, %v3065_v31 }
0x19bc   :  { %v1442_v33 = vadd.f32 1.0, %v3067_v32 }
0x19bd   :  { %3068 = vrcp.f32 %v1441_v51 }
0x19be   :  { %3070 = vrcp.f32 %v1442_v33 }
0x19ca   :  { %v3069_v34 = vpop.eup %3068 }
0x19cb   :  { %v3071_v36 = vpop.eup %3070  ;;  %v1449_v1 = vmul.f32 %v3069_v34, %v3770_v56 }
0x19cc   :  { %v1450_v44 = vmul.f32 %v3071_v36, %v3774_v49 }
0x1a2a   :  { %v1454_v52 = vpop.permute.xlu1 %1453 }
0x1a2b   :  { %v1459_v35 = vmul.f32 %v3069_v34, %v1454_v52 }
0x1a2c   :  { %v1456_v53 = vpop.permute.xlu0 %1455 }
0x1a2d   :  { %1463 = vrot.lane.b32.xlu1 %v1459_v35, %s3193_s18  ;;  %v1460_v55 = vmul.f32 %v3071_v36, %v1456_v53 }
0x1a2f   :  { %1465 = vrot.lane.b32.xlu0 %v1460_v55, %s3193_s18 }
0x1a9f   :  { %v1464_v38 = vpop.permute.xlu1 %1463 }
0x1aa0   :  { %v3873_v39 = vadd.f32 %v1464_v38, %v1449_v1 }
0x1aa1   :  { %v1466_v45 = vpop.permute.xlu0 %1465 }
0x1aa2   :  { %3072 = vtanh.f32 %v3873_v39  ;;  %v3877_v54 = vadd.f32 %v1466_v45, %v1450_v44 }
0x1aa4   :  { %3074 = vtanh.f32 %v3877_v54 }
0x1aaf   :  { %v3073_v47 = vpop.eup %3072 }
0x1ab0   :  { %1475 = vrot.lane.b32.xlu1 %v3073_v47, %s3194_s16 }
0x1ab1   :  { %v3075_v46 = vpop.eup %3074 }
0x1ab2   :  { %1477 = vrot.lane.b32.xlu0 %v3075_v46, %s3194_s16 }
0x1b22   :  { %v1476_v4 = vpop.permute.xlu1 %1475 }
0x1b23   :  { %v1481_v3 = vmul.f32 %v3069_v34, %v1476_v4 }
0x1b24   :  { %v1478_v56 = vpop.permute.xlu0 %1477 }
0x1b25   :  { %v1482_v2 = vmul.f32 %v3071_v36, %v1478_v56 }
0x1b27   :  { %v1490_v5 = vrot.slane %v1482_v2, 7  ;;  %v1485_v2 = vld [vmem:[%s4155_s1 + $0x5] sm:$0x1] }
0x1b29   :  { %v1491_v49 = vsel %vm229_vm4, %v1490_v5, %v1481_v3  ;;  %v1486_v5 = vld [vmem:[%s4155_s1 + $0xd] sm:$0x1] }
0x1b2a   :  { %1492 = vrot.lane.b32.xlu0 %v1491_v49, %s3194_s16 }
0x1b9c   :  { %v1493_v7 = vpop.permute.xlu0 %1492 }
0x1b9d   :  { %v1495_v6 = vsel %vm81_vm1, %v3841_v63, %v1493_v7  ;;  %v1483_v63 = vld [vmem:[%s4153_s0 + $0x5] sm:$0x1] }
0x1b9e   :  { %2709 = vmatmul.mubr.msk.f32.vlgmr.msra.gmra.mxu1 %vm83_vm2, %v1495_v6 }
0x1b9f   :  { %2856 = vmatpush3.msra.mxu1 %v3787_v12  ;;  %2863 = vmatprep.mubr.msk.f32.mxu1 %vm3195_vm3, %v3192_v0 }
0x1ba0   :  { %2857 = vmatprep.subr.mxu1 %v3192_v0 }
0x1ba1   :  { %2858 = vmatpush3.msra.mxu1 %v3796_v13 }
0x1ba2   :  { %2859 = vmatprep.subr.mxu1 %v3192_v0 }
0x1ba3   :  { %2860 = vmatpush3.msra.mxu1 %v3803_v14 }
0x1ba4   :  { %2861 = vmatprep.subr.mxu1 %v3192_v0 }
0x1ba5   :  { %2862 = vmatpush3.msra.mxu1 %v3810_v40 }
0x1ba6   :  { %2073 = vmatprep.subr.mxu1 %v3816_v15 }
0x1c5e   :  { %v1565_v9 = vpop.f32.mrf.mxu1 }
0x1c5f   :  { %v1571_v24 = vrot.slane %v1565_v9, 1  ;;  %v1574_v11 = vadd.f32 %v1565_v9, %v1483_v63 }
0x1c60   :  { %v1567_v56 = vpop.f32.mrf.mxu1 }
0x1c61   :  { %v1575_v37 = vadd.f32 %v1571_v24, %v1484_v8  ;;  %3076 = vtanh.f32 %v1574_v11  ;;  %v2710_v15 = vmul.f32 -1.442695, %v1574_v11  ;;  %v1625_v3 = vrot.slane %v1567_v56, 1 }
0x1c62   :  { %v1628_v49 = vadd.f32 %v1567_v56, %v1485_v2 }
0x1c63   :  { %3078 = vtanh.f32 %v1575_v37  ;;  %v2711_v26 = vmul.f32 -1.442695, %v1575_v37  ;;  %v1629_v6 = vadd.f32 %v1625_v3, %v1486_v5 }
0x1c64   :  { %3080 = vpow2.f32 %v2710_v15 }
0x1c65   :  { %3082 = vpow2.f32 %v2711_v26 }
0x1c6e   :  { %v3077_v23 = vpop.eup %3076 }
0x1c6f   :  { %1594 = vrot.lane.b32.xlu0 %v3077_v23, %s3194_s16 }
0x1c70   :  { %v3079_v25 = vpop.eup %3078 }
0x1c71   :  { %1596 = vrot.lane.b32.xlu1 %v3079_v25, %s3194_s16  ;;  %v3081_v27 = vpop.eup %3080 }
0x1c72   :  { %v3083_v42 = vpop.eup %3082  ;;  %v1582_v28 = vadd.f32 1.0, %v3081_v27 }
0x1c73   :  { %v1583_v29 = vadd.f32 1.0, %v3083_v42 }
0x1c74   :  { %3084 = vrcp.f32 %v1582_v28 }
0x1c75   :  { %3086 = vrcp.f32 %v1583_v29 }
0x1c81   :  { %v3085_v30 = vpop.eup %3084 }
0x1c82   :  { %v3087_v32 = vpop.eup %3086  ;;  %v1590_v34 = vmul.f32 %v3085_v30, %v3830_v41 }
0x1c83   :  { %v1591_v36 = vmul.f32 %v3087_v32, %v3834_v43 }
0x1ce1   :  { %v1595_v48 = vpop.permute.xlu0 %1594 }
0x1ce2   :  { %v1600_v31 = vmul.f32 %v3085_v30, %v1595_v48 }
0x1ce3   :  { %v1597_v51 = vpop.permute.xlu1 %1596 }
0x1ce4   :  { %1604 = vrot.lane.b32.xlu0 %v1600_v31, %s3193_s18  ;;  %v1601_v33 = vmul.f32 %v3087_v32, %v1597_v51 }
0x1ce6   :  { %1606 = vrot.lane.b32.xlu1 %v1601_v33, %s3193_s18 }
0x1d56   :  { %v1605_v52 = vpop.permute.xlu0 %1604 }
0x1d57   :  { %v3908_v35 = vadd.f32 %v1605_v52, %v1590_v34 }
0x1d58   :  { %v1607_v53 = vpop.permute.xlu1 %1606 }
0x1d59   :  { %3088 = vtanh.f32 %v3908_v35  ;;  %v3912_v55 = vadd.f32 %v1607_v53, %v1591_v36 }
0x1d5b   :  { %3090 = vtanh.f32 %v3912_v55 }
0x1d66   :  { %v3089_v1 = vpop.eup %3088 }
0x1d67   :  { %1616 = vrot.lane.b32.xlu0 %v3089_v1, %s3194_s16 }
0x1d68   :  { %v3091_v38 = vpop.eup %3090 }
0x1d69   :  { %1618 = vrot.lane.b32.xlu1 %v3091_v38, %s3194_s16 }
0x1dd9   :  { %v1617_v44 = vpop.permute.xlu0 %1616 }
0x1dda   :  { %v1622_v47 = vmul.f32 %v3085_v30, %v1617_v44 }
0x1ddb   :  { %v1619_v41 = vpop.permute.xlu1 %1618 }
0x1ddc   :  { %v1623_v45 = vmul.f32 %v3087_v32, %v1619_v41 }
0x1dde   :  { %v1632_v46 = vrot.slane %v1623_v45, 7 }
0x1de0   :  { %v1633_v43 = vsel %vm229_vm4, %v1632_v46, %v1622_v47 }
0x1de1   :  { %1634 = vrot.lane.b32.xlu1 %v1633_v43, %s3193_s18 }
0x1e53   :  { %v3919_v4 = vpop.permute.xlu1 %1634 }
0x1e54   :  { %2853 = vmatmul.mubr.msk.f32.vlgmr.msra.gmra.mxu0 %vm81_vm1, %v3919_v4 }
0x1e55   :  { %1795 = vmatpush1.msra.mxu0 %v3670_v16  ;;  %1842 = vmatprep.mubr.f32.mxu0 %v3192_v0 }
0x1e56   :  { %1796 = vmatprep.subr.mxu0 %v3677_v17 }
0x1e57   :  { %1797 = vmatpush1.msra.mxu0 %v3683_v58 }
0x1e58   :  { %1798 = vmatprep.subr.mxu0 %v3689_v59 }
0x1e59   :  { %1799 = vmatpush1.msra.mxu0 %v3695_v60 }
0x1e5a   :  { %1800 = vmatprep.subr.mxu0 %v3701_v57 }
0x1e5b   :  { %1801 = vmatpush1.msra.mxu0 %v3707_v50 }
0x1e5c   :  { %1802 = vmatprep.subr.mxu0 %v3713_v62 }
0x1e5d   :  { %1803 = vmatpush1.msra.mxu0 %v3719_v61 }
0x1e5e   :  { %1804 = vmatprep.subr.mxu0 %v3725_v10 }
0x1e5f   :  { %1805 = vmatpush1.msra.mxu0 %v3731_v18 }
0x1e60   :  { %1806 = vmatprep.subr.mxu0 %v3737_v19 }
0x1e61   :  { %1807 = vmatpush1.msra.mxu0 %v3743_v20 }
0x1e62   :  { %1808 = vmatprep.subr.mxu0 %v3749_v21 }
0x1e63   :  { %1809 = vmatpush1.msra.mxu0 %v3755_v22 }
0x1e64   :  { %2866 = vmatprep.subr.mxu0 %v3192_v0 }
0x1f14   :  { %v1704_v7 = vpop.f32.mrf.mxu0 }
0x1f15   :  { %v1709_v63 = vrot.slane %v1704_v7, 1  ;;  %v1712_v8 = vadd.f32 %v1704_v7, %v1628_v49 }
0x1f16   :  { %v2854_v9 = vpop.f32.mrf.mxu0 }
0x1f17   :  { %v1713_v24 = vadd.f32 %v1709_v63, %v1629_v6  ;;  %3092 = vtanh.f32 %v1712_v8  ;;  %v2713_v23 = vmul.f32 -1.442695, %v1712_v8 }
0x1f19   :  { %3094 = vtanh.f32 %v1713_v24  ;;  %v2714_v25 = vmul.f32 -1.442695, %v1713_v24 }
0x1f1a   :  { %3096 = vpow2.f32 %v2713_v23 }
0x1f1b   :  { %3098 = vpow2.f32 %v2714_v25 }
0x1f24   :  { %v3093_v11 = vpop.eup %3092 }
0x1f25   :  { %1732 = vrot.lane.b32.xlu1 %v3093_v11, %s3194_s16 }
0x1f26   :  { %v3095_v37 = vpop.eup %3094 }
0x1f27   :  { %1734 = vrot.lane.b32.xlu0 %v3095_v37, %s3194_s16  ;;  %v3097_v15 = vpop.eup %3096 }
0x1f28   :  { %v3099_v26 = vpop.eup %3098  ;;  %v1720_v27 = vadd.f32 1.0, %v3097_v15 }
0x1f29   :  { %v1721_v42 = vadd.f32 1.0, %v3099_v26 }
0x1f2a   :  { %3100 = vrcp.f32 %v1720_v27 }
0x1f2b   :  { %3102 = vrcp.f32 %v1721_v42 }
0x1f37   :  { %v3101_v28 = vpop.eup %3100 }
0x1f38   :  { %v3103_v48 = vpop.eup %3102  ;;  %v1728_v51 = vmul.f32 %v3101_v28, %v3873_v39 }
0x1f39   :  { %v1729_v52 = vmul.f32 %v3103_v48, %v3877_v54 }
0x1f97   :  { %v1733_v29 = vpop.permute.xlu1 %1732 }
0x1f98   :  { %v1738_v30 = vmul.f32 %v3101_v28, %v1733_v29 }
0x1f99   :  { %v1735_v31 = vpop.permute.xlu0 %1734 }
0x1f9a   :  { %1742 = vrot.lane.b32.xlu1 %v1738_v30, %s3193_s18  ;;  %v1739_v32 = vmul.f32 %v3103_v48, %v1735_v31 }
0x1f9c   :  { %1744 = vrot.lane.b32.xlu0 %v1739_v32, %s3193_s18 }
0x200c   :  { %v1743_v33 = vpop.permute.xlu1 %1742 }
0x200d   :  { %v3951_v34 = vadd.f32 %v1743_v33, %v1728_v51 }
0x200e   :  { %v1745_v36 = vpop.permute.xlu0 %1744 }
0x200f   :  { %3104 = vtanh.f32 %v3951_v34  ;;  %v3955_v53 = vadd.f32 %v1745_v36, %v1729_v52 }
0x2011   :  { %3106 = vtanh.f32 %v3955_v53 }
0x201c   :  { %v3105_v1 = vpop.eup %3104 }
0x201d   :  { %1754 = vrot.lane.b32.xlu1 %v3105_v1, %s3194_s16 }
0x201e   :  { %v3107_v38 = vpop.eup %3106 }
0x201f   :  { %1756 = vrot.lane.b32.xlu0 %v3107_v38, %s3194_s16 }
0x208f   :  { %v1755_v44 = vpop.permute.xlu1 %1754 }
0x2090   :  { %v1760_v45 = vmul.f32 %v3101_v28, %v1755_v44 }
0x2091   :  { %v1757_v39 = vpop.permute.xlu0 %1756 }
0x2092   :  { %v1761_v41 = vmul.f32 %v3103_v48, %v1757_v39 }
0x2094   :  { %v1769_v47 = vrot.slane %v1761_v41, 7 }
0x2096   :  { %v1770_v54 = vsel %vm229_vm4, %v1769_v47, %v1760_v45 }
0x2097   :  { %1771 = vrot.lane.b32.xlu0 %v1770_v54, %s3194_s16 }
0x2109   :  { %v1772_v46 = vpop.permute.xlu0 %1771 }
0x210a   :  { %v1774_v43 = vsel %vm81_vm1, %v3919_v4, %v1772_v46  ;;  %v1763_v4 = vld [vmem:[%s4153_s0 + $0xe] sm:$0x1] }
0x210b   :  { %2715 = vmatmul.mubr.msk.f32.vlgmr.msra.gmra.mxu0 %vm83_vm2, %v1774_v43 }
0x210c   :  { %2867 = vmatpush3.msra.mxu0 %v3787_v12  ;;  %2874 = vmatprep.mubr.msk.f32.mxu0 %vm3195_vm3, %v3192_v0  ;;  %v1762_v12 = vld [vmem:[%s4153_s0 + $0x6] sm:$0x1] }
0x210d   :  { %2868 = vmatprep.subr.mxu0 %v3192_v0 }
0x210e   :  { %2869 = vmatpush3.msra.mxu0 %v3796_v13 }
0x210f   :  { %2870 = vmatprep.subr.mxu0 %v3192_v0 }
0x2110   :  { %2871 = vmatpush3.msra.mxu0 %v3803_v14 }
0x2111   :  { %2872 = vmatprep.subr.mxu0 %v3192_v0 }
0x2112   :  { %2873 = vmatpush3.msra.mxu0 %v3810_v40 }
0x2113   :  { %2877 = vmatprep.subr.mxu0 %v3192_v0 }
0x21cb   :  { %v1844_v56 = vpop.f32.mrf.mxu0 }
0x21cc   :  { %v1850_v13 = vrot.slane %v1844_v56, 1  ;;  %v1853_v2 = vadd.f32 %v1844_v56, %v1762_v12 }
0x21ce   :  { %v1854_v3 = vadd.f32 %v1850_v13, %v1763_v4  ;;  %3108 = vtanh.f32 %v1853_v2  ;;  %v2716_v5 = vmul.f32 -1.442695, %v1853_v2 }
0x21d0   :  { %3110 = vtanh.f32 %v1854_v3  ;;  %v2717_v49 = vmul.f32 -1.442695, %v1854_v3 }
0x21d1   :  { %3112 = vpow2.f32 %v2716_v5 }
0x21d2   :  { %3114 = vpow2.f32 %v2717_v49 }
0x21db   :  { %v3109_v14 = vpop.eup %3108 }
0x21dc   :  { %1873 = vrot.lane.b32.xlu0 %v3109_v14, %s3194_s16 }
0x21dd   :  { %v3111_v40 = vpop.eup %3110 }
0x21de   :  { %1875 = vrot.lane.b32.xlu1 %v3111_v40, %s3194_s16  ;;  %v3113_v7 = vpop.eup %3112 }
0x21df   :  { %v3115_v6 = vpop.eup %3114  ;;  %v1861_v63 = vadd.f32 1.0, %v3113_v7 }
0x21e0   :  { %v1862_v8 = vadd.f32 1.0, %v3115_v6 }
0x21e1   :  { %3116 = vrcp.f32 %v1861_v63 }
0x21e2   :  { %3118 = vrcp.f32 %v1862_v8  ;;  %v2041_v8 = vld [vmem:[%s4153_s0 + $0x7] sm:$0x1] }
0x21ee   :  { %v3117_v9 = vpop.eup %3116 }
0x21ef   :  { %v3119_v37 = vpop.eup %3118  ;;  %v1869_v15 = vmul.f32 %v3117_v9, %v3908_v35 }
0x21f0   :  { %v1870_v42 = vmul.f32 %v3119_v37, %v3912_v55 }
0x224e   :  { %v1874_v24 = vpop.permute.xlu0 %1873 }
0x224f   :  { %v1879_v11 = vmul.f32 %v3117_v9, %v1874_v24 }
0x2250   :  { %v1876_v23 = vpop.permute.xlu1 %1875 }
0x2251   :  { %1883 = vrot.lane.b32.xlu0 %v1879_v11, %s3193_s18  ;;  %v1880_v25 = vmul.f32 %v3119_v37, %v1876_v23 }
0x2253   :  { %1885 = vrot.lane.b32.xlu1 %v1880_v25, %s3193_s18 }
0x22c3   :  { %v1884_v26 = vpop.permute.xlu0 %1883 }
0x22c4   :  { %v3986_v27 = vadd.f32 %v1884_v26, %v1869_v15 }
0x22c5   :  { %v1886_v28 = vpop.permute.xlu1 %1885 }
0x22c6   :  { %3120 = vtanh.f32 %v3986_v27  ;;  %v3990_v29 = vadd.f32 %v1886_v28, %v1870_v42 }
0x22c8   :  { %3122 = vtanh.f32 %v3990_v29 }
0x22d3   :  { %v3121_v30 = vpop.eup %3120 }
0x22d4   :  { %1895 = vrot.lane.b32.xlu0 %v3121_v30, %s3194_s16 }
0x22d5   :  { %v3123_v48 = vpop.eup %3122 }
0x22d6   :  { %1897 = vrot.lane.b32.xlu1 %v3123_v48, %s3194_s16 }
0x2346   :  { %v1896_v31 = vpop.permute.xlu0 %1895 }
0x2347   :  { %v1901_v51 = vmul.f32 %v3117_v9, %v1896_v31  ;;  %v2042_v9 = vld [vmem:[%s4153_s0 + $0xf] sm:$0x1] }
0x2348   :  { %v1898_v35 = vpop.permute.xlu1 %1897 }
0x2349   :  { %v1902_v32 = vmul.f32 %v3119_v37, %v1898_v35 }
0x234b   :  { %v1911_v33 = vrot.slane %v1902_v32, 7 }
0x234d   :  { %v1912_v55 = vsel %vm229_vm4, %v1911_v33, %v1901_v51 }
0x234e   :  { %1913 = vrot.lane.b32.xlu1 %v1912_v55, %s3193_s18 }
0x23c0   :  { %v3997_v52 = vpop.permute.xlu1 %1913 }
0x23c1   :  { %2864 = vmatmul.mubr.msk.f32.vlgmr.msra.gmra.mxu1 %vm81_vm1, %v3997_v52 }
0x23c2   :  { %2074 = vmatpush1.msra.mxu1 %v3670_v16  ;;  %2121 = vmatprep.mubr.f32.mxu1 %v3192_v0  ;;  %v1846_v16 = vpop.f32.mrf.mxu0 }
0x23c3   :  { %2075 = vmatprep.subr.mxu1 %v3677_v17  ;;  %v1764_v17 = vld [vmem:[%s4155_s1 + $0x6] sm:$0x1] }
0x23c4   :  { %2076 = vmatpush1.msra.mxu1 %v3683_v58  ;;  %v1904_v58 = vrot.slane %v1846_v16, 1 }
0x23c5   :  { %2077 = vmatprep.subr.mxu1 %v3689_v59  ;;  %v1765_v59 = vld [vmem:[%s4155_s1 + $0xe] sm:$0x1] }
0x23c6   :  { %2078 = vmatpush1.msra.mxu1 %v3695_v60  ;;  %v1907_v60 = vadd.f32 %v1846_v16, %v1764_v17 }
0x23c7   :  { %2079 = vmatprep.subr.mxu1 %v3701_v57 }
0x23c8   :  { %2080 = vmatpush1.msra.mxu1 %v3707_v50  ;;  %v1908_v50 = vadd.f32 %v1904_v58, %v1765_v59 }
0x23c9   :  { %2081 = vmatprep.subr.mxu1 %v3713_v62 }
0x23ca   :  { %2082 = vmatpush1.msra.mxu1 %v3719_v61 }
0x23cb   :  { %2083 = vmatprep.subr.mxu1 %v3725_v10 }
0x23cc   :  { %2084 = vmatpush1.msra.mxu1 %v3731_v18 }
0x23cd   :  { %2085 = vmatprep.subr.mxu1 %v3737_v19 }
0x23ce   :  { %2086 = vmatpush1.msra.mxu1 %v3743_v20 }
0x23cf   :  { %2087 = vmatprep.subr.mxu1 %v3749_v21 }
0x23d0   :  { %2088 = vmatpush1.msra.mxu1 %v3755_v22 }
0x23d1   :  { %2888 = vmatprep.subr.mxu1 %v3192_v0 }
0x2481   :  { %v1983_v57 = vpop.f32.mrf.mxu1 }
0x2482   :  { %v1988_v62 = vrot.slane %v1983_v57, 1  ;;  %v1991_v61 = vadd.f32 %v1983_v57, %v1907_v60 }
0x2483   :  { %v2865_v10 = vpop.f32.mrf.mxu1 }
0x2484   :  { %v1992_v18 = vadd.f32 %v1988_v62, %v1908_v50  ;;  %3124 = vtanh.f32 %v1991_v61  ;;  %v2719_v21 = vmul.f32 -1.442695, %v1991_v61 }
0x2486   :  { %3126 = vtanh.f32 %v1992_v18  ;;  %v2720_v22 = vmul.f32 -1.442695, %v1992_v18 }
0x2487   :  { %3128 = vpow2.f32 %v2719_v21 }
0x2488   :  { %3130 = vpow2.f32 %v2720_v22  ;;  %v2357_v22 = vld [vmem:[%s4156_s6 + $0x18] sm:$0xff] }
0x2491   :  { %v3125_v19 = vpop.eup %3124 }
0x2492   :  { %2011 = vrot.lane.b32.xlu1 %v3125_v19, %s3194_s16 }
0x2493   :  { %v3127_v20 = vpop.eup %3126 }
0x2494   :  { %2013 = vrot.lane.b32.xlu0 %v3127_v20, %s3194_s16  ;;  %v3129_v36 = vpop.eup %3128 }
0x2495   :  { %v3131_v1 = vpop.eup %3130  ;;  %v1999_v38 = vadd.f32 1.0, %v3129_v36 }
0x2496   :  { %v2000_v44 = vadd.f32 1.0, %v3131_v1  ;;  %v2356_v1 = vld [vmem:[%s4156_s6 + $0x10] sm:$0xff] }
0x2497   :  { %3132 = vrcp.f32 %v1999_v38  ;;  %v2355_v38 = vld [vmem:[%s4156_s6 + $0x8] sm:$0xff] }
0x2498   :  { %3134 = vrcp.f32 %v2000_v44  ;;  %v2354_v44 = vld [vmem:[%s4156_s6] sm:$0xff] }
0x24a4   :  { %v3133_v39 = vpop.eup %3132 }
0x24a5   :  { %v3135_v47 = vpop.eup %3134  ;;  %v2007_v43 = vmul.f32 %v3133_v39, %v3951_v34 }
0x24a6   :  { %v2008_v56 = vmul.f32 %v3135_v47, %v3955_v53 }
0x2504   :  { %v2012_v41 = vpop.permute.xlu1 %2011 }
0x2505   :  { %v2017_v45 = vmul.f32 %v3133_v39, %v2012_v41  ;;  %v2043_v41 = vld [vmem:[%s4155_s1 + $0x7] sm:$0x1] }
0x2506   :  { %v2014_v54 = vpop.permute.xlu0 %2013 }
0x2507   :  { %2021 = vrot.lane.b32.xlu1 %v2017_v45, %s3193_s18  ;;  %v2018_v46 = vmul.f32 %v3135_v47, %v2014_v54 }
0x2509   :  { %2023 = vrot.lane.b32.xlu0 %v2018_v46, %s3193_s18 }
0x2579   :  { %v2022_v12 = vpop.permute.xlu1 %2021 }
0x257a   :  { %v4029_v4 = vadd.f32 %v2022_v12, %v2007_v43 }
0x257b   :  { %v2024_v13 = vpop.permute.xlu0 %2023 }
0x257c   :  { %3136 = vtanh.f32 %v4029_v4  ;;  %v4033_v2 = vadd.f32 %v2024_v13, %v2008_v56 }
0x257e   :  { %3138 = vtanh.f32 %v4033_v2 }
0x2589   :  { %v3137_v3 = vpop.eup %3136 }
0x258a   :  { %2033 = vrot.lane.b32.xlu1 %v3137_v3, %s3194_s16 }
0x258b   :  { %v3139_v14 = vpop.eup %3138 }
0x258c   :  { %2035 = vrot.lane.b32.xlu0 %v3139_v14, %s3194_s16 }
0x25fc   :  { %v2034_v40 = vpop.permute.xlu1 %2033 }
0x25fd   :  { %v2039_v49 = vmul.f32 %v3133_v39, %v2034_v40 }
0x25fe   :  { %v2036_v34 = vpop.permute.xlu0 %2035 }
0x25ff   :  { %v2040_v5 = vmul.f32 %v3135_v47, %v2036_v34  ;;  %v2044_v47 = vld [vmem:[%s4155_s1 + $0xf] sm:$0x1] }
0x2601   :  { %v2048_v7 = vrot.slane %v2040_v5, 7 }
0x2603   :  { %v2049_v53 = vsel %vm229_vm4, %v2048_v7, %v2039_v49 }
0x2604   :  { %2050 = vrot.lane.b32.xlu0 %v2049_v53, %s3194_s16 }
0x2676   :  { %v2051_v6 = vpop.permute.xlu0 %2050 }
0x2677   :  { %v2053_v63 = vsel %vm81_vm1, %v3997_v52, %v2051_v6 }
0x2678   :  { %2721 = vmatmul.mubr.msk.f32.vlgmr.msra.gmra.mxu1 %vm83_vm2, %v2053_v63 }
0x2679   :  { %2896 = vmatprep.mubr.msk.f32.mxu1 %vm3195_vm3, %v3192_v0 }
0x2738   :  { %v2123_v24 = vpop.f32.mrf.mxu1 }
0x2739   :  { %v2129_v11 = vrot.slane %v2123_v24, 1  ;;  %v2132_v37 = vadd.f32 %v2123_v24, %v2041_v8 }
0x273a   :  { %v2125_v39 = vpop.f32.mrf.mxu1 }
0x273b   :  { %v2133_v23 = vadd.f32 %v2129_v11, %v2042_v9  ;;  %3140 = vtanh.f32 %v2132_v37  ;;  %v2722_v26 = vmul.f32 -1.442695, %v2132_v37  ;;  %v2183_v45 = vrot.slane %v2125_v39, 1 }
0x273c   :  { %v2186_v54 = vadd.f32 %v2125_v39, %v2043_v41 }
0x273d   :  { %3142 = vtanh.f32 %v2133_v23  ;;  %v2723_v42 = vmul.f32 -1.442695, %v2133_v23  ;;  %v2187_v43 = vadd.f32 %v2183_v45, %v2044_v47 }
0x273e   :  { %3144 = vpow2.f32 %v2722_v26 }
0x273f   :  { %3146 = vpow2.f32 %v2723_v42 }
0x2748   :  { %v3141_v25 = vpop.eup %3140 }
0x2749   :  { %2152 = vrot.lane.b32.xlu0 %v3141_v25, %s3194_s16 }
0x274a   :  { %v3143_v15 = vpop.eup %3142 }
0x274b   :  { %2154 = vrot.lane.b32.xlu1 %v3143_v15, %s3194_s16  ;;  %v3145_v28 = vpop.eup %3144 }
0x274c   :  { %v3147_v30 = vpop.eup %3146  ;;  %v2140_v48 = vadd.f32 1.0, %v3145_v28 }
0x274d   :  { %v2141_v31 = vadd.f32 1.0, %v3147_v30 }
0x274e   :  { %3148 = vrcp.f32 %v2140_v48 }
0x274f   :  { %3150 = vrcp.f32 %v2141_v31 }
0x275b   :  { %v3149_v35 = vpop.eup %3148 }
0x275c   :  { %v3151_v33 = vpop.eup %3150  ;;  %v2148_v16 = vmul.f32 %v3149_v35, %v3986_v27 }
0x275d   :  { %v2149_v59 = vmul.f32 %v3151_v33, %v3990_v29 }
0x27bb   :  { %v2153_v32 = vpop.permute.xlu0 %2152 }
0x27bc   :  { %v2158_v51 = vmul.f32 %v3149_v35, %v2153_v32 }
0x27bd   :  { %v2155_v55 = vpop.permute.xlu1 %2154 }
0x27be   :  { %2162 = vrot.lane.b32.xlu0 %v2158_v51, %s3193_s18  ;;  %v2159_v52 = vmul.f32 %v3151_v33, %v2155_v55  ;;  %v2353_v51 = vld [vmem:[%s4157_s5 + $0x18] sm:$0xff]  ;;  %v2351_v55 = vld [vmem:[%s4157_s5 + $0x8] sm:$0xff] }
0x27bf   :  { %2889 = vmatpush3.msra.mxu1 %v2353_v51 }
0x27c0   :  { %2164 = vrot.lane.b32.xlu1 %v2159_v52, %s3193_s18  ;;  %2890 = vmatprep.subr.mxu1 %v3192_v0  ;;  %v2350_v52 = vld [vmem:[%s4157_s5] sm:$0xff] }
0x2830   :  { %v2163_v17 = vpop.permute.xlu0 %2162 }
0x2831   :  { %v2168_v58 = vadd.f32 %v2163_v17, %v2148_v16  ;;  %v2500_v16 = vld [vmem:[%s4159_s4] sm:$0x3] }
0x2832   :  { %v2165_v60 = vpop.permute.xlu1 %2164 }
0x2833   :  { %3152 = vtanh.f32 %v2168_v58  ;;  %v2169_v57 = vadd.f32 %v2165_v60, %v2149_v59 }
0x2835   :  { %3154 = vtanh.f32 %v2169_v57  ;;  %v2325_v50 = vrot.slane %v2169_v57, 7 }
0x2837   :  { %v4058_v62 = vsel %vm229_vm4, %v2325_v50, %v2168_v58 }
0x2840   :  { %v3153_v61 = vpop.eup %3152 }
0x2841   :  { %2174 = vrot.lane.b32.xlu0 %v3153_v61, %s3194_s16 }
0x2842   :  { %v3155_v10 = vpop.eup %3154 }
0x2843   :  { %2176 = vrot.lane.b32.xlu1 %v3155_v10, %s3194_s16 }
0x28b3   :  { %v2175_v18 = vpop.permute.xlu0 %2174 }
0x28b4   :  { %v2180_v20 = vmul.f32 %v3149_v35, %v2175_v18 }
0x28b5   :  { %v2177_v27 = vpop.permute.xlu1 %2176 }
0x28b6   :  { %v2181_v19 = vmul.f32 %v3151_v33, %v2177_v27 }
0x28b8   :  { %v2190_v21 = vrot.slane %v2181_v19, 7  ;;  %v2591_v19 = vld [vmem:[%s4160_s9 + $0x8] sm:$0xff] }
0x28ba   :  { %v2191_v29 = vsel %vm229_vm4, %v2190_v21, %v2180_v20  ;;  %v2590_v20 = vld [vmem:[%s4160_s9] sm:$0xff]  ;;  %v16_v21 = vstv %s4161_s10 }
0x28bb   :  { %2192 = vrot.lane.b32.xlu1 %v2191_v29, %s3193_s18  ;;  %17 = vst [vmem:[#allocation6] sm:$0x1] %v16_v21 }
0x28c2   :  { %v2732_v39 = vld [vmem:[#allocation6] ss:$0 sm:$0xff] }
0x292d   :  { %v2193_v36 = vpop.permute.xlu1 %2192 }
0x292e   :  { %2322 = vst.msk [vmem:[#allocation2] sm:$0x3] %vm44_vm0, %v2193_v36  ;;  %2875 = vmatmul.mubr.msk.f32.vlgmr.msra.gmra.mxu0 %vm81_vm1, %v2193_v36 }
0x292f   :  { %2878 = vmatpush3.msra.mxu0 %v2357_v22  ;;  %2885 = vmatprep.mubr.msk.f32.mxu0 %vm3195_vm3, %v3192_v0 }
0x2930   :  { %2879 = vmatprep.subr.mxu0 %v3192_v0 }
0x2931   :  { %2880 = vmatpush3.msra.mxu0 %v2356_v1 }
0x2932   :  { %2881 = vmatprep.subr.mxu0 %v3192_v0 }
0x2933   :  { %2882 = vmatpush3.msra.mxu0 %v2355_v38 }
0x2934   :  { %2883 = vmatprep.subr.mxu0 %v3192_v0 }
0x2935   :  { %2884 = vmatpush3.msra.mxu0 %v2354_v44 }
0x2936   :  { %2886 = vmatmul.mubr.msk.f32.vlgmr.msra.gmra.mxu0 %vm81_vm1, %v2193_v36  ;;  %2899 = vmatprep.subr.mxu0 %v3192_v0  ;;  %v2731_v36 = vld [vmem:[%s4162_s8] ss:$0 sm:$0xff] }
0x2937   :  { %2901 = vmatprep.mubr.msk.f32.mxu0 %vm3195_vm3, %v3192_v0 }
0x29ee   :  { %v2262_v46 = vpop.f32.mrf.mxu0 }
0x29ef   :  { %v2267_v12 = vrot.slane %v2262_v46, 1  ;;  %v2270_v56 = vadd.f32 %v2262_v46, %v2186_v54 }
0x29f0   :  { %v2876_v13 = vpop.f32.mrf.mxu0 }
0x29f1   :  { %v2271_v3 = vadd.f32 %v2267_v12, %v2187_v43  ;;  %3156 = vtanh.f32 %v2270_v56  ;;  %v2725_v49 = vmul.f32 -1.442695, %v2270_v56 }
0x29f3   :  { %3158 = vtanh.f32 %v2271_v3  ;;  %v2726_v7 = vmul.f32 -1.442695, %v2271_v3 }
0x29f4   :  { %3160 = vpow2.f32 %v2725_v49 }
0x29f5   :  { %3162 = vpow2.f32 %v2726_v7 }
0x29f6   :  { %v4093_v14 = vpop.f32.mrf.mxu0 }
0x29f8   :  { %v2887_v40 = vpop.f32.mrf.mxu0 }
0x29fe   :  { %v3157_v34 = vpop.eup %3156 }
0x29ff   :  { %2290 = vrot.lane.b32.xlu1 %v3157_v34, %s3194_s16 }
0x2a00   :  { %v3159_v5 = vpop.eup %3158 }
0x2a01   :  { %2292 = vrot.lane.b32.xlu0 %v3159_v5, %s3194_s16  ;;  %v3161_v53 = vpop.eup %3160 }
0x2a02   :  { %v3163_v6 = vpop.eup %3162  ;;  %v2278_v63 = vadd.f32 1.0, %v3161_v53 }
0x2a03   :  { %v2279_v8 = vadd.f32 1.0, %v3163_v6 }
0x2a04   :  { %3164 = vrcp.f32 %v2278_v63 }
0x2a05   :  { %3166 = vrcp.f32 %v2279_v8 }
0x2a11   :  { %v3165_v9 = vpop.eup %3164 }
0x2a12   :  { %v3167_v37 = vpop.eup %3166  ;;  %v2286_v15 = vmul.f32 %v3165_v9, %v4029_v4  ;;  %v2352_v4 = vld [vmem:[%s4157_s5 + $0x10] sm:$0xff] }
0x2a13   :  { %v2287_v28 = vmul.f32 %v3167_v37, %v4033_v2  ;;  %v2501_v2 = vld [vmem:[%s4158_s7] sm:$0xf]  ;;  %2891 = vmatpush3.msra.mxu1 %v2352_v4 }
0x2a14   :  { %2900 = vmatpush3.msk.msra.mxu0 %vm2506_vm5, %v2501_v2  ;;  %2892 = vmatprep.subr.mxu1 %v3192_v0 }
0x2a15   :  { %2893 = vmatpush3.msra.mxu1 %v2351_v55  ;;  %2902 = vmatmul.mubr.msk.f32.vlgmr.msra.gmra.mxu0 %vm2502_vm6, %v2500_v16 }
0x2a16   :  { %2894 = vmatprep.subr.mxu1 %v3192_v0 }
0x2a17   :  { %2895 = vmatpush3.msra.mxu1 %v2350_v52 }
0x2a18   :  { %2904 = vmatprep.subr.mxu1 %v3192_v0 }
0x2a71   :  { %v2291_v24 = vpop.permute.xlu1 %2290 }
0x2a72   :  { %v2296_v11 = vmul.f32 %v3165_v9, %v2291_v24 }
0x2a73   :  { %v2293_v23 = vpop.permute.xlu0 %2292 }
0x2a74   :  { %2300 = vrot.lane.b32.xlu1 %v2296_v11, %s3193_s18  ;;  %v2297_v25 = vmul.f32 %v3167_v37, %v2293_v23 }
0x2a76   :  { %2302 = vrot.lane.b32.xlu0 %v2297_v25, %s3193_s18 }
0x2ad5   :  { %v2576_v18 = vpop.f32.mrf.mxu0 }
0x2ad7   :  { %v2903_v27 = vpop.f32.mrf.mxu0 }
0x2ae6   :  { %v2301_v26 = vpop.permute.xlu1 %2300 }
0x2ae7   :  { %v2306_v42 = vadd.f32 %v2301_v26, %v2286_v15 }
0x2ae8   :  { %v2303_v30 = vpop.permute.xlu0 %2302 }
0x2ae9   :  { %3168 = vtanh.f32 %v2306_v42  ;;  %v2307_v48 = vadd.f32 %v2303_v30, %v2287_v28 }
0x2aeb   :  { %3170 = vtanh.f32 %v2307_v48  ;;  %v2341_v31 = vrot.slane %v2307_v48, 7 }
0x2aed   :  { %v2342_v35 = vsel %vm229_vm4, %v2341_v31, %v2306_v42 }
0x2af6   :  { %v3169_v32 = vpop.eup %3168 }
0x2af7   :  { %2312 = vrot.lane.b32.xlu1 %v3169_v32, %s3194_s16 }
0x2af8   :  { %v3171_v33 = vpop.eup %3170 }
0x2af9   :  { %2314 = vrot.lane.b32.xlu0 %v3171_v33, %s3194_s16 }
0x2afb   :  { %2327 = vrot.lane.b32.xlu1 %v4058_v62, %s3196_s12 }
0x2b69   :  { %v2313_v17 = vpop.permute.xlu1 %2312 }
0x2b6a   :  { %v2318_v57 = vmul.f32 %v3165_v9, %v2313_v17 }
0x2b6b   :  { %v2315_v58 = vpop.permute.xlu0 %2314 }
0x2b6c   :  { %v2319_v59 = vmul.f32 %v3167_v37, %v2315_v58 }
0x2b6d   :  { %v2328_v60 = vpop.permute.xlu1 %2327 }
0x2b6e   :  { %2330 = vst.msk [vmem:[#allocation3] sm:$0x3] %vm44_vm0, %v2328_v60  ;;  %v2333_v50 = vrot.slane %v2319_v59, 7 }
0x2b70   :  { %v2334_v62 = vsel %vm229_vm4, %v2333_v50, %v2318_v57 }
0x2b71   :  { %2335 = vrot.lane.b32.xlu0 %v2334_v62, %s3193_s18 }
0x2b75   :  { %2343 = vrot.lane.b32.xlu0 %v2342_v35, %s3196_s12 }
0x2be3   :  { %v2336_v61 = vpop.permute.xlu0 %2335 }
0x2be4   :  { %2338 = vst.msk [vmem:[#allocation4] sm:$0x3] %vm44_vm0, %v2336_v61  ;;  %2897 = vmatmul.mubr.msk.f32.vlgmr.msra.gmra.mxu1 %vm81_vm1, %v2336_v61 }
0x2be5   :  { %2908 = vmatprep.mubr.msk.f32.mxu1 %vm3195_vm3, %v3192_v0  ;;  %2905 = vmatpush3.msra.mxu1 %v2591_v19 }
0x2be6   :  { %2906 = vmatprep.subr.mxu1 %v3192_v0 }
0x2be7   :  { %v2344_v10 = vpop.permute.xlu0 %2343  ;;  %2907 = vmatpush3.msra.mxu1 %v2590_v20 }
0x2be8   :  { %2346 = vst.msk [vmem:[#allocation5] sm:$0x3] %vm44_vm0, %v2344_v10 }
0x2ca4   :  { %v2496_v29 = vpop.f32.mrf.mxu1 }
0x2ca5   :  { %v2497_v22 = vadd.f32 %v2496_v29, %v4093_v14 }
0x2ca6   :  { %v2898_v1 = vpop.f32.mrf.mxu1 }
0x2ca7   :  { %v2580_v38 = vadd.f32 %v2576_v18, %v2497_v22 }
0x2ca9   :  { %v2588_v0 = vadd.f32 %v2731_v36, %v2580_v38 }
0x2cab   :  { %v2589_v44 = vmax.f32 %v2588_v0, 0.0 }
0x2cad   :  { %2909 = vmatmul.mubr.msk.f32.vlgmr.msra.gmra.mxu1 %vm2599_vm7, %v2589_v44 }
0x2d6d   :  { %v2669_v41 = vpop.f32.mrf.mxu1 }
0x2d6e   :  { %v2670_v45 = vadd.f32 %v2732_v39, %v2669_v41 }
0x2d6f   :  { %v2910_v47 = vpop.f32.mrf.mxu1 }
0x2d70   :  { %2674 = vst.msk [vmem:[%s4163_s11] sm:$0x3] %vm2673_vm8, %v2670_v45 }

</bundles_post_ra>
